<compile_context>
chip_gen: v5e
topology: v5e:2x2
jax: 0.10.0
libtpu: 0.0.40
codegen_flags: <defaults>
</compile_context>

<pallas_src>
import jax
import jax.numpy as jnp
from jax.experimental import pallas as pl
from jax.experimental.pallas import tpu as pltpu

IN_DIM = 28 * 28          # 784 (equals the full array dim -> legal non-128 lane block)
H1 = 128
H2 = 64
OUT_DIM = 10
OUT_PAD = 128             # lane-dense output width; real 10 cols sliced outside


def _round_up(x, m):
    return ((x + m - 1) // m) * m


def _gaussian_norm(x):
    """torch GaussianLayer: (x - mean) / (std + 1e-5), std Bessel-corrected (n-1).

    Exact division (not approx reciprocal) for torch parity; the kernel is HBM-bound
    so the extra VPU work is free. Works both inside and outside the kernel."""
    n = x.shape[-1]
    mean = jnp.mean(x, axis=-1, keepdims=True)
    diff = x - mean
    var = jnp.sum(diff * diff, axis=-1, keepdims=True) / (n - 1)
    return diff / (jnp.sqrt(var) + 1e-5)


def _ffnn_kernel(x_ref, w1_ref, b1_ref, w2_ref, b2_ref, w3_ref, b3_ref, o_ref):
    # x arrives as f32 straight from HBM (read once); cast to bf16 only for the MXU.
    x = x_ref[...].astype(w1_ref.dtype)                              # (block_b, 784)

    # fc1 + ReLU + GaussianNorm  (bf16 MXU, f32 accumulate, f32 elementwise)
    h1 = jnp.dot(x, w1_ref[...], preferred_element_type=jnp.float32) + b1_ref[...]
    h1 = jnp.maximum(h1, 0.0)
    h1 = _gaussian_norm(h1)

    # fc2 + ReLU + GaussianNorm
    h2 = jnp.dot(h1.astype(w2_ref.dtype), w2_ref[...],
                 preferred_element_type=jnp.float32) + b2_ref[...]
    h2 = jnp.maximum(h2, 0.0)
    h2 = _gaussian_norm(h2)

    # fc3 (lane-padded to 128 output columns; padded columns are exact zeros + 0 bias)
    o_ref[...] = (jnp.dot(h2.astype(w3_ref.dtype), w3_ref[...],
                          preferred_element_type=jnp.float32)
                  + b3_ref[...]).astype(o_ref.dtype)


def _pick_block_b(B, max_block_b):
    if B <= 256:
        return _round_up(max(B, 8), 8)        # one small tile, minimal over-padding
    # Aim for >= 2 grid steps (v7x has 2 TensorCores; batch is the only parallel axis),
    # keep the tile a multiple of 256 for the MXU, cap for v5e's 16 MiB scoped VMEM.
    return min(max_block_b, _round_up(pl.cdiv(B, 2), 256))


def ffnn_with_gaussian(x, params, *, block_b=None, max_block_b=1024,
                       mxu_dtype=jnp.bfloat16, vmem_limit_bytes=None):
    """x: (B, 1, 28, 28) / (B, 28, 28) / (B, 784) float32. Returns (B, 10) float32."""
    w1, b1, w2, b2, w3, b3 = params
    x = x.reshape(-1, IN_DIM)
    if x.dtype != jnp.float32:
        x = x.astype(jnp.float32)
    B = x.shape[0]

    if block_b is None:
        block_b = _pick_block_b(B, max_block_b)
    block_b = max(8, _round_up(block_b, 8))
    grid_b = pl.cdiv(B, block_b)
    b_pad = grid_b * block_b

    # Ragged batch: pad rows only (f32, no dtype cast, no K pad). When B is already a
    # multiple of block_b this branch is skipped and x streams straight from HBM.
    if b_pad != B:
        x = jnp.zeros((b_pad, IN_DIM), x.dtype).at[:B, :].set(x)

    # Weights are tiny (<0.5 MB total); cast once. Stored as (in, out): y = x @ W + b.
    w1_c = w1.astype(mxu_dtype)                                       # (784, 128)
    w2_c = w2.astype(mxu_dtype)                                       # (128, 64)
    w3_p = jnp.zeros((H2, OUT_PAD), mxu_dtype).at[:, :OUT_DIM].set(w3.astype(mxu_dtype))
    b1_c = b1.reshape(1, H1).astype(jnp.float32)
    b2_c = b2.reshape(1, H2).astype(jnp.float32)
    b3_p = jnp.zeros((1, OUT_PAD), jnp.float32).at[:, :OUT_DIM].set(
        b3.reshape(1, OUT_DIM).astype(jnp.float32))

    itemsize = jnp.dtype(mxu_dtype).itemsize
    cost = pl.CostEstimate(
        flops=2 * b_pad * (IN_DIM * H1 + H1 * H2 + H2 * OUT_PAD),
        transcendentals=2 * b_pad,  # 2x sqrt per row
        bytes_accessed=b_pad * IN_DIM * 4                      # x read once, f32
        + (w1_c.size + w2_c.size + w3_p.size) * itemsize
        + (b1_c.size + b2_c.size + b3_p.size) * 4
        + b_pad * OUT_PAD * 4,
    )

    out = pl.pallas_call(
        _ffnn_kernel,
        out_shape=jax.ShapeDtypeStruct((b_pad, OUT_PAD), jnp.float32),
        grid_spec=pltpu.PrefetchScalarGridSpec(
            num_scalar_prefetch=0,
            grid=(grid_b,),
            in_specs=[
                pl.BlockSpec((block_b, IN_DIM), lambda i: (i, 0)),    # x (streamed f32)
                # Grid-invariant weights/biases, resident across the batch grid.
                pl.BlockSpec((IN_DIM, H1), lambda i: (0, 0)),         # w1
                pl.BlockSpec((1, H1), lambda i: (0, 0)),              # b1
                pl.BlockSpec((H1, H2), lambda i: (0, 0)),             # w2
                pl.BlockSpec((1, H2), lambda i: (0, 0)),              # b2
                pl.BlockSpec((H2, OUT_PAD), lambda i: (0, 0)),        # w3 (lane-padded)
                pl.BlockSpec((1, OUT_PAD), lambda i: (0, 0)),         # b3 (lane-padded)
            ],
            out_specs=pl.BlockSpec((block_b, OUT_PAD), lambda i: (i, 0)),
        ),
        compiler_params=pltpu.CompilerParams(
            dimension_semantics=("parallel",),   # batch axis sharded across TCs (v7x)
            vmem_limit_bytes=vmem_limit_bytes,   # raise (e.g. 48<<20) if max_block_b>1024
        ),
        cost_estimate=cost,
    )(x, w1_c, b1_c, w2_c, b2_c, w3_p, b3_p)

    return out[:B, :OUT_DIM]


def init_params(key):
    """Deterministic init mimicking nn.Linear default U(-1/sqrt(fan_in), 1/sqrt(fan_in))."""
    ks = jax.random.split(key, 6)

    def lin(kw, kb, fan_in, fan_out):
        bound = float(fan_in) ** -0.5
        w = jax.random.uniform(kw, (fan_in, fan_out), jnp.float32, -bound, bound)
        b = jax.random.uniform(kb, (1, fan_out), jnp.float32, -bound, bound)
        return w, b

    w1, b1 = lin(ks[0], ks[1], IN_DIM, H1)
    w2, b2 = lin(ks[2], ks[3], H1, H2)
    w3, b3 = lin(ks[4], ks[5], H2, OUT_DIM)
    return (w1, b1, w2, b2, w3, b3)


def _reference(x, params, mxu_dtype=jnp.bfloat16):
    """Pure-JAX reference mirroring the kernel numerics (bf16 MXU inputs, f32 accumulate,
    exact-division GaussianNorm -- i.e. the torch forward at bf16 matmul precision)."""
    w1, b1, w2, b2, w3, b3 = params
    x = x.reshape(-1, IN_DIM).astype(jnp.float32)

    def mm(a, w):
        return jnp.dot(a.astype(mxu_dtype), w.astype(mxu_dtype),
                       preferred_element_type=jnp.float32)

    h = jnp.maximum(mm(x, w1) + b1.reshape(1, -1), 0.0)
    h = _gaussian_norm(h)
    h = jnp.maximum(mm(h, w2) + b2.reshape(1, -1), 0.0)
    h = _gaussian_norm(h)
    return mm(h, w3) + b3.reshape(1, -1)


if __name__ == "__main__":
    key = jax.random.PRNGKey(0)
    k_x, k_p = jax.random.split(key)

    # MNIST-like batch; deliberately not a multiple of the tile so the ragged path is
    # exercised (block_b -> 256, grid = 2, last tile partially real and row-padded).
    B = 300
    x = jax.random.normal(k_x, (B, 1, 28, 28), jnp.float32)
    params = init_params(k_p)

    out = jax.block_until_ready(ffnn_with_gaussian(x, params))
    ref = _reference(x, params)

    assert out.shape == (B, OUT_DIM), out.shape
    max_err = float(jnp.max(jnp.abs(out - ref)))
    assert max_err < 2e-3, f"max abs err {max_err}"

    print("KERNEL_OK")
</pallas_src>

<mosaic_0001>
module attributes {stable_mosaic.version = 11 : i64} {
  func.func @_ffnn_kernel(%arg0: i32, %arg1: memref<256x784xf32, #tpu.memory_space<vmem>>, %arg2: memref<784x128xbf16, #tpu.memory_space<vmem>>, %arg3: memref<1x128xf32, #tpu.memory_space<vmem>>, %arg4: memref<128x64xbf16, #tpu.memory_space<vmem>>, %arg5: memref<1x64xf32, #tpu.memory_space<vmem>>, %arg6: memref<64x128xbf16, #tpu.memory_space<vmem>>, %arg7: memref<1x128xf32, #tpu.memory_space<vmem>>, %arg8: memref<256x128xf32, #tpu.memory_space<vmem>>) attributes {dimension_semantics = [#tpu.dimension_semantics<parallel>], iteration_bounds = array<i64: 2>, scalar_prefetch = 0 : i64, scratch_operands = 0 : i64, tpu.core_type = #tpu.core_type<tc>, window_params = [{transform_indices = @transform_0, window_bounds = array<i64: 256, 784>}, {pipeline_mode = #tpu.pipeline_mode<synchronous>, transform_indices = @transform_1, window_bounds = array<i64: 784, 128>}, {pipeline_mode = #tpu.pipeline_mode<synchronous>, transform_indices = @transform_2, window_bounds = array<i64: 1, 128>}, {pipeline_mode = #tpu.pipeline_mode<synchronous>, transform_indices = @transform_3, window_bounds = array<i64: 128, 64>}, {pipeline_mode = #tpu.pipeline_mode<synchronous>, transform_indices = @transform_4, window_bounds = array<i64: 1, 64>}, {pipeline_mode = #tpu.pipeline_mode<synchronous>, transform_indices = @transform_5, window_bounds = array<i64: 64, 128>}, {pipeline_mode = #tpu.pipeline_mode<synchronous>, transform_indices = @transform_6, window_bounds = array<i64: 1, 128>}, {transform_indices = @transform_7, window_bounds = array<i64: 256, 128>}]} {
    %c0 = arith.constant 0 : index
    %c0_0 = arith.constant 0 : index
    %0 = vector.load %arg1[%c0, %c0_0] : memref<256x784xf32, #tpu.memory_space<vmem>>, vector<256x784xf32>
    %1 = arith.truncf %0 : vector<256x784xf32> to vector<256x784xbf16>
    %c0_1 = arith.constant 0 : index
    %c0_2 = arith.constant 0 : index
    %2 = vector.load %arg2[%c0_1, %c0_2] : memref<784x128xbf16, #tpu.memory_space<vmem>>, vector<784x128xbf16>
    %cst = arith.constant dense<0.000000e+00> : vector<256x128xf32>
    %3 = tpu.matmul %1, %2, %cst {dimension_numbers = #tpu.dot_dimension_numbers<[1], [0], [0], [1], [0, 0, 1, 1], [], []>} : vector<256x784xbf16>, vector<784x128xbf16>, vector<256x128xf32> -> vector<256x128xf32>
    %c0_3 = arith.constant 0 : index
    %c0_4 = arith.constant 0 : index
    %4 = vector.load %arg3[%c0_3, %c0_4] : memref<1x128xf32, #tpu.memory_space<vmem>>, vector<1x128xf32>
    %5 = vector.broadcast %4 : vector<1x128xf32> to vector<256x128xf32>
    %6 = arith.addf %3, %5 : vector<256x128xf32>
    %cst_5 = arith.constant 0.000000e+00 : f32
    %7 = vector.broadcast %cst_5 : f32 to vector<256x128xf32>
    %8 = arith.maximumf %6, %7 : vector<256x128xf32>
    %cst_6 = arith.constant dense<0.000000e+00> : vector<256xf32>
    %9 = vector.multi_reduction <add>, %8, %cst_6 [1] : vector<256x128xf32> to vector<256xf32>
    %10 = vector.shape_cast %9 : vector<256xf32> to vector<256x1xf32>
    %cst_7 = arith.constant 1.280000e+02 : f32
    %11 = vector.broadcast %cst_7 : f32 to vector<256x1xf32>
    %12 = arith.divf %10, %11 : vector<256x1xf32>
    %13 = vector.broadcast %12 : vector<256x1xf32> to vector<256x128xf32>
    %14 = arith.subf %8, %13 : vector<256x128xf32>
    %15 = arith.mulf %14, %14 : vector<256x128xf32>
    %cst_8 = arith.constant dense<0.000000e+00> : vector<256xf32>
    %16 = vector.multi_reduction <add>, %15, %cst_8 [1] : vector<256x128xf32> to vector<256xf32>
    %17 = vector.shape_cast %16 : vector<256xf32> to vector<256x1xf32>
    %cst_9 = arith.constant 1.270000e+02 : f32
    %18 = vector.broadcast %cst_9 : f32 to vector<256x1xf32>
    %19 = arith.divf %17, %18 : vector<256x1xf32>
    %20 = math.sqrt %19 : vector<256x1xf32>
    %cst_10 = arith.constant 9.99999974E-6 : f32
    %21 = vector.broadcast %cst_10 : f32 to vector<256x1xf32>
    %22 = arith.addf %20, %21 : vector<256x1xf32>
    %23 = vector.broadcast %22 : vector<256x1xf32> to vector<256x128xf32>
    %24 = arith.divf %14, %23 : vector<256x128xf32>
    %25 = arith.truncf %24 : vector<256x128xf32> to vector<256x128xbf16>
    %c0_11 = arith.constant 0 : index
    %c0_12 = arith.constant 0 : index
    %26 = vector.load %arg4[%c0_11, %c0_12] : memref<128x64xbf16, #tpu.memory_space<vmem>>, vector<128x64xbf16>
    %cst_13 = arith.constant dense<0.000000e+00> : vector<256x64xf32>
    %27 = tpu.matmul %25, %26, %cst_13 {dimension_numbers = #tpu.dot_dimension_numbers<[1], [0], [0], [1], [0, 0, 1, 1], [], []>} : vector<256x128xbf16>, vector<128x64xbf16>, vector<256x64xf32> -> vector<256x64xf32>
    %c0_14 = arith.constant 0 : index
    %c0_15 = arith.constant 0 : index
    %28 = vector.load %arg5[%c0_14, %c0_15] : memref<1x64xf32, #tpu.memory_space<vmem>>, vector<1x64xf32>
    %29 = vector.broadcast %28 : vector<1x64xf32> to vector<256x64xf32>
    %30 = arith.addf %27, %29 : vector<256x64xf32>
    %cst_16 = arith.constant 0.000000e+00 : f32
    %31 = vector.broadcast %cst_16 : f32 to vector<256x64xf32>
    %32 = arith.maximumf %30, %31 : vector<256x64xf32>
    %cst_17 = arith.constant dense<0.000000e+00> : vector<256xf32>
    %33 = vector.multi_reduction <add>, %32, %cst_17 [1] : vector<256x64xf32> to vector<256xf32>
    %34 = vector.shape_cast %33 : vector<256xf32> to vector<256x1xf32>
    %cst_18 = arith.constant 6.400000e+01 : f32
    %35 = vector.broadcast %cst_18 : f32 to vector<256x1xf32>
    %36 = arith.divf %34, %35 : vector<256x1xf32>
    %37 = vector.broadcast %36 : vector<256x1xf32> to vector<256x64xf32>
    %38 = arith.subf %32, %37 : vector<256x64xf32>
    %39 = arith.mulf %38, %38 : vector<256x64xf32>
    %cst_19 = arith.constant dense<0.000000e+00> : vector<256xf32>
    %40 = vector.multi_reduction <add>, %39, %cst_19 [1] : vector<256x64xf32> to vector<256xf32>
    %41 = vector.shape_cast %40 : vector<256xf32> to vector<256x1xf32>
    %cst_20 = arith.constant 6.300000e+01 : f32
    %42 = vector.broadcast %cst_20 : f32 to vector<256x1xf32>
    %43 = arith.divf %41, %42 : vector<256x1xf32>
    %44 = math.sqrt %43 : vector<256x1xf32>
    %cst_21 = arith.constant 9.99999974E-6 : f32
    %45 = vector.broadcast %cst_21 : f32 to vector<256x1xf32>
    %46 = arith.addf %44, %45 : vector<256x1xf32>
    %47 = vector.broadcast %46 : vector<256x1xf32> to vector<256x64xf32>
    %48 = arith.divf %38, %47 : vector<256x64xf32>
    %49 = arith.truncf %48 : vector<256x64xf32> to vector<256x64xbf16>
    %c0_22 = arith.constant 0 : index
    %c0_23 = arith.constant 0 : index
    %50 = vector.load %arg6[%c0_22, %c0_23] : memref<64x128xbf16, #tpu.memory_space<vmem>>, vector<64x128xbf16>
    %cst_24 = arith.constant dense<0.000000e+00> : vector<256x128xf32>
    %51 = tpu.matmul %49, %50, %cst_24 {dimension_numbers = #tpu.dot_dimension_numbers<[1], [0], [0], [1], [0, 0, 1, 1], [], []>} : vector<256x64xbf16>, vector<64x128xbf16>, vector<256x128xf32> -> vector<256x128xf32>
    %c0_25 = arith.constant 0 : index
    %c0_26 = arith.constant 0 : index
    %52 = vector.load %arg7[%c0_25, %c0_26] : memref<1x128xf32, #tpu.memory_space<vmem>>, vector<1x128xf32>
    %53 = vector.broadcast %52 : vector<1x128xf32> to vector<256x128xf32>
    %54 = arith.addf %51, %53 : vector<256x128xf32>
    %c0_27 = arith.constant 0 : index
    %c0_28 = arith.constant 0 : index
    %55 = vector.load %arg8[%c0_27, %c0_28] : memref<256x128xf32, #tpu.memory_space<vmem>>, vector<256x128xf32>
    tpu.vector_store %arg8[%c0_27, %c0_28], %54 {strides = array<i32>} : memref<256x128xf32, #tpu.memory_space<vmem>>, vector<256x128xf32>,
    return
  }
  func.func @transform_0(%arg0: i32) -> (i32, i32) {
    %c0_i32 = arith.constant 0 : i32
    %c0_i32_0 = arith.constant 0 : i32
    return %arg0, %c0_i32 : i32, i32
  }
  func.func @transform_1(%arg0: i32) -> (i32, i32) {
    %c0_i32 = arith.constant 0 : i32
    %c0_i32_0 = arith.constant 0 : i32
    %c0_i32_1 = arith.constant 0 : i32
    return %c0_i32, %c0_i32_0 : i32, i32
  }
  func.func @transform_2(%arg0: i32) -> (i32, i32) {
    %c0_i32 = arith.constant 0 : i32
    %c0_i32_0 = arith.constant 0 : i32
    %c0_i32_1 = arith.constant 0 : i32
    return %c0_i32, %c0_i32_0 : i32, i32
  }
  func.func @transform_3(%arg0: i32) -> (i32, i32) {
    %c0_i32 = arith.constant 0 : i32
    %c0_i32_0 = arith.constant 0 : i32
    %c0_i32_1 = arith.constant 0 : i32
    return %c0_i32, %c0_i32_0 : i32, i32
  }
  func.func @transform_4(%arg0: i32) -> (i32, i32) {
    %c0_i32 = arith.constant 0 : i32
    %c0_i32_0 = arith.constant 0 : i32
    %c0_i32_1 = arith.constant 0 : i32
    return %c0_i32, %c0_i32_0 : i32, i32
  }
  func.func @transform_5(%arg0: i32) -> (i32, i32) {
    %c0_i32 = arith.constant 0 : i32
    %c0_i32_0 = arith.constant 0 : i32
    %c0_i32_1 = arith.constant 0 : i32
    return %c0_i32, %c0_i32_0 : i32, i32
  }
  func.func @transform_6(%arg0: i32) -> (i32, i32) {
    %c0_i32 = arith.constant 0 : i32
    %c0_i32_0 = arith.constant 0 : i32
    %c0_i32_1 = arith.constant 0 : i32
    return %c0_i32, %c0_i32_0 : i32, i32
  }
  func.func @transform_7(%arg0: i32) -> (i32, i32) {
    %c0_i32 = arith.constant 0 : i32
    %c0_i32_0 = arith.constant 0 : i32
    return %arg0, %c0_i32 : i32, i32
  }
}

</mosaic_0001>

<bundles_post_ra>
// kernel: tpu_custom_call.1
= control target key start
LH: loop header
LB: loop body
LE: loop exit
PB: predicated region body
PF: predicated region fallthrough
CT: control target
= control target key end

     0   :  { %12 = vsyncpa [#allocation3], 0  ;;  %s8557_s0 = inlined_call_operand.vmem [shape: f32[512,784], index: 0, kind: input, shape index: {}]   ;;  %s8558_s1 = inlined_call_operand.vmem [shape: bf16[784,128], index: 1, kind: input, shape index: {}]   ;;  %s8559_s2 = inlined_call_operand.vmem [shape: f32[1,128], index: 2, kind: input, shape index: {}]   ;;  %s8560_s3 = inlined_call_operand.vmem [shape: bf16[128,64], index: 3, kind: input, shape index: {}]   ;;  %s8561_s4 = inlined_call_operand.vmem [shape: f32[1,64], index: 4, kind: input, shape index: {}]   ;;  %s8562_s5 = inlined_call_operand.vmem [shape: bf16[64,128], index: 5, kind: input, shape index: {}]   ;;  %s8563_s6 = inlined_call_operand.vmem [shape: f32[1,128], index: 6, kind: input, shape index: {}]   ;;  %s8564_s7 = inlined_call_operand.hbm [shape: f32[512,128], index: 7, kind: output, shape index: {}]  }
   0x1   :  { %14 = vsyncpa [#allocation3 + $0x1], 0  ;;  %s5421_s24 = smov 0   ;;  %s5423_s25 = smov 0  }
   0x2   :  { %s5425_s26 = smov 0   ;;  %s5427_s27 = smov 0  }
   0x3 LB: > { %s5442_s28 = sadd.s32 4294967295, %s5373_s27   ;;  %s4621_s29 = sadd.s32 4294967294, %s5373_s27   ;;  %s5373_s27 = sphi %s5427_s27, %s8654_s27   ;;  %s5369_s26 = sphi %s5425_s26, %s8653_s26   ;;  %s5365_s25 = sphi %s5423_s25, %s8652_s25   ;;  %s5361_s24 = sphi %s5421_s24, %s8651_s24  }
   0x4   : > { %s5446_s30 = sadd.s32 1, %s5373_s27   ;;  %s179_s8 = sadd.s32 1, %s5369_s26 }
   0x5   : > { %s176_s9 = ssub.s32 %s5373_s27, %s5446_s30  ;;  %p189_p0 = scmp.ne.s32.totalorder %s5369_s26, %s5365_s25 }
   0x6   : > { %p177_p1 = scmp.eq.s32.totalorder %s176_s9, 0  ;;  %p190_p2 = scmp.eq.s32.totalorder %s5442_s28, 1 }
   0x7   : > { %p195_p3 = scmp.ne.s32.totalorder %s5365_s25, %s5361_s24  ;;  %p196_p4 = scmp.eq.s32.totalorder %s4621_s29, 1 }
   0x8   : > { %s5457_s10 = scalar_select %p177_p1, %s5369_s26, %s179_s8  }
   0x9   : > { %p5459_p5 = por %p190_p2, %p189_p0  ;;  %p5463_p6 = por %p196_p4, %p195_p3 }
   0xa   : > { %p4624_p7 = scmp.ge.s32.totalorder %s5373_s27, 1  ;;  %p242_p8 = scmp.lt.s32.totalorder %s5373_s27, 3 }
   0xc   : > { %p243_p9 = pnand %p4624_p7, %p242_p8 }
   0xe   : > { %246 = sbr.rel (%p243_p9) target bundleno = 2049 (0x801), region = 48 }
  0x13   : > { %v4916_v0 = vld [vmem:[%s8558_s1 + $0x38] sm:$0xff]  ;;  %v4915_v1 = vld [vmem:[%s8558_s1 + $0x30] sm:$0xff]  ;;  %v4914_v2 = vld [vmem:[%s8558_s1 + $0x28] sm:$0xff]  ;;  %s4626_s19 = sshll.u32 %s5442_s28, 5  ;;  %vm1016_vm0 = vcmask 130048   ;;  %s4970_s21 = sshll.u32 %s5442_s28, 8 }
  0x14   : > { %4971 = vmatpush.bf16.msra.mxu1 %v4916_v0  ;;  %4972 = vmatpush.bf16.msra.mxu2 %v4916_v0  ;;  %v4913_v3 = vld [vmem:[%s8558_s1 + $0x20] sm:$0xff]  ;;  %p276_p10 = scmp.lt.s32.totalorder %s4626_s19, 63  ;;  %v4912_v4 = vld [vmem:[%s8558_s1 + $0x18] sm:$0xff]  ;;  %v4911_v5 = vld [vmem:[%s8558_s1 + $0x10] sm:$0xff]  ;;  %s4555_s29 = scalar_lea.hbm %s8564_s7, %s4970_s21 }
  0x15   : > { %4973 = vmatpush.bf16.msra.mxu3 %v4916_v0  ;;  %1065 = vmatpush.bf16.msra.mxu0 %v4916_v0  ;;  %v4910_v6 = vld [vmem:[%s8558_s1 + $0x8] sm:$0xff]  ;;  %v4909_v7 = vld [vmem:[%s8558_s1] sm:$0xff]  ;;  %v4932_v12 = vld [vmem:[%s8558_s1 + $0xb8] sm:$0xff] }
  0x16   : > { %s8656_s19 = smov (!%p276_p10, %s4626_s19), 63  ;;  %v4924_v15 = vld [vmem:[%s8558_s1 + $0x78] sm:$0xff]  ;;  %v4931_v21 = vld [vmem:[%s8558_s1 + $0xb0] sm:$0xff]  ;;  %v4930_v25 = vld [vmem:[%s8558_s1 + $0xa8] sm:$0xff] }
  0x17   : > { %s4995_s9 = smul.u32 56, %s8656_s19  ;;  %v4923_v23 = vld [vmem:[%s8558_s1 + $0x70] sm:$0xff]  ;;  %v4940_v24 = vld [vmem:[%s8558_s1 + $0xf8] sm:$0xff]  ;;  %v4922_v26 = vld [vmem:[%s8558_s1 + $0x68] sm:$0xff]  ;;  %s5331_s19 = scalar_lea.hbm %s8564_s7, 512 }
  0x18   : > { %4974 = vmatpush.bf16.msra.mxu1 %v4915_v1  ;;  %4975 = vmatpush.bf16.msra.mxu2 %v4915_v1  ;;  %v4939_v27 = vld [vmem:[%s8558_s1 + $0xf0] sm:$0xff]  ;;  %v4948_v28 = vld [vmem:[%s8558_s1 + $0x138] sm:$0xff]  ;;  %v4929_v30 = vld [vmem:[%s8558_s1 + $0xa0] sm:$0xff] }
  0x19   : > { %4976 = vmatpush.bf16.msra.mxu3 %v4915_v1  ;;  %1066 = vmatpush.bf16.msra.mxu0 %v4915_v1  ;;  %s5494_s17 = scalar_lea.vmem %s8557_s0, %s4995_s9  ;;  %v4947_v29 = vld [vmem:[%s8558_s1 + $0x130] sm:$0xff]  ;;  %v4921_v31 = vld [vmem:[%s8558_s1 + $0x60] sm:$0xff]  ;;  %v4938_v32 = vld [vmem:[%s8558_s1 + $0xe8] sm:$0xff] }
  0x1a   : > { %v340_v8 = vld [vmem:[%s5494_s17 + $0x1c0] sm:$0xff]  ;;  %v347_v9 = vld [vmem:[%s5494_s17 + $0x1f8] sm:$0xff]  ;;  %v354_v33 = vld [vmem:[%s5494_s17 + $0x230] sm:$0xff] }
  0x1b   : > { %v396_v10 = vld [vmem:[%s5494_s17 + $0x380] sm:$0xff]  ;;  %v403_v11 = vld [vmem:[%s5494_s17 + $0x3b8] sm:$0xff]  ;;  %v536_v18 = vpack.c.bf16 %v347_v9, %v340_v8  ;;  %v361_v34 = vld [vmem:[%s5494_s17 + $0x268] sm:$0xff] }
  0x1c   : > { %4977 = vmatpush.bf16.msra.mxu1 %v4914_v2  ;;  %4978 = vmatpush.bf16.msra.mxu2 %v4914_v2  ;;  %v452_v13 = vld [vmem:[%s5494_s17 + $0x540] sm:$0xff]  ;;  %v459_v14 = vld [vmem:[%s5494_s17 + $0x578] sm:$0xff]  ;;  %v564_v19 = vpack.c.bf16 %v403_v11, %v396_v10  ;;  %v410_v35 = vld [vmem:[%s5494_s17 + $0x3f0] sm:$0xff]  ;;  %v543_v44 = vpack.c.bf16 %v361_v34, %v354_v33 }
  0x1d   : > { %4979 = vmatpush.bf16.msra.mxu3 %v4914_v2  ;;  %1067 = vmatpush.bf16.msra.mxu0 %v4914_v2  ;;  %v284_v16 = vld [vmem:[%s5494_s17] sm:$0xff]  ;;  %v291_v17 = vld [vmem:[%s5494_s17 + $0x38] sm:$0xff]  ;;  %v592_v20 = vpack.c.bf16 %v459_v14, %v452_v13  ;;  %v417_v36 = vld [vmem:[%s5494_s17 + $0x428] sm:$0xff] }
  0x1e   : > { %v508_v22 = vpack.c.bf16 %v291_v17, %v284_v16  ;;  %v466_v37 = vld [vmem:[%s5494_s17 + $0x5b0] sm:$0xff]  ;;  %v473_v38 = vld [vmem:[%s5494_s17 + $0x5e8] sm:$0xff]  ;;  %v4928_v40 = vld [vmem:[%s8558_s1 + $0x98] sm:$0xff]  ;;  %v571_v45 = vpack.c.bf16 %v417_v36, %v410_v35 }
  0x1f   : > { %v298_v39 = vld [vmem:[%s5494_s17 + $0x70] sm:$0xff]  ;;  %v305_v41 = vld [vmem:[%s5494_s17 + $0xa8] sm:$0xff]  ;;  %v4920_v42 = vld [vmem:[%s8558_s1 + $0x58] sm:$0xff]  ;;  %v599_v46 = vpack.c.bf16 %v473_v38, %v466_v37 }
  0x20   : > { %4980 = vmatpush.bf16.msra.mxu1 %v4913_v3  ;;  %4981 = vmatpush.bf16.msra.mxu2 %v4913_v3  ;;  %v4937_v43 = vld [vmem:[%s8558_s1 + $0xe0] sm:$0xff]  ;;  %v515_v47 = vpack.c.bf16 %v305_v41, %v298_v39  ;;  %v4927_v48 = vld [vmem:[%s8558_s1 + $0x90] sm:$0xff]  ;;  %v4936_v50 = vld [vmem:[%s8558_s1 + $0xd8] sm:$0xff] }
  0x21   : > { %4982 = vmatpush.bf16.msra.mxu3 %v4913_v3  ;;  %1068 = vmatpush.bf16.msra.mxu0 %v4913_v3  ;;  %v4919_v49 = vld [vmem:[%s8558_s1 + $0x50] sm:$0xff]  ;;  %v4946_v51 = vld [vmem:[%s8558_s1 + $0x128] sm:$0xff]  ;;  %v4945_v55 = vld [vmem:[%s8558_s1 + $0x120] sm:$0xff] }
  0x22   : > { %v4926_v52 = vld [vmem:[%s8558_s1 + $0x88] sm:$0xff]  ;;  %v4935_v54 = vld [vmem:[%s8558_s1 + $0xd0] sm:$0xff]  ;;  %v4925_v56 = vld [vmem:[%s8558_s1 + $0x80] sm:$0xff] }
  0x23   : > { %v4918_v53 = vld [vmem:[%s8558_s1 + $0x48] sm:$0xff]  ;;  %v4917_v58 = vld [vmem:[%s8558_s1 + $0x40] sm:$0xff]  ;;  %v4944_v60 = vld [vmem:[%s8558_s1 + $0x118] sm:$0xff] }
  0x24   : > { %4983 = vmatpush.bf16.msra.mxu1 %v4912_v4  ;;  %4984 = vmatpush.bf16.msra.mxu2 %v4912_v4  ;;  %v4934_v57 = vld [vmem:[%s8558_s1 + $0xc8] sm:$0xff]  ;;  %v368_v59 = vld [vmem:[%s5494_s17 + $0x2a0] sm:$0xff]  ;;  %v375_v61 = vld [vmem:[%s5494_s17 + $0x2d8] sm:$0xff] }
  0x25   : > { %4985 = vmatpush.bf16.msra.mxu3 %v4912_v4  ;;  %1069 = vmatpush.bf16.msra.mxu0 %v4912_v4  ;;  %v424_v62 = vld [vmem:[%s5494_s17 + $0x460] sm:$0xff]  ;;  %v431_v63 = vld [vmem:[%s5494_s17 + $0x498] sm:$0xff]  ;;  %v4943_v8 = vld [vmem:[%s8558_s1 + $0x110] sm:$0xff] }
  0x26   : > { %v480_v0 = vld [vmem:[%s5494_s17 + $0x620] sm:$0xff]  ;;  %v487_v1 = vld [vmem:[%s5494_s17 + $0x658] sm:$0xff]  ;;  %v4942_v11 = vld [vmem:[%s8558_s1 + $0x108] sm:$0xff] }
  0x27   : > { %v312_v2 = vld [vmem:[%s5494_s17 + $0xe0] sm:$0xff]  ;;  %v319_v3 = vld [vmem:[%s5494_s17 + $0x118] sm:$0xff]  ;;  %v382_v14 = vld [vmem:[%s5494_s17 + $0x310] sm:$0xff] }
  0x28   : > { %4986 = vmatpush.bf16.msra.mxu1 %v4911_v5  ;;  %4987 = vmatpush.bf16.msra.mxu2 %v4911_v5  ;;  %v4933_v4 = vld [vmem:[%s8558_s1 + $0xc0] sm:$0xff]  ;;  %v522_v9 = vpack.c.bf16 %v319_v3, %v312_v2  ;;  %v438_v16 = vld [vmem:[%s5494_s17 + $0x4d0] sm:$0xff]  ;;  %v445_v17 = vld [vmem:[%s5494_s17 + $0x508] sm:$0xff] }
  0x29   : > { %4988 = vmatpush.bf16.msra.mxu3 %v4911_v5  ;;  %1070 = vmatpush.bf16.msra.mxu0 %v4911_v5  ;;  %v550_v5 = vpack.c.bf16 %v375_v61, %v368_v59  ;;  %v4957_v10 = vld [vmem:[%s8558_s1 + $0x180] sm:$0xff]  ;;  %v295_v33 = vld [vmem:[%s5494_s17 + $0x58] sm:$0xff]  ;;  %v4955_v38 = vld [vmem:[%s8558_s1 + $0x170] sm:$0xff] }
  0x2a   : > { %v4941_v13 = vld [vmem:[%s8558_s1 + $0x100] sm:$0xff]  ;;  %v299_v39 = vld [vmem:[%s5494_s17 + $0x78] sm:$0xff] }
  0x2b   : > { %v300_v41 = vld [vmem:[%s5494_s17 + $0x80] sm:$0xff]  ;;  %v335_v3 = vld [vmem:[%s5494_s17 + $0x198] sm:$0xff] }
  0x2c   : > { %4989 = vmatpush.bf16.msra.mxu1 %v4910_v6  ;;  %4990 = vmatpush.bf16.msra.mxu2 %v4910_v6  ;;  %v328_v2 = vld [vmem:[%s5494_s17 + $0x160] sm:$0xff] }
  0x2d   : > { %4991 = vmatpush.bf16.msra.mxu3 %v4910_v6  ;;  %1071 = vmatpush.bf16.msra.mxu0 %v4910_v6  ;;  %v578_v6 = vpack.c.bf16 %v431_v63, %v424_v62  ;;  %v4954_v63 = vld [vmem:[%s8558_s1 + $0x168] sm:$0xff] }
  0x30   : > { %4992 = vmatpush.bf16.msra.mxu1 %v4909_v7  ;;  %4993 = vmatpush.bf16.msra.mxu2 %v4909_v7 }
  0x31   : > { %4994 = vmatpush.bf16.msra.mxu3 %v4909_v7  ;;  %1072 = vmatpush.bf16.msra.mxu0 %v4909_v7  ;;  %v606_v7 = vpack.c.bf16 %v487_v1, %v480_v0  ;;  %v327_v0 = vld [vmem:[%s5494_s17 + $0x158] sm:$0xff]  ;;  %v334_v1 = vld [vmem:[%s5494_s17 + $0x190] sm:$0xff] }
  0x33   : > { %1093 = vmatmul.bf16.vlgmr.msra.gmra.mxu1 %v536_v18  ;;  %1113 = vmatmul.bf16.vlgmr.msra.gmra.mxu2 %v564_v19  ;;  %v494_v18 = vld [vmem:[%s5494_s17 + $0x690] sm:$0xff]  ;;  %v501_v19 = vld [vmem:[%s5494_s17 + $0x6c8] sm:$0xff] }
  0x34   : > { %1243 = vmatpush.bf16.msrb.mxu2 %v4932_v12  ;;  %1154 = vmatpush.bf16.msrb.mxu1 %v4924_v15  ;;  %v4956_v12 = vld [vmem:[%s8558_s1 + $0x178] sm:$0xff]  ;;  %v389_v15 = vld [vmem:[%s5494_s17 + $0x348] sm:$0xff] }
  0x35   : > { %1133 = vmatmul.bf16.vlgmr.msra.gmra.mxu3 %v592_v20  ;;  %1073 = vmatmul.bf16.vlgmr.msra.gmra.mxu0 %v508_v22  ;;  %v326_v20 = vld [vmem:[%s5494_s17 + $0x150] sm:$0xff]  ;;  %v557_v22 = vpack.c.bf16 %v389_v15, %v382_v14  ;;  %v349_v15 = vld [vmem:[%s5494_s17 + $0x208] sm:$0xff] }
  0x36   : > { %1332 = vmatpush.bf16.msrb.mxu3 %v4940_v24  ;;  %1421 = vmatpush.bf16.msrb.mxu0 %v4948_v28  ;;  %v613_v24 = vpack.c.bf16 %v501_v19, %v494_v18  ;;  %v286_v28 = vld [vmem:[%s5494_s17 + $0x10] sm:$0xff]  ;;  %v344_v19 = vld [vmem:[%s5494_s17 + $0x1e0] sm:$0xff] }
  0x37   : > { %v342_v14 = vld [vmem:[%s5494_s17 + $0x1d0] sm:$0xff] }
  0x38   : > { %1244 = vmatpush.bf16.msrb.mxu2 %v4931_v21  ;;  %1155 = vmatpush.bf16.msrb.mxu1 %v4923_v23  ;;  %v333_v21 = vld [vmem:[%s5494_s17 + $0x188] sm:$0xff]  ;;  %v585_v23 = vpack.c.bf16 %v445_v17, %v438_v16  ;;  %v5678_v16 = vld [vmem:[%s8559_s2] ss:$0 sm:$0xff]  ;;  %v343_v17 = vld [vmem:[%s5494_s17 + $0x1d8] sm:$0xff] }
  0x39   : > { %v350_v18 = vld [vmem:[%s5494_s17 + $0x210] sm:$0xff] }
  0x3a   : > { %1333 = vmatpush.bf16.msrb.mxu3 %v4939_v27  ;;  %1422 = vmatpush.bf16.msrb.mxu0 %v4947_v29  ;;  %v292_v27 = vld [vmem:[%s5494_s17 + $0x40] sm:$0xff]  ;;  %v293_v29 = vld [vmem:[%s5494_s17 + $0x48] sm:$0xff] }
  0x3b   : > { %v510_v35 = vpack.c.bf16 %v293_v29, %v286_v28 }
  0x3c   : > { %1245 = vmatpush.bf16.msrb.mxu2 %v4930_v25  ;;  %1156 = vmatpush.bf16.msrb.mxu1 %v4922_v26  ;;  %v529_v25 = vpack.c.bf16 %v333_v21, %v326_v20  ;;  %v285_v26 = vld [vmem:[%s5494_s17 + $0x8] sm:$0xff]  ;;  %v351_v20 = vld [vmem:[%s5494_s17 + $0x218] sm:$0xff] }
  0x3d   : > { %v509_v34 = vpack.c.bf16 %v292_v27, %v285_v26  ;;  %v540_v26 = vpack.c.bf16 %v351_v20, %v344_v19 }
  0x3e   : > { %1334 = vmatpush.bf16.msrb.mxu3 %v4938_v32  ;;  %1423 = vmatpush.bf16.msrb.mxu0 %v4946_v51  ;;  %v288_v32 = vld [vmem:[%s5494_s17 + $0x20] sm:$0xff]  ;;  %v313_v51 = vld [vmem:[%s5494_s17 + $0xe8] sm:$0xff] }
  0x3f   : > { %v512_v37 = vpack.c.bf16 %v295_v33, %v288_v32 }
  0x40   : > { %1246 = vmatpush.bf16.msrb.mxu2 %v4929_v30  ;;  %1157 = vmatpush.bf16.msrb.mxu1 %v4921_v31  ;;  %v287_v30 = vld [vmem:[%s5494_s17 + $0x18] sm:$0xff]  ;;  %v294_v31 = vld [vmem:[%s5494_s17 + $0x50] sm:$0xff] }
  0x41   : > { %v511_v36 = vpack.c.bf16 %v294_v31, %v287_v30  ;;  %v4953_v31 = vld [vmem:[%s8558_s1 + $0x160] sm:$0xff] }
  0x42   : > { %1335 = vmatpush.bf16.msrb.mxu3 %v4937_v43  ;;  %1424 = vmatpush.bf16.msrb.mxu0 %v4945_v55  ;;  %v301_v43 = vld [vmem:[%s5494_s17 + $0x88] sm:$0xff]  ;;  %v315_v55 = vld [vmem:[%s5494_s17 + $0xf8] sm:$0xff] }
  0x43   : > { %1098 = vmatmul.bf16.gmra.mxu1 %v543_v44  ;;  %1118 = vmatmul.bf16.gmra.mxu2 %v571_v45  ;;  %v308_v44 = vld [vmem:[%s5494_s17 + $0xc0] sm:$0xff]  ;;  %v302_v45 = vld [vmem:[%s5494_s17 + $0x90] sm:$0xff] }
  0x44   : > { %1247 = vmatpush.bf16.msrb.mxu2 %v4928_v40  ;;  %1158 = vmatpush.bf16.msrb.mxu1 %v4920_v42  ;;  %v306_v40 = vld [vmem:[%s5494_s17 + $0xb0] sm:$0xff]  ;;  %v307_v42 = vld [vmem:[%s5494_s17 + $0xb8] sm:$0xff] }
  0x45   : > { %1138 = vmatmul.bf16.gmra.mxu3 %v599_v46  ;;  %1078 = vmatmul.bf16.gmra.mxu0 %v515_v47  ;;  %v309_v46 = vld [vmem:[%s5494_s17 + $0xc8] sm:$0xff]  ;;  %v516_v47 = vpack.c.bf16 %v306_v40, %v299_v39  ;;  %v363_v39 = vld [vmem:[%s5494_s17 + $0x278] sm:$0xff] }
  0x46   : > { %1336 = vmatpush.bf16.msrb.mxu3 %v4936_v50  ;;  %1425 = vmatpush.bf16.msrb.mxu0 %v4944_v60  ;;  %v519_v50 = vpack.c.bf16 %v309_v46, %v302_v45  ;;  %v357_v40 = vld [vmem:[%s5494_s17 + $0x248] sm:$0xff] }
  0x48   : > { %1248 = vmatpush.bf16.msrb.mxu2 %v4927_v48  ;;  %1159 = vmatpush.bf16.msrb.mxu1 %v4919_v49  ;;  %v517_v48 = vpack.c.bf16 %v307_v42, %v300_v41  ;;  %v518_v49 = vpack.c.bf16 %v308_v44, %v301_v43  ;;  %v364_v41 = vld [vmem:[%s5494_s17 + $0x280] sm:$0xff]  ;;  %v358_v43 = vld [vmem:[%s5494_s17 + $0x250] sm:$0xff]  ;;  %v365_v44 = vld [vmem:[%s5494_s17 + $0x288] sm:$0xff] }
  0x4a   : > { %1337 = vmatpush.bf16.msrb.mxu3 %v4935_v54  ;;  %1426 = vmatpush.bf16.msrb.mxu0 %v4943_v8  ;;  %v321_v54 = vld [vmem:[%s5494_s17 + $0x128] sm:$0xff]  ;;  %v530_v8 = vpack.c.bf16 %v334_v1, %v327_v0  ;;  %v370_v0 = vld [vmem:[%s5494_s17 + $0x2b0] sm:$0xff] }
  0x4b   : > { %v377_v1 = vld [vmem:[%s5494_s17 + $0x2e8] sm:$0xff] }
  0x4c   : > { %1249 = vmatpush.bf16.msrb.mxu2 %v4926_v52  ;;  %1160 = vmatpush.bf16.msrb.mxu1 %v4918_v53  ;;  %v320_v52 = vld [vmem:[%s5494_s17 + $0x120] sm:$0xff]  ;;  %v314_v53 = vld [vmem:[%s5494_s17 + $0xf0] sm:$0xff] }
  0x4d   : > { %v523_v59 = vpack.c.bf16 %v320_v52, %v313_v51  ;;  %v524_v60 = vpack.c.bf16 %v321_v54, %v314_v53  ;;  %v546_v51 = vpack.c.bf16 %v364_v41, %v357_v40  ;;  %v547_v53 = vpack.c.bf16 %v365_v44, %v358_v43  ;;  %v393_v40 = vld [vmem:[%s5494_s17 + $0x368] sm:$0xff] }
  0x4e   : > { %1338 = vmatpush.bf16.msrb.mxu3 %v4934_v57  ;;  %1427 = vmatpush.bf16.msrb.mxu0 %v4942_v11  ;;  %v316_v57 = vld [vmem:[%s5494_s17 + $0x100] sm:$0xff] }
  0x50   : > { %1250 = vmatpush.bf16.msrb.mxu2 %v4925_v56  ;;  %1161 = vmatpush.bf16.msrb.mxu1 %v4917_v58  ;;  %v322_v56 = vld [vmem:[%s5494_s17 + $0x130] sm:$0xff]  ;;  %v323_v58 = vld [vmem:[%s5494_s17 + $0x138] sm:$0xff] }
  0x51   : > { %v525_v61 = vpack.c.bf16 %v322_v56, %v315_v55  ;;  %v526_v62 = vpack.c.bf16 %v323_v58, %v316_v57 }
  0x52   : > { %1339 = vmatpush.bf16.msrb.mxu3 %v4933_v4  ;;  %1428 = vmatpush.bf16.msrb.mxu0 %v4941_v13  ;;  %v329_v4 = vld [vmem:[%s5494_s17 + $0x168] sm:$0xff]  ;;  %v348_v13 = vld [vmem:[%s5494_s17 + $0x200] sm:$0xff] }
  0x53   : > { %1103 = vmatmul.bf16.gmra.mxu1 %v550_v5  ;;  %1123 = vmatmul.bf16.gmra.mxu2 %v578_v6  ;;  %v336_v5 = vld [vmem:[%s5494_s17 + $0x1a0] sm:$0xff]  ;;  %v330_v6 = vld [vmem:[%s5494_s17 + $0x170] sm:$0xff] }
  0x54   : > { %1606 = vmatpush.bf16.msra.mxu2 %v4957_v10  ;;  %1510 = vmatpush.bf16.msra.mxu1 %v4956_v12  ;;  %v532_v10 = vpack.c.bf16 %v336_v5, %v329_v4  ;;  %v341_v12 = vld [vmem:[%s5494_s17 + $0x1c8] sm:$0xff]  ;;  %v372_v5 = vld [vmem:[%s5494_s17 + $0x2c0] sm:$0xff] }
  0x55   : > { %1143 = vmatmul.bf16.gmra.mxu3 %v606_v7  ;;  %1083 = vmatmul.bf16.gmra.mxu0 %v522_v9  ;;  %v337_v7 = vld [vmem:[%s5494_s17 + $0x1a8] sm:$0xff]  ;;  %v531_v9 = vpack.c.bf16 %v335_v3, %v328_v2  ;;  %v537_v21 = vpack.c.bf16 %v348_v13, %v341_v12  ;;  %v371_v2 = vld [vmem:[%s5494_s17 + $0x2b8] sm:$0xff]  ;;  %v378_v3 = vld [vmem:[%s5494_s17 + $0x2f0] sm:$0xff] }
  0x56   : > { %v533_v11 = vpack.c.bf16 %v337_v7, %v330_v6  ;;  %v379_v6 = vld [vmem:[%s5494_s17 + $0x2f8] sm:$0xff]  ;;  %v553_v13 = vpack.c.bf16 %v378_v3, %v371_v2  ;;  %v397_v3 = vld [vmem:[%s5494_s17 + $0x388] sm:$0xff] }
  0x58   : > { %1511 = vmatpush.bf16.msra.mxu1 %v4955_v38  ;;  %v356_v38 = vld [vmem:[%s5494_s17 + $0x240] sm:$0xff] }
  0x5c   : > { %1512 = vmatpush.bf16.msra.mxu1 %v4954_v63  ;;  %v376_v63 = vld [vmem:[%s5494_s17 + $0x2e0] sm:$0xff] }
  0x60   : > { %1513 = vmatpush.bf16.msra.mxu1 %v4953_v31  ;;  %v384_v31 = vld [vmem:[%s5494_s17 + $0x320] sm:$0xff] }
  0x63   : > { %1108 = vmatmul.bf16.gmra.mxu1 %v557_v22  ;;  %1128 = vmatmul.bf16.gmra.mxu2 %v585_v23  ;;  %v538_v22 = vpack.c.bf16 %v349_v15, %v342_v14  ;;  %v554_v15 = vpack.c.bf16 %v379_v6, %v372_v5  ;;  %v398_v5 = vld [vmem:[%s5494_s17 + $0x390] sm:$0xff]  ;;  %v405_v6 = vld [vmem:[%s5494_s17 + $0x3c8] sm:$0xff] }
  0x65   : > { %1148 = vmatmul.bf16.gmra.mxu3 %v613_v24  ;;  %1088 = vmatmul.bf16.gmra.mxu0 %v529_v25  ;;  %v539_v24 = vpack.c.bf16 %v350_v18, %v343_v17 }
  0x73   : > { %1162 = vmatmul.bf16.vlgmr.msrb.gmra.mxu1 %v509_v34  ;;  %1251 = vmatmul.bf16.vlgmr.msrb.gmra.mxu2 %v510_v35 }
  0x75   : > { %1340 = vmatmul.bf16.vlgmr.msrb.gmra.mxu3 %v511_v36  ;;  %1429 = vmatmul.bf16.vlgmr.msrb.gmra.mxu0 %v512_v37  ;;  %v355_v36 = vld [vmem:[%s5494_s17 + $0x238] sm:$0xff]  ;;  %v362_v37 = vld [vmem:[%s5494_s17 + $0x270] sm:$0xff] }
  0x83   : > { %1167 = vmatmul.bf16.gmra.mxu1 %v516_v47  ;;  %1256 = vmatmul.bf16.gmra.mxu2 %v517_v48  ;;  %v544_v47 = vpack.c.bf16 %v362_v37, %v355_v36  ;;  %v545_v48 = vpack.c.bf16 %v363_v39, %v356_v38  ;;  %v385_v36 = vld [vmem:[%s5494_s17 + $0x328] sm:$0xff]  ;;  %v392_v37 = vld [vmem:[%s5494_s17 + $0x360] sm:$0xff]  ;;  %v386_v39 = vld [vmem:[%s5494_s17 + $0x330] sm:$0xff] }
  0x85   : > { %1345 = vmatmul.bf16.gmra.mxu3 %v518_v49  ;;  %1434 = vmatmul.bf16.gmra.mxu0 %v519_v50 }
  0x93   : > { %1172 = vmatmul.bf16.gmra.mxu1 %v523_v59  ;;  %1261 = vmatmul.bf16.gmra.mxu2 %v524_v60 }
  0x95   : > { %1350 = vmatmul.bf16.gmra.mxu3 %v525_v61  ;;  %1439 = vmatmul.bf16.gmra.mxu0 %v526_v62  ;;  %v369_v62 = vld [vmem:[%s5494_s17 + $0x2a8] sm:$0xff] }
  0xa3   : > { %1177 = vmatmul.bf16.gmra.mxu1 %v530_v8  ;;  %1266 = vmatmul.bf16.gmra.mxu2 %v531_v9  ;;  %v551_v9 = vpack.c.bf16 %v376_v63, %v369_v62 }
  0xa5   : > { %1355 = vmatmul.bf16.gmra.mxu3 %v532_v10  ;;  %1444 = vmatmul.bf16.gmra.mxu0 %v533_v11  ;;  %v552_v10 = vpack.c.bf16 %v377_v1, %v370_v0 }
  0xb0   : > { %v1094_v23 = vpop.f32.mrf.mxu1 }
  0xb1   : > { %v5685_v25 = vadd.f32 %v5678_v16, %v1094_v23 }
  0xb2   : > { %v5687_v27 = vpop.f32.mrf.mxu0 }
  0xb3   : > { %1182 = vmatmul.bf16.gmra.mxu1 %v537_v21  ;;  %1271 = vmatmul.bf16.gmra.mxu2 %v538_v22  ;;  %v4952_v21 = vld [vmem:[%s8558_s1 + $0x158] sm:$0xff] }
  0xb4   : > { %1514 = vmatpush.bf16.msra.mxu1 %v4952_v21 }
  0xb5   : > { %1360 = vmatmul.bf16.gmra.mxu3 %v539_v24  ;;  %1449 = vmatmul.bf16.gmra.mxu0 %v540_v26 }
  0xb6   : > { %v1114_v28 = vpop.f32.mrf.mxu2 }
  0xb7   : > { %v5690_v29 = vadd.f32 %v5678_v16, %v1114_v28  ;;  %v383_v28 = vld [vmem:[%s5494_s17 + $0x318] sm:$0xff] }
  0xb8   : > { %v1134_v30 = vpop.f32.mrf.mxu3  ;;  %v1096_v32 = vpop.f32.mrf.mxu1 }
  0xb9   : > { %v5696_v33 = vadd.f32 %v5678_v16, %v1134_v30  ;;  %v5699_v34 = vadd.f32 %v5678_v16, %v1096_v32  ;;  %v390_v30 = vld [vmem:[%s5494_s17 + $0x350] sm:$0xff]  ;;  %v391_v32 = vld [vmem:[%s5494_s17 + $0x358] sm:$0xff] }
  0xba   : > { %v5701_v35 = vpop.f32.mrf.mxu0  ;;  %v558_v43 = vpack.c.bf16 %v390_v30, %v383_v28  ;;  %v559_v44 = vpack.c.bf16 %v391_v32, %v384_v31 }
  0xbe   : > { %v1116_v42 = vpop.f32.mrf.mxu2 }
  0xbf   : > { %v5712_v45 = vadd.f32 %v5678_v16, %v1116_v42 }
  0xc0   : > { %v1136_v46 = vpop.f32.mrf.mxu3  ;;  %v1099_v49 = vpop.f32.mrf.mxu1 }
  0xc1   : > { %v5715_v50 = vadd.f32 %v5678_v16, %v1136_v46  ;;  %v5718_v52 = vadd.f32 %v5678_v16, %v1099_v49 }
  0xc2   : > { %v5720_v54 = vpop.f32.mrf.mxu0 }
  0xc3   : > { %1187 = vmatmul.bf16.gmra.mxu1 %v544_v47  ;;  %1276 = vmatmul.bf16.gmra.mxu2 %v545_v48  ;;  %v560_v48 = vpack.c.bf16 %v392_v37, %v385_v36 }
  0xc5   : > { %1365 = vmatmul.bf16.gmra.mxu3 %v546_v51  ;;  %1454 = vmatmul.bf16.gmra.mxu0 %v547_v53  ;;  %v561_v51 = vpack.c.bf16 %v393_v40, %v386_v39 }
  0xc6   : > { %v1119_v55 = vpop.f32.mrf.mxu2 }
  0xc7   : > { %v5723_v56 = vadd.f32 %v5678_v16, %v1119_v55 }
  0xc8   : > { %v1139_v57 = vpop.f32.mrf.mxu3  ;;  %v1101_v58 = vpop.f32.mrf.mxu1 }
  0xc9   : > { %v5726_v59 = vadd.f32 %v5678_v16, %v1139_v57  ;;  %v5729_v60 = vadd.f32 %v5678_v16, %v1101_v58 }
  0xca   : > { %v5731_v61 = vpop.f32.mrf.mxu0 }
  0xce   : > { %v1121_v4 = vpop.f32.mrf.mxu2 }
  0xcf   : > { %v5742_v7 = vadd.f32 %v5678_v16, %v1121_v4  ;;  %v404_v4 = vld [vmem:[%s5494_s17 + $0x3c0] sm:$0xff] }
  0xd0   : > { %v1141_v8 = vpop.f32.mrf.mxu3  ;;  %v1104_v11 = vpop.f32.mrf.mxu1  ;;  %v565_v21 = vpack.c.bf16 %v404_v4, %v397_v3  ;;  %v413_v3 = vld [vmem:[%s5494_s17 + $0x408] sm:$0xff]  ;;  %v420_v4 = vld [vmem:[%s5494_s17 + $0x440] sm:$0xff] }
  0xd1   : > { %v5745_v12 = vadd.f32 %v5678_v16, %v1141_v8  ;;  %v5748_v14 = vadd.f32 %v5678_v16, %v1104_v11  ;;  %v1075_v8 = vadd.f32 %v5678_v16, %v5687_v27  ;;  %v1077_v27 = vadd.f32 %v5678_v16, %v5701_v35  ;;  %v411_v35 = vld [vmem:[%s5494_s17 + $0x3f8] sm:$0xff] }
  0xd2   : > { %v5750_v17 = vpop.f32.mrf.mxu0 }
  0xd3   : > { %1192 = vmatmul.bf16.gmra.mxu1 %v551_v9  ;;  %1281 = vmatmul.bf16.gmra.mxu2 %v552_v10  ;;  %v399_v9 = vld [vmem:[%s5494_s17 + $0x398] sm:$0xff]  ;;  %v406_v10 = vld [vmem:[%s5494_s17 + $0x3d0] sm:$0xff] }
  0xd4   : > { %v567_v31 = vpack.c.bf16 %v406_v10, %v399_v9 }
  0xd5   : > { %1370 = vmatmul.bf16.gmra.mxu3 %v553_v13  ;;  %1459 = vmatmul.bf16.gmra.mxu0 %v554_v15  ;;  %v400_v13 = vld [vmem:[%s5494_s17 + $0x3a0] sm:$0xff]  ;;  %v407_v15 = vld [vmem:[%s5494_s17 + $0x3d8] sm:$0xff] }
  0xd6   : > { %v1124_v18 = vpop.f32.mrf.mxu2  ;;  %v568_v36 = vpack.c.bf16 %v407_v15, %v400_v13 }
  0xd7   : > { %v5753_v19 = vadd.f32 %v5678_v16, %v1124_v18 }
  0xd8   : > { %v1144_v20 = vpop.f32.mrf.mxu3  ;;  %v1106_v22 = vpop.f32.mrf.mxu1 }
  0xd9   : > { %v5759_v23 = vadd.f32 %v5678_v16, %v1144_v20  ;;  %v5762_v24 = vadd.f32 %v5678_v16, %v1106_v22  ;;  %v566_v22 = vpack.c.bf16 %v405_v6, %v398_v5  ;;  %v414_v6 = vld [vmem:[%s5494_s17 + $0x410] sm:$0xff] }
  0xda   : > { %v5764_v26 = vpop.f32.mrf.mxu0 }
  0xde   : > { %v1126_v38 = vpop.f32.mrf.mxu2 }
  0xdf   : > { %v5775_v41 = vadd.f32 %v5678_v16, %v1126_v38 }
  0xe0   : > { %v1146_v42 = vpop.f32.mrf.mxu3  ;;  %v1109_v46 = vpop.f32.mrf.mxu1 }
  0xe1   : > { %v5778_v47 = vadd.f32 %v5678_v16, %v1146_v42  ;;  %v5781_v49 = vadd.f32 %v5678_v16, %v1109_v46  ;;  %v4951_v42 = vld [vmem:[%s8558_s1 + $0x150] sm:$0xff] }
  0xe2   : > { %v5783_v53 = vpop.f32.mrf.mxu0  ;;  %1515 = vmatpush.bf16.msra.mxu1 %v4951_v42 }
  0xe3   : > { %1197 = vmatmul.bf16.gmra.mxu1 %v558_v43  ;;  %1286 = vmatmul.bf16.gmra.mxu2 %v559_v44 }
  0xe5   : > { %1375 = vmatmul.bf16.gmra.mxu3 %v560_v48  ;;  %1464 = vmatmul.bf16.gmra.mxu0 %v561_v51 }
  0xe6   : > { %v1129_v55 = vpop.f32.mrf.mxu2 }
  0xe7   : > { %v5786_v57 = vadd.f32 %v5678_v16, %v1129_v55  ;;  %v418_v55 = vld [vmem:[%s5494_s17 + $0x430] sm:$0xff] }
  0xe8   : > { %v1149_v58 = vpop.f32.mrf.mxu3  ;;  %v1111_v62 = vpop.f32.mrf.mxu1 }
  0xe9   : > { %v5789_v63 = vadd.f32 %v5678_v16, %v1149_v58  ;;  %v5792_v0 = vadd.f32 %v5678_v16, %v1111_v62  ;;  %v412_v58 = vld [vmem:[%s5494_s17 + $0x400] sm:$0xff]  ;;  %v419_v62 = vld [vmem:[%s5494_s17 + $0x438] sm:$0xff] }
  0xea   : > { %v1091_v1 = vpop.f32.mrf.mxu0  ;;  %v573_v13 = vpack.c.bf16 %v419_v62, %v412_v58  ;;  %v434_v58 = vld [vmem:[%s5494_s17 + $0x4b0] sm:$0xff] }
  0xeb   : > { %v5795_v2 = vadd.f32 %v5678_v16, %v1091_v1  ;;  %v1080_v1 = vadd.f32 %v5678_v16, %v5720_v54  ;;  %v1082_v54 = vadd.f32 %v5678_v16, %v5731_v61  ;;  %v1085_v61 = vadd.f32 %v5678_v16, %v5750_v17 }
  0xec   : > { %v1087_v17 = vadd.f32 %v5678_v16, %v5764_v26 }
  0xee   : > { %v1131_v11 = vpop.f32.mrf.mxu2 }
  0xef   : > { %v5808_v18 = vadd.f32 %v5678_v16, %v1131_v11  ;;  %v572_v11 = vpack.c.bf16 %v418_v55, %v411_v35  ;;  %v433_v35 = vld [vmem:[%s5494_s17 + $0x4a8] sm:$0xff]  ;;  %v427_v55 = vld [vmem:[%s5494_s17 + $0x478] sm:$0xff] }
  0xf0   : > { %v1151_v20 = vpop.f32.mrf.mxu3  ;;  %v1163_v30 = vpop.f32.mrf.mxu1 }
  0xf1   : > { %v5811_v28 = vadd.f32 %v5678_v16, %v1151_v20  ;;  %v1164_v32 = vadd.f32 %v1163_v30, %v1075_v8  ;;  %v421_v8 = vld [vmem:[%s5494_s17 + $0x448] sm:$0xff]  ;;  %v574_v20 = vpack.c.bf16 %v420_v4, %v413_v3  ;;  %v435_v3 = vld [vmem:[%s5494_s17 + $0x4b8] sm:$0xff] }
  0xf2   : > { %v1430_v37 = vpop.f32.mrf.mxu0  ;;  %v575_v30 = vpack.c.bf16 %v421_v8, %v414_v6 }
  0xf3   : > { %1202 = vmatmul.bf16.gmra.mxu1 %v565_v21  ;;  %1291 = vmatmul.bf16.gmra.mxu2 %v566_v22 }
  0xf5   : > { %1380 = vmatmul.bf16.gmra.mxu3 %v567_v31  ;;  %1469 = vmatmul.bf16.gmra.mxu0 %v568_v36 }
  0xf6   : > { %v1252_v38 = vpop.f32.mrf.mxu2 }
  0xf7   : > { %v1253_v39 = vadd.f32 %v1252_v38, %v1164_v32 }
  0xf8   : > { %v1341_v40 = vpop.f32.mrf.mxu3  ;;  %v1165_v43 = vpop.f32.mrf.mxu1 }
  0xf9   : > { %v1166_v44 = vadd.f32 %v1165_v43, %v1077_v27  ;;  %v1342_v46 = vadd.f32 %v1341_v40, %v1253_v39 }
  0xfa   : > { %v1432_v48 = vpop.f32.mrf.mxu0 }
  0xfb   : > { %v5818_v51 = vadd.f32 %v1430_v37, %v1342_v46  ;;  %v432_v46 = vld [vmem:[%s5494_s17 + $0x4a0] sm:$0xff] }
  0xfe   : > { %v1254_v5 = vpop.f32.mrf.mxu2 }
  0xff   : > { %v1255_v9 = vadd.f32 %v1254_v5, %v1166_v44  ;;  %v425_v44 = vld [vmem:[%s5494_s17 + $0x468] sm:$0xff] }
 0x100   : > { %v1343_v10 = vpop.f32.mrf.mxu3  ;;  %v1168_v15 = vpop.f32.mrf.mxu1  ;;  %v579_v6 = vpack.c.bf16 %v432_v46, %v425_v44  ;;  %v447_v44 = vld [vmem:[%s5494_s17 + $0x518] sm:$0xff]  ;;  %v1090_v46 = vadd.f32 %v5678_v16, %v5783_v53 }
 0x101   : > { %v1169_v21 = vadd.f32 %v1168_v15, %v1080_v1  ;;  %v1344_v22 = vadd.f32 %v1343_v10, %v1255_v9  ;;  %v428_v1 = vld [vmem:[%s5494_s17 + $0x480] sm:$0xff]  ;;  %v581_v10 = vpack.c.bf16 %v434_v58, %v427_v55  ;;  %v442_v55 = vld [vmem:[%s5494_s17 + $0x4f0] sm:$0xff]  ;;  %v449_v58 = vld [vmem:[%s5494_s17 + $0x528] sm:$0xff] }
 0x102   : > { %v1435_v31 = vpop.f32.mrf.mxu0  ;;  %v582_v15 = vpack.c.bf16 %v435_v3, %v428_v1 }
 0x103   : > { %v5830_v32 = vadd.f32 %v1432_v48, %v1344_v22  ;;  %1207 = vmatmul.bf16.gmra.mxu1 %v572_v11  ;;  %1296 = vmatmul.bf16.gmra.mxu2 %v573_v13  ;;  %v426_v48 = vld [vmem:[%s5494_s17 + $0x470] sm:$0xff] }
 0x104   : > { %v580_v8 = vpack.c.bf16 %v433_v35, %v426_v48  ;;  %v441_v48 = vld [vmem:[%s5494_s17 + $0x4e8] sm:$0xff]  ;;  %v448_v35 = vld [vmem:[%s5494_s17 + $0x520] sm:$0xff] }
 0x105   : > { %1385 = vmatmul.bf16.gmra.mxu3 %v574_v20  ;;  %1474 = vmatmul.bf16.gmra.mxu0 %v575_v30 }
 0x106   : > { %v1257_v36 = vpop.f32.mrf.mxu2 }
 0x107   : > { %v1258_v37 = vadd.f32 %v1257_v36, %v1169_v21 }
 0x108   : > { %v1346_v27 = vpop.f32.mrf.mxu3  ;;  %v1170_v38 = vpop.f32.mrf.mxu1 }
 0x109   : > { %v1171_v39 = vadd.f32 %v1170_v38, %v1082_v54  ;;  %v1347_v40 = vadd.f32 %v1346_v27, %v1258_v37  ;;  %v4950_v54 = vld [vmem:[%s8558_s1 + $0x148] sm:$0xff] }
 0x10a   : > { %v1437_v42 = vpop.f32.mrf.mxu0  ;;  %1516 = vmatpush.bf16.msra.mxu1 %v4950_v54  ;;  %v460_v54 = vld [vmem:[%s5494_s17 + $0x580] sm:$0xff] }
 0x10b   : > { %v5834_v43 = vadd.f32 %v1435_v31, %v1347_v40  ;;  %v446_v40 = vld [vmem:[%s5494_s17 + $0x510] sm:$0xff] }
 0x10e   : > { %v1259_v62 = vpop.f32.mrf.mxu2 }
 0x10f   : > { %v1260_v4 = vadd.f32 %v1259_v62, %v1171_v39  ;;  %v439_v39 = vld [vmem:[%s5494_s17 + $0x4d8] sm:$0xff] }
 0x110   : > { %v1348_v5 = vpop.f32.mrf.mxu3  ;;  %v1173_v9 = vpop.f32.mrf.mxu1  ;;  %v586_v3 = vpack.c.bf16 %v446_v40, %v439_v39  ;;  %v462_v39 = vld [vmem:[%s5494_s17 + $0x590] sm:$0xff]  ;;  %v456_v40 = vld [vmem:[%s5494_s17 + $0x560] sm:$0xff] }
 0x111   : > { %v1174_v11 = vadd.f32 %v1173_v9, %v1085_v61  ;;  %v1349_v13 = vadd.f32 %v1348_v5, %v1260_v4 }
 0x112   : > { %v1440_v20 = vpop.f32.mrf.mxu0 }
 0x113   : > { %v5846_v21 = vadd.f32 %v1437_v42, %v1349_v13  ;;  %1212 = vmatmul.bf16.gmra.mxu1 %v579_v6  ;;  %1301 = vmatmul.bf16.gmra.mxu2 %v580_v8  ;;  %v440_v42 = vld [vmem:[%s5494_s17 + $0x4e0] sm:$0xff]  ;;  %v588_v6 = vpack.c.bf16 %v448_v35, %v441_v48 }
 0x114   : > { %v587_v4 = vpack.c.bf16 %v447_v44, %v440_v42  ;;  %v463_v42 = vld [vmem:[%s5494_s17 + $0x598] sm:$0xff] }
 0x115   : > { %1390 = vmatmul.bf16.gmra.mxu3 %v581_v10  ;;  %1479 = vmatmul.bf16.gmra.mxu0 %v582_v15  ;;  %v589_v10 = vpack.c.bf16 %v449_v58, %v442_v55 }
 0x116   : > { %v1262_v22 = vpop.f32.mrf.mxu2 }
 0x117   : > { %v1263_v30 = vadd.f32 %v1262_v22, %v1174_v11 }
 0x118   : > { %v1351_v31 = vpop.f32.mrf.mxu3  ;;  %v1175_v36 = vpop.f32.mrf.mxu1 }
 0x119   : > { %v1176_v37 = vadd.f32 %v1175_v36, %v1087_v17  ;;  %v1352_v27 = vadd.f32 %v1351_v31, %v1263_v30  ;;  %v453_v31 = vld [vmem:[%s5494_s17 + $0x548] sm:$0xff]  ;;  %v454_v36 = vld [vmem:[%s5494_s17 + $0x550] sm:$0xff] }
 0x11a   : > { %v1442_v26 = vpop.f32.mrf.mxu0  ;;  %v593_v48 = vpack.c.bf16 %v460_v54, %v453_v31 }
 0x11b   : > { %v5853_v38 = vadd.f32 %v1440_v20, %v1352_v27  ;;  %v455_v27 = vld [vmem:[%s5494_s17 + $0x558] sm:$0xff] }
 0x11e   : > { %v1264_v61 = vpop.f32.mrf.mxu2 }
 0x11f   : > { %v1265_v62 = vadd.f32 %v1264_v61, %v1176_v37  ;;  %v461_v37 = vld [vmem:[%s5494_s17 + $0x588] sm:$0xff] }
 0x120   : > { %v1353_v1 = vpop.f32.mrf.mxu3  ;;  %v1178_v5 = vpop.f32.mrf.mxu1  ;;  %v594_v35 = vpack.c.bf16 %v461_v37, %v454_v36 }
 0x121   : > { %v1179_v8 = vadd.f32 %v1178_v5, %v1090_v46  ;;  %v1354_v9 = vadd.f32 %v1353_v1, %v1265_v62  ;;  %v596_v1 = vpack.c.bf16 %v463_v42, %v456_v40 }
 0x122   : > { %v1445_v53 = vpop.f32.mrf.mxu0 }
 0x123   : > { %v5865_v11 = vadd.f32 %v1442_v26, %v1354_v9  ;;  %1217 = vmatmul.bf16.gmra.mxu1 %v586_v3  ;;  %1306 = vmatmul.bf16.gmra.mxu2 %v587_v4  ;;  %v467_v9 = vld [vmem:[%s5494_s17 + $0x5b8] sm:$0xff] }
 0x125   : > { %1395 = vmatmul.bf16.gmra.mxu3 %v588_v6  ;;  %1484 = vmatmul.bf16.gmra.mxu0 %v589_v10  ;;  %v474_v10 = vld [vmem:[%s5494_s17 + $0x5f0] sm:$0xff] }
 0x126   : > { %v1267_v16 = vpop.f32.mrf.mxu2  ;;  %v600_v54 = vpack.c.bf16 %v474_v10, %v467_v9 }
 0x127   : > { %v1268_v13 = vadd.f32 %v1267_v16, %v1179_v8  ;;  %v468_v16 = vld [vmem:[%s5494_s17 + $0x5c0] sm:$0xff] }
 0x128   : > { %v1356_v15 = vpop.f32.mrf.mxu3  ;;  %v1180_v20 = vpop.f32.mrf.mxu1 }
 0x129   : > { %v1181_v17 = vadd.f32 %v1180_v20, %v5795_v2  ;;  %v1357_v22 = vadd.f32 %v1356_v15, %v1268_v13  ;;  %v595_v2 = vpack.c.bf16 %v462_v39, %v455_v27  ;;  %v469_v13 = vld [vmem:[%s5494_s17 + $0x5c8] sm:$0xff]  ;;  %v476_v15 = vld [vmem:[%s5494_s17 + $0x600] sm:$0xff] }
 0x12a   : > { %v1447_v55 = vpop.f32.mrf.mxu0 }
 0x12b   : > { %v5868_v30 = vadd.f32 %v1445_v53, %v1357_v22  ;;  %v475_v53 = vld [vmem:[%s5494_s17 + $0x5f8] sm:$0xff]  ;;  %v477_v22 = vld [vmem:[%s5494_s17 + $0x608] sm:$0xff] }
 0x12c   : > { %v601_v36 = vpack.c.bf16 %v475_v53, %v468_v16 }
 0x12e   : > { %v1269_v26 = vpop.f32.mrf.mxu2 }
 0x12f   : > { %v1270_v44 = vadd.f32 %v1269_v26, %v1181_v17  ;;  %v470_v17 = vld [vmem:[%s5494_s17 + $0x5d0] sm:$0xff] }
 0x130   : > { %v1358_v46 = vpop.f32.mrf.mxu3  ;;  %v1183_v61 = vpop.f32.mrf.mxu1  ;;  %v603_v39 = vpack.c.bf16 %v477_v22, %v470_v17  ;;  %v496_v17 = vld [vmem:[%s5494_s17 + $0x6a0] sm:$0xff]  ;;  %v503_v22 = vld [vmem:[%s5494_s17 + $0x6d8] sm:$0xff] }
 0x131   : > { %v1184_v58 = vadd.f32 %v1183_v61, %v5685_v25  ;;  %v1359_v62 = vadd.f32 %v1358_v46, %v1270_v44  ;;  %v4949_v25 = vld [vmem:[%s8558_s1 + $0x140] sm:$0xff]  ;;  %v481_v46 = vld [vmem:[%s5494_s17 + $0x628] sm:$0xff] }
 0x132   : > { %1517 = vmatpush.bf16.msra.mxu1 %v4949_v25  ;;  %v489_v61 = vld [vmem:[%s5494_s17 + $0x668] sm:$0xff] }
 0x133   : > { %v5879_v3 = vadd.f32 %v1447_v55, %v1359_v62  ;;  %1222 = vmatmul.bf16.gmra.mxu1 %v593_v48  ;;  %1311 = vmatmul.bf16.gmra.mxu2 %v594_v35  ;;  %v488_v48 = vld [vmem:[%s5494_s17 + $0x660] sm:$0xff]  ;;  %v482_v35 = vld [vmem:[%s5494_s17 + $0x630] sm:$0xff]  ;;  %v483_v55 = vld [vmem:[%s5494_s17 + $0x638] sm:$0xff] }
 0x134   : > { %v491_v62 = vld [vmem:[%s5494_s17 + $0x678] sm:$0xff]  ;;  %v608_v25 = vpack.c.bf16 %v489_v61, %v482_v35 }
 0x135   : > { %1400 = vmatmul.bf16.gmra.mxu3 %v595_v2  ;;  %1489 = vmatmul.bf16.gmra.mxu0 %v596_v1  ;;  %v490_v2 = vld [vmem:[%s5494_s17 + $0x670] sm:$0xff] }
 0x136   : > { %v1272_v4 = vpop.f32.mrf.mxu2 }
 0x137   : > { %v5881_v5 = vadd.f32 %v1272_v4, %v1184_v58  ;;  %v484_v58 = vld [vmem:[%s5494_s17 + $0x640] sm:$0xff]  ;;  %v607_v4 = vpack.c.bf16 %v488_v48, %v481_v46 }
 0x138   : > { %v1185_v6 = vpop.f32.mrf.mxu1  ;;  %v610_v9 = vpack.c.bf16 %v491_v62, %v484_v58  ;;  %v290_v58 = vld [vmem:[%s5494_s17 + $0x30] sm:$0xff]  ;;  %v297_v62 = vld [vmem:[%s5494_s17 + $0x68] sm:$0xff] }
 0x139   : > { %v1186_v8 = vadd.f32 %v1185_v6, %v5699_v34  ;;  %v602_v34 = vpack.c.bf16 %v476_v15, %v469_v13  ;;  %v495_v15 = vld [vmem:[%s5494_s17 + $0x698] sm:$0xff] }
 0x13e   : > { %v1274_v20 = vpop.f32.mrf.mxu2 }
 0x13f   : > { %v5895_v31 = vadd.f32 %v1274_v20, %v1186_v8  ;;  %v502_v20 = vld [vmem:[%s5494_s17 + $0x6d0] sm:$0xff] }
 0x140   : > { %v1188_v37 = vpop.f32.mrf.mxu1 }
 0x141   : > { %v1189_v27 = vadd.f32 %v1188_v37, %v5718_v52  ;;  %v498_v37 = vld [vmem:[%s5494_s17 + $0x6b0] sm:$0xff] }
 0x143   : > { %1227 = vmatmul.bf16.gmra.mxu1 %v600_v54  ;;  %1316 = vmatmul.bf16.gmra.mxu2 %v601_v36  ;;  %v497_v54 = vld [vmem:[%s5494_s17 + $0x6a8] sm:$0xff]  ;;  %v504_v36 = vld [vmem:[%s5494_s17 + $0x6e0] sm:$0xff] }
 0x145   : > { %1405 = vmatmul.bf16.gmra.mxu3 %v602_v34  ;;  %1494 = vmatmul.bf16.gmra.mxu0 %v603_v39  ;;  %v505_v34 = vld [vmem:[%s5494_s17 + $0x6e8] sm:$0xff]  ;;  %v614_v39 = vpack.c.bf16 %v502_v20, %v495_v15  ;;  %v310_v15 = vld [vmem:[%s5494_s17 + $0xd0] sm:$0xff]  ;;  %v304_v20 = vld [vmem:[%s5494_s17 + $0xa0] sm:$0xff] }
 0x146   : > { %v1277_v26 = vpop.f32.mrf.mxu2  ;;  %v617_v46 = vpack.c.bf16 %v505_v34, %v498_v37 }
 0x147   : > { %v5898_v40 = vadd.f32 %v1277_v26, %v1189_v27  ;;  %v615_v26 = vpack.c.bf16 %v503_v22, %v496_v17  ;;  %v311_v17 = vld [vmem:[%s5494_s17 + $0xd8] sm:$0xff] }
 0x148   : > { %v1190_v42 = vpop.f32.mrf.mxu1 }
 0x149   : > { %v1191_v44 = vadd.f32 %v1190_v42, %v5729_v60  ;;  %v609_v60 = vpack.c.bf16 %v490_v2, %v483_v55  ;;  %v289_v2 = vld [vmem:[%s5494_s17 + $0x28] sm:$0xff] }
 0x14e   : > { %v1279_v52 = vpop.f32.mrf.mxu2 }
 0x14f   : > { %v5909_v1 = vadd.f32 %v1279_v52, %v1191_v44  ;;  %v616_v44 = vpack.c.bf16 %v504_v36, %v497_v54  ;;  %v296_v52 = vld [vmem:[%s5494_s17 + $0x60] sm:$0xff]  ;;  %v521_v36 = vpack.c.bf16 %v311_v17, %v304_v20 }
 0x150   : > { %v1193_v6 = vpop.f32.mrf.mxu1 }
 0x151   : > { %v1194_v8 = vadd.f32 %v1193_v6, %v5748_v14  ;;  %v514_v6 = vpack.c.bf16 %v297_v62, %v290_v58 }
 0x153   : > { %1232 = vmatmul.bf16.gmra.mxu1 %v607_v4  ;;  %1321 = vmatmul.bf16.gmra.mxu2 %v608_v25  ;;  %v513_v25 = vpack.c.bf16 %v296_v52, %v289_v2 }
 0x155   : > { %1410 = vmatmul.bf16.gmra.mxu3 %v609_v60  ;;  %1499 = vmatmul.bf16.gmra.mxu0 %v610_v9 }
 0x156   : > { %v1282_v10 = vpop.f32.mrf.mxu2 }
 0x157   : > { %v5912_v16 = vadd.f32 %v1282_v10, %v1194_v8 }
 0x158   : > { %v1195_v53 = vpop.f32.mrf.mxu1 }
 0x159   : > { %v1196_v13 = vadd.f32 %v1195_v53, %v5762_v24 }
 0x15e   : > { %v1284_v14 = vpop.f32.mrf.mxu2 }
 0x15f   : > { %v5923_v27 = vadd.f32 %v1284_v14, %v1196_v13  ;;  %v303_v13 = vld [vmem:[%s5494_s17 + $0x98] sm:$0xff] }
 0x160   : > { %v1198_v42 = vpop.f32.mrf.mxu1 }
 0x161   : > { %v1199_v24 = vadd.f32 %v1198_v42, %v5781_v49  ;;  %v317_v42 = vld [vmem:[%s5494_s17 + $0x108] sm:$0xff] }
 0x163   : > { %1237 = vmatmul.bf16.gmra.mxu1 %v614_v39  ;;  %1326 = vmatmul.bf16.gmra.mxu2 %v615_v26 }
 0x165   : > { %1415 = vmatmul.bf16.gmra.mxu3 %v616_v44  ;;  %1504 = vmatmul.bf16.gmra.mxu0 %v617_v46  ;;  %v324_v44 = vld [vmem:[%s5494_s17 + $0x140] sm:$0xff]  ;;  %v325_v46 = vld [vmem:[%s5494_s17 + $0x148] sm:$0xff] }
 0x166   : > { %v1287_v48 = vpop.f32.mrf.mxu2 }
 0x167   : > { %v5926_v35 = vadd.f32 %v1287_v48, %v1199_v24  ;;  %v318_v24 = vld [vmem:[%s5494_s17 + $0x110] sm:$0xff] }
 0x168   : > { %v1200_v61 = vpop.f32.mrf.mxu1 }
 0x169   : > { %v1201_v55 = vadd.f32 %v1200_v61, %v5792_v0 }
 0x16e   : > { %v1289_v4 = vpop.f32.mrf.mxu2 }
 0x16f   : > { %v5933_v49 = vadd.f32 %v1289_v4, %v1201_v55  ;;  %v528_v55 = vpack.c.bf16 %v325_v46, %v318_v24 }
 0x170   : > { %v1203_v60 = vpop.f32.mrf.mxu1 }
 0x171   : > { %v1204_v8 = vadd.f32 %v1203_v60, %v5690_v29  ;;  %v520_v29 = vpack.c.bf16 %v310_v15, %v303_v13  ;;  %v332_v60 = vld [vmem:[%s5494_s17 + $0x180] sm:$0xff] }
 0x173   : > { %1518 = vmatmul.bf16.vlgmr.msra.gmra.mxu1 %v513_v25  ;;  %4824 = vmatmul.msk.bf16.vlgmr.msra.gmra.mxu2 %vm1016_vm0, %v514_v6  ;;  %v331_v25 = vld [vmem:[%s5494_s17 + $0x178] sm:$0xff]  ;;  %v338_v6 = vld [vmem:[%s5494_s17 + $0x1b0] sm:$0xff] }
 0x176   : > { %v1292_v0 = vpop.f32.mrf.mxu2 }
 0x177   : > { %v5937_v9 = vadd.f32 %v1292_v0, %v1204_v8  ;;  %v339_v8 = vld [vmem:[%s5494_s17 + $0x1b8] sm:$0xff] }
 0x178   : > { %v1205_v10 = vpop.f32.mrf.mxu1 }
 0x179   : > { %v1206_v53 = vadd.f32 %v1205_v10, %v5712_v45 }
 0x17e   : > { %v1294_v22 = vpop.f32.mrf.mxu2 }
 0x17f   : > { %v5944_v54 = vadd.f32 %v1294_v22, %v1206_v53  ;;  %v535_v53 = vpack.c.bf16 %v339_v8, %v332_v60 }
 0x180   : > { %v1208_v14 = vpop.f32.mrf.mxu1 }
 0x181   : > { %v1209_v37 = vadd.f32 %v1208_v14, %v5723_v56  ;;  %v527_v56 = vpack.c.bf16 %v324_v44, %v317_v42  ;;  %v346_v14 = vld [vmem:[%s5494_s17 + $0x1f0] sm:$0xff] }
 0x183   : > { %1523 = vmatmul.bf16.gmra.mxu1 %v520_v29  ;;  %4825 = vmatmul.msk.bf16.gmra.mxu2 %vm1016_vm0, %v521_v36  ;;  %v345_v29 = vld [vmem:[%s5494_s17 + $0x1e8] sm:$0xff]  ;;  %v352_v36 = vld [vmem:[%s5494_s17 + $0x220] sm:$0xff] }
 0x186   : > { %v1297_v45 = vpop.f32.mrf.mxu2 }
 0x187   : > { %v5948_v34 = vadd.f32 %v1297_v45, %v1209_v37  ;;  %v353_v37 = vld [vmem:[%s5494_s17 + $0x228] sm:$0xff] }
 0x188   : > { %v1210_v39 = vpop.f32.mrf.mxu1 }
 0x189   : > { %v1211_v26 = vadd.f32 %v1210_v39, %v5742_v7 }
 0x18e   : > { %v1299_v48 = vpop.f32.mrf.mxu2 }
 0x18f   : > { %v5955_v61 = vadd.f32 %v1299_v48, %v1211_v26  ;;  %v542_v26 = vpack.c.bf16 %v353_v37, %v346_v14 }
 0x190   : > { %v1213_v2 = vpop.f32.mrf.mxu1 }
 0x191   : > { %v1214_v52 = vadd.f32 %v1213_v2, %v5753_v19  ;;  %v534_v19 = vpack.c.bf16 %v338_v6, %v331_v25  ;;  %v360_v2 = vld [vmem:[%s5494_s17 + $0x260] sm:$0xff] }
 0x193   : > { %1528 = vmatmul.bf16.gmra.mxu1 %v527_v56  ;;  %4826 = vmatmul.msk.bf16.gmra.mxu2 %vm1016_vm0, %v528_v55  ;;  %v359_v56 = vld [vmem:[%s5494_s17 + $0x258] sm:$0xff]  ;;  %v366_v55 = vld [vmem:[%s5494_s17 + $0x290] sm:$0xff] }
 0x196   : > { %v1302_v7 = vpop.f32.mrf.mxu2 }
 0x197   : > { %v5959_v58 = vadd.f32 %v1302_v7, %v1214_v52  ;;  %v367_v52 = vld [vmem:[%s5494_s17 + $0x298] sm:$0xff] }
 0x198   : > { %v1215_v62 = vpop.f32.mrf.mxu1 }
 0x199   : > { %v1216_v4 = vadd.f32 %v1215_v62, %v5775_v41 }
 0x19e   : > { %v1304_v0 = vpop.f32.mrf.mxu2 }
 0x19f   : > { %v5966_v10 = vadd.f32 %v1304_v0, %v1216_v4  ;;  %v549_v4 = vpack.c.bf16 %v367_v52, %v360_v2 }
 0x1a0   : > { %v1218_v13 = vpop.f32.mrf.mxu1 }
 0x1a1   : > { %v1219_v15 = vadd.f32 %v1218_v13, %v5786_v57  ;;  %v541_v57 = vpack.c.bf16 %v352_v36, %v345_v29  ;;  %v374_v13 = vld [vmem:[%s5494_s17 + $0x2d0] sm:$0xff] }
 0x1a3   : > { %1533 = vmatmul.bf16.gmra.mxu1 %v534_v19  ;;  %4827 = vmatmul.msk.bf16.gmra.mxu2 %vm1016_vm0, %v535_v53  ;;  %v373_v19 = vld [vmem:[%s5494_s17 + $0x2c8] sm:$0xff]  ;;  %v380_v53 = vld [vmem:[%s5494_s17 + $0x300] sm:$0xff] }
 0x1a6   : > { %v1307_v41 = vpop.f32.mrf.mxu2 }
 0x1a7   : > { %v5970_v20 = vadd.f32 %v1307_v41, %v1219_v15  ;;  %v381_v15 = vld [vmem:[%s5494_s17 + $0x308] sm:$0xff] }
 0x1a8   : > { %v1220_v17 = vpop.f32.mrf.mxu1 }
 0x1a9   : > { %v1221_v22 = vadd.f32 %v1220_v17, %v5808_v18 }
 0x1ae   : > { %v1309_v45 = vpop.f32.mrf.mxu2 }
 0x1af   : > { %v5977_v39 = vadd.f32 %v1309_v45, %v1221_v22  ;;  %v556_v22 = vpack.c.bf16 %v381_v15, %v374_v13 }
 0x1b0   : > { %v1223_v42 = vpop.f32.mrf.mxu1 }
 0x1b1   : > { %v1224_v44 = vadd.f32 %v1223_v42, %v5696_v33  ;;  %v548_v33 = vpack.c.bf16 %v366_v55, %v359_v56  ;;  %v388_v42 = vld [vmem:[%s5494_s17 + $0x340] sm:$0xff] }
 0x1b3   : > { %1538 = vmatmul.bf16.gmra.mxu1 %v541_v57  ;;  %4828 = vmatmul.msk.bf16.gmra.mxu2 %vm1016_vm0, %v542_v26  ;;  %v387_v57 = vld [vmem:[%s5494_s17 + $0x338] sm:$0xff]  ;;  %v394_v26 = vld [vmem:[%s5494_s17 + $0x370] sm:$0xff] }
 0x1b6   : > { %v1312_v18 = vpop.f32.mrf.mxu2 }
 0x1b7   : > { %v5981_v24 = vadd.f32 %v1312_v18, %v1224_v44  ;;  %v395_v44 = vld [vmem:[%s5494_s17 + $0x378] sm:$0xff] }
 0x1b8   : > { %v1225_v46 = vpop.f32.mrf.mxu1 }
 0x1b9   : > { %v1226_v48 = vadd.f32 %v1225_v46, %v5715_v50 }
 0x1be   : > { %v1314_v7 = vpop.f32.mrf.mxu2 }
 0x1bf   : > { %v5988_v62 = vadd.f32 %v1314_v7, %v1226_v48  ;;  %v563_v48 = vpack.c.bf16 %v395_v44, %v388_v42 }
 0x1c0   : > { %v1228_v25 = vpop.f32.mrf.mxu1 }
 0x1c1   : > { %v1229_v6 = vadd.f32 %v1228_v25, %v5726_v59  ;;  %v555_v59 = vpack.c.bf16 %v380_v53, %v373_v19  ;;  %v402_v25 = vld [vmem:[%s5494_s17 + $0x3b0] sm:$0xff] }
 0x1c3   : > { %1543 = vmatmul.bf16.gmra.mxu1 %v548_v33  ;;  %4829 = vmatmul.msk.bf16.gmra.mxu2 %vm1016_vm0, %v549_v4  ;;  %v401_v33 = vld [vmem:[%s5494_s17 + $0x3a8] sm:$0xff]  ;;  %v408_v4 = vld [vmem:[%s5494_s17 + $0x3e0] sm:$0xff] }
 0x1c6   : > { %v1317_v50 = vpop.f32.mrf.mxu2 }
 0x1c7   : > { %v5992_v60 = vadd.f32 %v1317_v50, %v1229_v6  ;;  %v409_v6 = vld [vmem:[%s5494_s17 + $0x3e8] sm:$0xff] }
 0x1c8   : > { %v1230_v8 = vpop.f32.mrf.mxu1 }
 0x1c9   : > { %v1231_v0 = vadd.f32 %v1230_v8, %v5745_v12 }
 0x1ce   : > { %v1319_v41 = vpop.f32.mrf.mxu2 }
 0x1cf   : > { %v5999_v17 = vadd.f32 %v1319_v41, %v1231_v0  ;;  %v570_v0 = vpack.c.bf16 %v409_v6, %v402_v25 }
 0x1d0   : > { %v1233_v29 = vpop.f32.mrf.mxu1 }
 0x1d1   : > { %v1234_v36 = vadd.f32 %v1233_v29, %v5759_v23  ;;  %v562_v23 = vpack.c.bf16 %v394_v26, %v387_v57  ;;  %v416_v29 = vld [vmem:[%s5494_s17 + $0x420] sm:$0xff] }
 0x1d3   : > { %1548 = vmatmul.bf16.gmra.mxu1 %v555_v59  ;;  %4830 = vmatmul.msk.bf16.gmra.mxu2 %vm1016_vm0, %v556_v22  ;;  %v415_v59 = vld [vmem:[%s5494_s17 + $0x418] sm:$0xff]  ;;  %v422_v22 = vld [vmem:[%s5494_s17 + $0x450] sm:$0xff] }
 0x1d6   : > { %v1322_v12 = vpop.f32.mrf.mxu2 }
 0x1d7   : > { %v6003_v14 = vadd.f32 %v1322_v12, %v1234_v36  ;;  %v423_v36 = vld [vmem:[%s5494_s17 + $0x458] sm:$0xff] }
 0x1d8   : > { %v1235_v37 = vpop.f32.mrf.mxu1  ;;  %v577_v57 = vpack.c.bf16 %v423_v36, %v416_v29 }
 0x1d9   : > { %v1236_v45 = vadd.f32 %v1235_v37, %v5778_v47 }
 0x1de   : > { %v1324_v18 = vpop.f32.mrf.mxu2 }
 0x1df   : > { %v6010_v46 = vadd.f32 %v1324_v18, %v1236_v45 }
 0x1e0   : > { %v1238_v56 = vpop.f32.mrf.mxu1 }
 0x1e1   : > { %v1239_v55 = vadd.f32 %v1238_v56, %v5789_v63  ;;  %v569_v63 = vpack.c.bf16 %v408_v4, %v401_v33  ;;  %v429_v56 = vld [vmem:[%s5494_s17 + $0x488] sm:$0xff] }
 0x1e3   : > { %1553 = vmatmul.bf16.gmra.mxu1 %v562_v23  ;;  %4831 = vmatmul.msk.bf16.gmra.mxu2 %vm1016_vm0, %v563_v48 }
 0x1e6   : > { %v1327_v47 = vpop.f32.mrf.mxu2 }
 0x1e7   : > { %v6014_v2 = vadd.f32 %v1327_v47, %v1239_v55  ;;  %v436_v55 = vld [vmem:[%s5494_s17 + $0x4c0] sm:$0xff]  ;;  %v430_v47 = vld [vmem:[%s5494_s17 + $0x490] sm:$0xff] }
 0x1e8   : > { %v1240_v52 = vpop.f32.mrf.mxu1 }
 0x1e9   : > { %8576 = vst [vmem:[#allocation5_spill] sm:$0xff] %v6014_v2  ;;  %v1241_v7 = vadd.f32 %v1240_v52, %v5811_v28  ;;  %v437_v52 = vld [vmem:[%s5494_s17 + $0x4c8] sm:$0xff] }
 0x1ea   : > { %v584_v25 = vpack.c.bf16 %v437_v52, %v430_v47  ;;  %v465_v47 = vld [vmem:[%s5494_s17 + $0x5a8] sm:$0xff] }
 0x1ee   : > { %v1329_v50 = vpop.f32.mrf.mxu2 }
 0x1ef   : > { %v6021_v8 = vadd.f32 %v1329_v50, %v1241_v7 }
 0x1f0   : > { %v1519_v19 = vpop.f32.mrf.mxu1 }
 0x1f1   : > { %8577 = vst [vmem:[#allocation6_spill] sm:$0xff] %v6021_v8  ;;  %v1520_v53 = vadd.f32 %v1519_v19, %v5818_v51  ;;  %v576_v51 = vpack.c.bf16 %v422_v22, %v415_v59  ;;  %v444_v59 = vld [vmem:[%s5494_s17 + $0x500] sm:$0xff]  ;;  %v451_v22 = vld [vmem:[%s5494_s17 + $0x538] sm:$0xff] }
 0x1f3   : > { %1558 = vmatmul.bf16.gmra.mxu1 %v569_v63  ;;  %4832 = vmatmul.msk.bf16.gmra.mxu2 %vm1016_vm0, %v570_v0 }
 0x1f6   : > { %v1608_v28 = vpop.f32.mrf.mxu2 }
 0x1f7   : > { %v6025_v13 = vadd.f32 %v1608_v28, %v1520_v53  ;;  %v443_v28 = vld [vmem:[%s5494_s17 + $0x4f8] sm:$0xff] }
 0x1f8   : > { %v1521_v15 = vpop.f32.mrf.mxu1 }
 0x1f9   : > { %v1688_v41 = vmax.f32 %v6025_v13, 0.0  ;;  %v1522_v12 = vadd.f32 %v1521_v15, %v5830_v32  ;;  %v450_v15 = vld [vmem:[%s5494_s17 + $0x530] sm:$0xff] }
 0x1fb   : > { %1720 = vadd.xlane.f32.xlu0 %v1688_v41 }
 0x1fe   : > { %v1610_v37 = vpop.f32.mrf.mxu2 }
 0x1ff   : > { %v6035_v45 = vadd.f32 %v1610_v37, %v1522_v12  ;;  %v590_v12 = vpack.c.bf16 %v450_v15, %v443_v28  ;;  %v591_v37 = vpack.c.bf16 %v451_v22, %v444_v59  ;;  %v486_v28 = vld [vmem:[%s5494_s17 + $0x650] sm:$0xff]  ;;  %v493_v15 = vld [vmem:[%s5494_s17 + $0x688] sm:$0xff] }
 0x200   : > { %v1524_v26 = vpop.f32.mrf.mxu1  ;;  %v612_v22 = vpack.c.bf16 %v493_v15, %v486_v28 }
 0x201   : > { %v1689_v42 = vmax.f32 %v6035_v45, 0.0  ;;  %v1525_v32 = vadd.f32 %v1524_v26, %v5834_v43  ;;  %v583_v43 = vpack.c.bf16 %v436_v55, %v429_v56  ;;  %v464_v56 = vld [vmem:[%s5494_s17 + $0x5a0] sm:$0xff]  ;;  %v458_v55 = vld [vmem:[%s5494_s17 + $0x570] sm:$0xff] }
 0x203   : > { %1563 = vmatmul.bf16.gmra.mxu1 %v576_v51  ;;  %4833 = vmatmul.msk.bf16.gmra.mxu2 %vm1016_vm0, %v577_v57 }
 0x204   : > { %1722 = vadd.xlane.f32.xlu0 %v1689_v42 }
 0x206   : > { %v1613_v44 = vpop.f32.mrf.mxu2 }
 0x207   : > { %v6042_v18 = vadd.f32 %v1613_v44, %v1525_v32 }
 0x208   : > { %v1526_v23 = vpop.f32.mrf.mxu1 }
 0x209   : > { %v1690_v48 = vmax.f32 %v6042_v18, 0.0  ;;  %v1527_v7 = vadd.f32 %v1526_v23, %v5846_v21  ;;  %v457_v23 = vld [vmem:[%s5494_s17 + $0x568] sm:$0xff] }
 0x20a   : > { %v597_v52 = vpack.c.bf16 %v464_v56, %v457_v23 }
 0x20b   : > { %1724 = vadd.xlane.f32.xlu1 %v1690_v48 }
 0x20e   : > { %v1615_v33 = vpop.f32.mrf.mxu2 }
 0x20f   : > { %v6052_v4 = vadd.f32 %v1615_v33, %v1527_v7  ;;  %v598_v7 = vpack.c.bf16 %v465_v47, %v458_v55  ;;  %v478_v33 = vld [vmem:[%s5494_s17 + $0x610] sm:$0xff] }
 0x210   : > { %v1529_v6 = vpop.f32.mrf.mxu1 }
 0x211   : > { %v1691_v50 = vmax.f32 %v6052_v4, 0.0  ;;  %v1530_v21 = vadd.f32 %v1529_v6, %v5853_v38 }
 0x213   : > { %1568 = vmatmul.bf16.gmra.mxu1 %v583_v43  ;;  %4834 = vmatmul.msk.bf16.gmra.mxu2 %vm1016_vm0, %v584_v25  ;;  %v472_v43 = vld [vmem:[%s5494_s17 + $0x5e0] sm:$0xff]  ;;  %v479_v25 = vld [vmem:[%s5494_s17 + $0x618] sm:$0xff] }
 0x214   : > { %1726 = vadd.xlane.f32.xlu1 %v1691_v50 }
 0x216   : > { %v1618_v63 = vpop.f32.mrf.mxu2 }
 0x217   : > { %v6059_v0 = vadd.f32 %v1618_v63, %v1530_v21  ;;  %v605_v21 = vpack.c.bf16 %v479_v25, %v472_v43  ;;  %v485_v63 = vld [vmem:[%s5494_s17 + $0x648] sm:$0xff]  ;;  %v1450_v25 = vpop.f32.mrf.mxu0 }
 0x218   : > { %v1531_v19 = vpop.f32.mrf.mxu1 }
 0x219   : > { %v1692_v53 = vmax.f32 %v6059_v0, 0.0  ;;  %v1532_v29 = vadd.f32 %v1531_v19, %v5865_v11  ;;  %v492_v19 = vld [vmem:[%s5494_s17 + $0x680] sm:$0xff] }
 0x21a   : > { %v611_v59 = vpack.c.bf16 %v492_v19, %v485_v63 }
 0x21b   : > { %1728 = vadd.xlane.f32.xlu2 %v1692_v53 }
 0x21e   : > { %v1620_v36 = vpop.f32.mrf.mxu2 }
 0x21f   : > { %v6069_v38 = vadd.f32 %v1620_v36, %v1532_v29  ;;  %v5375_v29 = vmov 128.0  }
 0x220   : > { %v1534_v57 = vpop.f32.mrf.mxu1  ;;  %5044 = vrcp.f32 %v5375_v29 }
 0x221   : > { %v1693_v51 = vmax.f32 %v6069_v38, 0.0  ;;  %v1535_v11 = vadd.f32 %v1534_v57, %v5868_v30  ;;  %v471_v30 = vld [vmem:[%s5494_s17 + $0x5d8] sm:$0xff]  ;;  %v500_v57 = vld [vmem:[%s5494_s17 + $0x6c0] sm:$0xff] }
 0x222   : > { %v604_v6 = vpack.c.bf16 %v478_v33, %v471_v30  ;;  %v1361_v33 = vpop.f32.mrf.mxu3 }
 0x223   : > { %1573 = vmatmul.bf16.gmra.mxu1 %v590_v12  ;;  %4835 = vmatmul.msk.bf16.gmra.mxu2 %vm1016_vm0, %v591_v37  ;;  %v499_v12 = vld [vmem:[%s5494_s17 + $0x6b8] sm:$0xff]  ;;  %v506_v37 = vld [vmem:[%s5494_s17 + $0x6f0] sm:$0xff]  ;;  %v1362_v29 = vadd.f32 %v1361_v33, %v5881_v5 }
 0x224   : > { %1730 = vadd.xlane.f32.xlu2 %v1693_v51  ;;  %v618_v23 = vpack.c.bf16 %v506_v37, %v499_v12 }
 0x226   : > { %v1623_v26 = vpop.f32.mrf.mxu2  ;;  %v5045_v36 = vpop.eup %5044 }
 0x227   : > { %v6076_v32 = vadd.f32 %v1623_v26, %v1535_v11  ;;  %v507_v11 = vld [vmem:[%s5494_s17 + $0x6f8] sm:$0xff]  ;;  %v1785_v26 = vmul.f32 128.0, %v5045_v36  ;;  %vm1789_vm1 = vweird.f32 %v5045_v36  ;;  %s272_s17 = sand.u32 1, %s5365_s25  }
 0x228   : > { %v619_v56 = vpack.c.bf16 %v507_v11, %v500_v57  ;;  %v1536_v47 = vpop.f32.mrf.mxu1  ;;  %s4625_s9 = sshll.u32 %s272_s17, 8  ;;  %s4544_s13 = scalar_lea.sflag [#allocation3], %s272_s17 }
 0x229   : > { %v1694_v44 = vmax.f32 %v6076_v32, 0.0  ;;  %v1786_v55 = vsub.f32 1.0, %v1785_v26  ;;  %s7885_s18 = scalar_lea.vmem [#allocation2], %s4625_s9  ;;  %s4558_s9 = sshll.u32 %s4555_s29, 4  ;;  %s4559_s9 = int_to_ptr.hbm [resolvable:$true] %s4558_s9 }
 0x22a   : > { %v1363_v15 = vpop.f32.mrf.mxu3  ;;  %s4556_s8 = sshll.u32 %s7885_s18, 4  ;;  %s5325_s28 = sshra.s32 %s4559_s9, 4  ;;  %s4557_s8 = int_to_ptr.vmem [resolvable:$true] %s4556_s8  ;;  %s5326_s28 = int_to_ptr.hbm [resolvable:$true] %s5325_s28 }
 0x22b   : > { %s5327_s14 = scalar_lea.hbm %s5326_s28, 256  ;;  %p5332_p0 = scmp.lt.s32.totalorder %s5326_s28, %s8564_s7 }
 0x22c   : > { %1732 = vadd.xlane.f32.xlu2 %v1694_v44  ;;  %p5328_p11 = scmp.ne.s32.totalorder %s5326_s28, %s5327_s14  ;;  %p5333_p1 = scmp.lt.s32.totalorder %s5331_s19, %s5327_s14 }
 0x22e   : > { %p5329_p12 = pnand %p5328_p11, %p5459_p5  ;;  %p5334_p2 = por %p5333_p1, %p5332_p0 }
 0x230   : > { %p5330_p13 = pneg %p5329_p12 }
 0x232   : > { %p5335_p3 = pnand %p5334_p2, %p5330_p13 }
 0x233   : > { %1578 = vmatmul.bf16.gmra.mxu1 %v597_v52  ;;  %4836 = vmatmul.msk.bf16.gmra.mxu2 %vm1016_vm0, %v598_v7  ;;  %v1625_v52 = vpop.f32.mrf.mxu2  ;;  %v1787_v7 = vmul.f32 %v5045_v36, %v1786_v55 }
 0x235   : > { %v1788_v30 = vadd.f32 %v5045_v36, %v1787_v7 }
 0x237   : > { %v6101_v43 = vsel %vm1789_vm1, %v5045_v36, %v1788_v30  ;;  %v1452_v36 = vpop.f32.mrf.mxu0 }
 0x23b   : > { %v1628_v19 = vpop.f32.mrf.mxu2 }
 0x243   : > { %1583 = vmatmul.bf16.gmra.mxu1 %v604_v6  ;;  %4837 = vmatmul.msk.bf16.gmra.mxu2 %vm1016_vm0, %v605_v21  ;;  %v1539_v21 = vpop.f32.mrf.mxu1  ;;  %v1630_v26 = vpop.f32.mrf.mxu2 }
 0x24b   : > { %v1541_v11 = vpop.f32.mrf.mxu1 }
 0x253   : > { %1588 = vmatmul.bf16.gmra.mxu1 %v611_v59  ;;  %4838 = vmatmul.msk.bf16.gmra.mxu2 %vm1016_vm0, %v612_v22  ;;  %v1537_v22 = vadd.f32 %v1536_v47, %v5879_v3  ;;  %v1544_v33 = vpop.f32.mrf.mxu1 }
 0x255   : > { %v6112_v12 = vadd.f32 %v1625_v52, %v1537_v22  ;;  %v1455_v52 = vpop.f32.mrf.mxu0 }
 0x263   : > { %1593 = vmatmul.bf16.gmra.mxu1 %v618_v23  ;;  %4839 = vmatmul.msk.bf16.gmra.mxu2 %vm1016_vm0, %v619_v56  ;;  %v1695_v23 = vmax.f32 %v6112_v12, 0.0  ;;  %v1366_v56 = vpop.f32.mrf.mxu3 }
 0x26e   : > { %v1721_v6 = vpop.xlane.xlu0 %1720 }
 0x26f   : > { %v1791_v63 = vmul.f32 %v6101_v43, %v1721_v6 }
 0x271   : > { %v6106_v28 = vsub.f32 %v1688_v41, %v1791_v63  ;;  %v1451_v41 = vadd.f32 %v1450_v25, %v1362_v29  ;;  %v1457_v29 = vpop.f32.mrf.mxu0 }
 0x273   : > { %v1855_v59 = vmul.f32 %v6106_v28, %v6106_v28  ;;  %v1540_v5 = vadd.f32 %v1539_v21, %v1451_v41  ;;  %v1633_v21 = vpop.f32.mrf.mxu2 }
 0x275   : > { %1887 = vadd.xlane.f32.xlu0 %v1855_v59  ;;  %v6124_v47 = vadd.f32 %v1628_v19, %v1540_v5  ;;  %v1368_v19 = vpop.f32.mrf.mxu3  ;;  %v4965_v59 = vld [vmem:[%s8560_s3 + $0x38] sm:$0xff] }
 0x276   : > { %2970 = vmatpush.bf16.msra.mxu3 %v4965_v59 }
 0x277   : > { %v1723_v37 = vpop.xlane.xlu0 %1722  ;;  %v1696_v30 = vmax.f32 %v6124_v47, 0.0 }
 0x278   : > { %v1792_v57 = vmul.f32 %v6101_v43, %v1723_v37 }
 0x27a   : > { %v6117_v13 = vsub.f32 %v1689_v42, %v1792_v57  ;;  %v1364_v42 = vadd.f32 %v1363_v15, %v5895_v31  ;;  %v1367_v15 = vadd.f32 %v1366_v56, %v5898_v40  ;;  %v1546_v57 = vpop.f32.mrf.mxu1 }
 0x27c   : > { %v1856_v3 = vmul.f32 %v6117_v13, %v6117_v13  ;;  %v1453_v6 = vadd.f32 %v1452_v36, %v1364_v42  ;;  %v1456_v36 = vadd.f32 %v1455_v52, %v1367_v15  ;;  %v1460_v52 = vpop.f32.mrf.mxu0 }
 0x27d   : > { %1734 = vadd.xlane.f32.xlu0 %v1695_v23  ;;  %v1371_v56 = vpop.f32.mrf.mxu3 }
 0x27e   : > { %1889 = vadd.xlane.f32.xlu1 %v1856_v3  ;;  %v1725_v55 = vpop.xlane.xlu1 %1724  ;;  %v1542_v63 = vadd.f32 %v1541_v11, %v1453_v6  ;;  %v1545_v11 = vadd.f32 %v1544_v33, %v1456_v36  ;;  %v1372_v6 = vadd.f32 %v1371_v56, %v5912_v16 }
 0x27f   : > { %v1793_v45 = vmul.f32 %v6101_v43, %v1725_v55 }
 0x280   : > { %v6138_v18 = vadd.f32 %v1630_v26, %v1542_v63  ;;  %v1635_v26 = vpop.f32.mrf.mxu2  ;;  %v6155_v3 = vadd.f32 %v1633_v21, %v1545_v11 }
 0x281   : > { %v6130_v7 = vsub.f32 %v1690_v48, %v1793_v45 }
 0x282   : > { %v8570_v37 = vmax.f32 %v6138_v18, 0.0  ;;  %v8569_v42 = vmax.f32 %v6155_v3, 0.0 }
 0x283   : > { %v1857_v25 = vmul.f32 %v6130_v7, %v6130_v7 }
 0x284   : > { %v1462_v16 = vpop.f32.mrf.mxu0 }
 0x285   : > { %1736 = vadd.xlane.f32.xlu0 %v1696_v30 }
 0x286   : > { %1891 = vadd.xlane.f32.xlu1 %v1857_v25 }
 0x287   : > { %v1727_v31 = vpop.xlane.xlu1 %1726 }
 0x288   : > { %v1794_v48 = vmul.f32 %v6101_v43, %v1727_v31  ;;  %v1461_v31 = vadd.f32 %v1460_v52, %v1372_v6 }
 0x28a   : > { %v6146_v22 = vsub.f32 %v1691_v50, %v1794_v48  ;;  %v1369_v50 = vadd.f32 %v1368_v19, %v5909_v1  ;;  %v1549_v1 = vpop.f32.mrf.mxu1  ;;  %v1373_v19 = vpop.f32.mrf.mxu3 }
 0x28b   : > { %v1550_v59 = vadd.f32 %v1549_v1, %v1461_v31  ;;  %v1374_v36 = vadd.f32 %v1373_v19, %v5923_v27 }
 0x28c   : > { %v1858_v40 = vmul.f32 %v6146_v22, %v6146_v22  ;;  %v1458_v45 = vadd.f32 %v1457_v29, %v1369_v50  ;;  %v1465_v32 = vpop.f32.mrf.mxu0 }
 0x28e   : > { %1893 = vadd.xlane.f32.xlu2 %v1858_v40  ;;  %1738 = vadd.xlane.f32.xlu1 %v8570_v37  ;;  %v1729_v41 = vpop.xlane.xlu2 %1728  ;;  %v1547_v33 = vadd.f32 %v1546_v57, %v1458_v45 }
 0x28f   : > { %v1795_v4 = vmul.f32 %v6101_v43, %v1729_v41  ;;  %v1463_v41 = vadd.f32 %v1462_v16, %v1374_v36  ;;  %v4963_v36 = vld [vmem:[%s8560_s3 + $0x28] sm:$0xff] }
 0x290   : > { %v6167_v21 = vadd.f32 %v1635_v26, %v1547_v33 }
 0x291   : > { %v6159_v5 = vsub.f32 %v1692_v53, %v1795_v4  ;;  %v1638_v53 = vpop.f32.mrf.mxu2 }
 0x292   : > { %v8568_v15 = vmax.f32 %v6167_v21, 0.0  ;;  %v6180_v40 = vadd.f32 %v1638_v53, %v1550_v59  ;;  %v1376_v50 = vpop.f32.mrf.mxu3 }
 0x293   : > { %v1859_v55 = vmul.f32 %v6159_v5, %v6159_v5  ;;  %v1377_v27 = vadd.f32 %v1376_v50, %v5926_v35 }
 0x294   : > { %v8567_v26 = vmax.f32 %v6180_v40, 0.0  ;;  %v1467_v16 = vpop.f32.mrf.mxu0 }
 0x295   : > { %v1466_v52 = vadd.f32 %v1465_v32, %v1377_v27 }
 0x296   : > { %1895 = vadd.xlane.f32.xlu2 %v1859_v55  ;;  %1740 = vadd.xlane.f32.xlu1 %v8569_v42 }
 0x297   : > { %v1731_v25 = vpop.xlane.xlu2 %1730 }
 0x298   : > { %v1796_v0 = vmul.f32 %v6101_v43, %v1731_v25 }
 0x299   : > { %v1640_v11 = vpop.f32.mrf.mxu2 }
 0x29a   : > { %v6172_v63 = vsub.f32 %v1693_v51, %v1796_v0  ;;  %v1551_v51 = vpop.f32.mrf.mxu1  ;;  %v5376_v0 = vmov 127.0   ;;  %v1378_v31 = vpop.f32.mrf.mxu3 }
 0x29b   : > { %v1552_v56 = vadd.f32 %v1551_v51, %v1463_v41  ;;  %5046 = vrcp.f32 %v5376_v0  ;;  %v1379_v12 = vadd.f32 %v1378_v31, %v5933_v49 }
 0x29c   : > { %v1860_v48 = vmul.f32 %v6172_v63, %v6172_v63  ;;  %v6214_v50 = vpop.f32.mrf.mxu0 }
 0x29d   : > { %v6193_v55 = vadd.f32 %v1640_v11, %v1552_v56  ;;  %v4962_v56 = vld [vmem:[%s8560_s3 + $0x20] sm:$0xff] }
 0x29e   : > { %1742 = vadd.xlane.f32.xlu2 %v8568_v15  ;;  %1897 = vadd.xlane.f32.xlu0 %v1860_v48 }
 0x29f   : > { %v1733_v29 = vpop.xlane.xlu2 %1732  ;;  %v8566_v33 = vmax.f32 %v6193_v55, 0.0 }
 0x2a0   : > { %v1797_v38 = vmul.f32 %v6101_v43, %v1733_v29 }
 0x2a1   : > { %v1643_v1 = vpop.f32.mrf.mxu2  ;;  %v5047_v53 = vpop.eup %5046 }
 0x2a2   : > { %v6185_v57 = vsub.f32 %v1694_v44, %v1797_v38  ;;  %v4964_v44 = vld [vmem:[%s8560_s3 + $0x30] sm:$0xff]  ;;  %v1554_v45 = vpop.f32.mrf.mxu1  ;;  %v1952_v19 = vmul.f32 127.0, %v5047_v53  ;;  %v6209_v38 = vpop.f32.mrf.mxu3  ;;  %vm1956_vm2 = vweird.f32 %v5047_v53 }
 0x2a3   : > { %2971 = vmatpush.bf16.msra.mxu3 %v4964_v44  ;;  %v1555_v25 = vadd.f32 %v1554_v45, %v1466_v52  ;;  %v4961_v52 = vld [vmem:[%s8560_s3 + $0x18] sm:$0xff] }
 0x2a4   : > { %v1861_v4 = vmul.f32 %v6185_v57, %v6185_v57  ;;  %v1953_v48 = vsub.f32 1.0, %v1952_v19 }
 0x2a5   : > { %v6201_v6 = vadd.f32 %v1643_v1, %v1555_v25 }
 0x2a6   : > { %1744 = vadd.xlane.f32.xlu2 %v8567_v26  ;;  %1899 = vadd.xlane.f32.xlu0 %v1861_v4  ;;  %v1954_v59 = vmul.f32 %v5047_v53, %v1953_v48 }
 0x2a7   : > { %v8565_v35 = vmax.f32 %v6201_v6, 0.0  ;;  %2972 = vmatpush.bf16.msra.mxu3 %v4963_v36  ;;  %v4960_v36 = vld [vmem:[%s8560_s3 + $0x10] sm:$0xff] }
 0x2a8   : > { %v1955_v29 = vadd.f32 %v5047_v53, %v1954_v59  ;;  %v6234_v59 = vpop.f32.mrf.mxu0 }
 0x2a9   : > { %v1645_v32 = vpop.f32.mrf.mxu2 }
 0x2aa   : > { %v1556_v51 = vpop.f32.mrf.mxu1  ;;  %v6211_v11 = vsel %vm1956_vm2, %v5047_v53, %v1955_v29  ;;  %v6219_v27 = vpop.f32.mrf.mxu3 }
 0x2ab   : > { %2973 = vmatpush.bf16.msra.mxu3 %v4962_v56 }
 0x2ae   : > { %1746 = vadd.xlane.f32.xlu0 %v8566_v33 }
 0x2af   : > { %2974 = vmatpush.bf16.msra.mxu3 %v4961_v52 }
 0x2b2   : > { %v6221_v44 = vpop.f32.mrf.mxu1 }
 0x2b3   : > { %2975 = vmatpush.bf16.msra.mxu3 %v4960_v36 }
 0x2b6   : > { %1748 = vadd.xlane.f32.xlu0 %v8565_v35 }
 0x2e8   : > { %v1888_v41 = vpop.xlane.xlu0 %1887 }
 0x2e9   : > { %v1958_v4 = vmul.f32 %v6211_v11, %v1888_v41 }
 0x2eb   : > { %5048 = vrsqrt.f32 %v1958_v4  ;;  %vm1997_vm3 = vcmp.eq.f32.partialorder %v1958_v4, inf  ;;  %vm1999_vm4 = vcmp.eq.f32.partialorder %v1958_v4, 0.0 }
 0x2f0   : > { %v1735_v45 = vpop.xlane.xlu0 %1734 }
 0x2f1   : > { %v5049_v1 = vpop.eup %5048  ;;  %v1890_v25 = vpop.xlane.xlu1 %1889  ;;  %v1798_v0 = vmul.f32 %v6101_v43, %v1735_v45 }
 0x2f2   : > { %v1991_v53 = vmul.f32 %v5049_v1, %v1958_v4  ;;  %v6228_v19 = vmul.f32 %v6211_v11, %v1890_v25  ;;  %v1386_v45 = vpop.f32.mrf.mxu3 }
 0x2f3   : > { %v6232_v48 = vsub.f32 %v1695_v23, %v1798_v0  ;;  %v6243_v23 = vpop.f32.mrf.mxu2  ;;  %v4959_v0 = vld [vmem:[%s8560_s3 + $0x8] sm:$0xff] }
 0x2f4   : > { %v1992_v29 = vmul.f32 %v5049_v1, %v1991_v53  ;;  %5050 = vrsqrt.f32 %v6228_v19  ;;  %v6248_v53 = vpop.f32.mrf.mxu1  ;;  %2976 = vmatpush.bf16.msra.mxu3 %v4959_v0  ;;  %v1475_v0 = vpop.f32.mrf.mxu0  ;;  %vm2009_vm5 = vcmp.eq.f32.partialorder %v6228_v19, inf  ;;  %vm2011_vm6 = vcmp.eq.f32.partialorder %v6228_v19, 0.0 }
 0x2f5   : > { %v1862_v41 = vmul.f32 %v6232_v48, %v6232_v48 }
 0x2f6   : > { %v1993_v56 = vmul.f32 0.5, %v1992_v29 }
 0x2f7   : > { %1901 = vadd.xlane.f32.xlu1 %v1862_v41  ;;  %v1468_v41 = vadd.f32 %v1467_v16, %v1379_v12  ;;  %v1382_v12 = vadd.f32 %v6209_v38, %v5937_v9  ;;  %v1384_v9 = vadd.f32 %v6219_v27, %v5944_v54  ;;  %v8578_v38 = vmax.f32 %v6138_v18, 0.0 }
 0x2f8   : > { %v1994_v52 = vsub.f32 1.5, %v1993_v56  ;;  %v1737_v25 = vpop.xlane.xlu0 %1736 }
 0x2f9   : > { %v1892_v35 = vpop.xlane.xlu1 %1891  ;;  %v1799_v33 = vmul.f32 %v6101_v43, %v1737_v25  ;;  %v4958_v25 = vld [vmem:[%s8560_s3] sm:$0xff]  ;;  %v1557_v47 = vadd.f32 %v1556_v51, %v1468_v41 }
 0x2fa   : > { %v5051_v26 = vpop.eup %5050  ;;  %v1995_v29 = vmul.f32 %v5049_v1, %v1994_v52  ;;  %v6252_v36 = vmul.f32 %v6211_v11, %v1892_v35  ;;  %v2000_v1 = vand.u32 2147483648, %v1958_v4  ;;  %2977 = vmatpush.bf16.msra.mxu3 %v4958_v25  ;;  %v1388_v2 = vpop.f32.mrf.mxu3 }
 0x2fb   : > { %v2003_v49 = vmul.f32 %v5051_v26, %v6228_v19  ;;  %v6257_v31 = vsub.f32 %v1696_v30, %v1799_v33  ;;  %v1650_v51 = vpop.f32.mrf.mxu2 }
 0x2fc   : > { %v1996_v56 = vmul.f32 %v1995_v29, %v1958_v4  ;;  %5052 = vrsqrt.f32 %v6252_v36  ;;  %v6269_v29 = vadd.f32 %v1645_v32, %v1557_v47  ;;  %v1564_v41 = vpop.f32.mrf.mxu1  ;;  %vm2021_vm7 = vcmp.eq.f32.partialorder %v6252_v36, inf }
 0x2fd   : > { %v2004_v52 = vmul.f32 %v5051_v26, %v2003_v49  ;;  %v1863_v35 = vmul.f32 %v6257_v31, %v6257_v31  ;;  %vm2023_vm8 = vcmp.eq.f32.partialorder %v6252_v36, 0.0 }
 0x2fe   : > { %v1998_v15 = vsel %vm1997_vm3, %v1958_v4, %v1996_v56 }
 0x2ff   : > { %v2001_v30 = vsel %vm1999_vm4, %v2000_v1, %v1998_v15  ;;  %v2005_v33 = vmul.f32 0.5, %v2004_v52  ;;  %1903 = vadd.xlane.f32.xlu1 %v1863_v35  ;;  %v1471_v1 = vadd.f32 %v6214_v50, %v1382_v12  ;;  %v1703_v52 = vmax.f32 %v6269_v29, 0.0 }
 0x300   : > { %v6265_v16 = vadd.f32 1e-05, %v2001_v30  ;;  %v1477_v30 = vpop.f32.mrf.mxu0 }
 0x301   : > { %v2006_v42 = vsub.f32 1.5, %v2005_v33  ;;  %v1894_v49 = vpop.xlane.xlu2 %1893  ;;  %v1739_v37 = vpop.xlane.xlu1 %1738  ;;  %v1560_v18 = vadd.f32 %v6221_v44, %v1471_v1 }
 0x302   : > { %v5053_v8 = vpop.eup %5052  ;;  %5054 = vrcp.f32 %v6265_v16  ;;  %v6273_v4 = vmul.f32 %v6211_v11, %v1894_v49  ;;  %v1800_v15 = vmul.f32 %v6101_v43, %v1739_v37  ;;  %vm2411_vm9 = vweird.f32 %v6265_v16 }
 0x303   : > { %v2007_v56 = vmul.f32 %v5051_v26, %v2006_v42  ;;  %v2015_v25 = vmul.f32 %v5053_v8, %v6252_v36  ;;  %v1387_v42 = vadd.f32 %v1386_v45, %v5948_v34  ;;  %v2012_v26 = vand.u32 2147483648, %v6228_v19 }
 0x304   : > { %5056 = vrsqrt.f32 %v6273_v4  ;;  %v6282_v32 = vsub.f32 %v8578_v38, %v1800_v15  ;;  %v1473_v34 = vadd.f32 %v6234_v59, %v1384_v9  ;;  %v1389_v45 = vadd.f32 %v1388_v2, %v5955_v61 }
 0x305   : > { %v2008_v37 = vmul.f32 %v2007_v56, %v6228_v19  ;;  %v2016_v35 = vmul.f32 %v5053_v8, %v2015_v25  ;;  %v6302_v12 = vadd.f32 %v6243_v23, %v1560_v18  ;;  %v1476_v38 = vadd.f32 %v1475_v0, %v1387_v42  ;;  %v1653_v18 = vpop.f32.mrf.mxu2 }
 0x306   : > { %v1864_v54 = vmul.f32 %v6282_v32, %v6282_v32  ;;  %v1562_v59 = vadd.f32 %v6248_v53, %v1473_v34  ;;  %v8579_v0 = vmax.f32 %v6155_v3, 0.0  ;;  %v2024_v34 = vand.u32 2147483648, %v6252_v36 }
 0x307   : > { %v2010_v27 = vsel %vm2009_vm5, %v6228_v19, %v2008_v37  ;;  %v2017_v50 = vmul.f32 0.5, %v2016_v35  ;;  %1750 = vadd.xlane.f32.xlu1 %v1703_v52  ;;  %v1478_v37 = vadd.f32 %v1477_v30, %v1389_v45  ;;  %v1391_v35 = vpop.f32.mrf.mxu3  ;;  %v1704_v42 = vmax.f32 %v6302_v12, 0.0 }
 0x308   : > { %v6297_v47 = vpop.eup %5054  ;;  %v2013_v33 = vsel %vm2011_vm6, %v2012_v26, %v2010_v27  ;;  %1905 = vadd.xlane.f32.xlu2 %v1864_v54  ;;  %v6315_v26 = vadd.f32 %v1650_v51, %v1562_v59  ;;  %v1565_v54 = vadd.f32 %v1564_v41, %v1476_v38  ;;  %v1566_v27 = vpop.f32.mrf.mxu1  ;;  %v6330_v3 = vadd.f32 %v1391_v35, %v5959_v58 }
 0x309   : > { %v6304_v44 = vadd.f32 1e-05, %v2013_v33  ;;  %v2018_v49 = vsub.f32 1.5, %v2017_v50  ;;  %v1896_v19 = vpop.xlane.xlu2 %1895  ;;  %v1741_v15 = vpop.xlane.xlu1 %1740  ;;  %v2407_v56 = vmul.f32 %v6297_v47, %v6265_v16  ;;  %vm2412_vm10 = vweird.f32 %v6297_v47 }
 0x30a   : > { %v5057_v25 = vpop.eup %5056  ;;  %v6310_v61 = vmul.f32 %v6211_v11, %v1896_v19  ;;  %v1801_v2 = vmul.f32 %v6101_v43, %v1741_v15  ;;  %v1705_v33 = vmax.f32 %v6315_v26, 0.0  ;;  %v1567_v19 = vadd.f32 %v1566_v27, %v1478_v37  ;;  %vm6367_vm12 = vmor %vm2411_vm9, %vm2412_vm10 }
 0x30b   : > { %5058 = vrcp.f32 %v6304_v44  ;;  %v2019_v23 = vmul.f32 %v5053_v8, %v2018_v49  ;;  %v2027_v9 = vmul.f32 %v5057_v25, %v6273_v4  ;;  %v2408_v1 = vsub.f32 1.0, %v2407_v56 }
 0x30c   : > { %5060 = vrsqrt.f32 %v6310_v61  ;;  %v6320_v53 = vsub.f32 %v8579_v0, %v1801_v2  ;;  %v6337_v49 = vadd.f32 %v1653_v18, %v1565_v54  ;;  %v2415_v54 = vand.u32 2147483647, %v6265_v16 }
 0x30d   : > { %v2020_v8 = vmul.f32 %v2019_v23, %v6252_v36  ;;  %v2028_v50 = vmul.f32 %v5057_v25, %v2027_v9  ;;  %v2409_v45 = vmul.f32 %v6297_v47, %v2408_v1  ;;  %v2417_v18 = vand.u32 2147483648, %v6265_v16 }
 0x30e   : > { %v1865_v51 = vmul.f32 %v6320_v53, %v6320_v53  ;;  %vm2033_vm11 = vcmp.eq.f32.partialorder %v6273_v4, inf  ;;  %v2036_v27 = vand.u32 2147483648, %v6273_v4  ;;  %vm2035_vm13 = vcmp.eq.f32.partialorder %v6273_v4, 0.0 }
 0x30f   : > { %v2029_v30 = vmul.f32 0.5, %v2028_v50  ;;  %1752 = vadd.xlane.f32.xlu1 %v1704_v42  ;;  %v2022_v41 = vsel %vm2021_vm7, %v6252_v36, %v2020_v8  ;;  %v2410_v1 = vadd.f32 %v6297_v47, %v2409_v45  ;;  %v8580_v8 = vmax.f32 %v6167_v21, 0.0 }
 0x310   : > { %1907 = vadd.xlane.f32.xlu2 %v1865_v51  ;;  %v2025_v15 = vsel %vm2023_vm8, %v2024_v34, %v2022_v41  ;;  %v2432_v41 = vand.u32 2147483648, %v6304_v44  ;;  %vm2416_vm15 = vcmp.eq.f32.partialorder %v2415_v54, 8.507059e+37  ;;  %vm2426_vm0 = vweird.f32 %v6304_v44 }
 0x311   : > { %v6339_v56 = vpop.eup %5058  ;;  %v2030_v38 = vsub.f32 1.5, %v2029_v30  ;;  %v1743_v58 = vpop.xlane.xlu2 %1742  ;;  %v6343_v2 = vadd.f32 1e-05, %v2025_v15  ;;  %v2414_v30 = vsel %vm6367_vm12, %v6297_v47, %v2410_v1  ;;  %v2418_v47 = vor.u32 1.1754944e-38, %v2417_v18 }
 0x312   : > { %v1898_v59 = vpop.xlane.xlu0 %1897  ;;  %v5061_v23 = vpop.eup %5060  ;;  %v1802_v36 = vmul.f32 %v6101_v43, %v1743_v58  ;;  %v2422_v37 = vmul.f32 %v6339_v56, %v6304_v44  ;;  %vm2427_vm14 = vweird.f32 %v6339_v56  ;;  %v2433_v18 = vor.u32 1.1754944e-38, %v2432_v41 }
 0x313   : > { %v6347_v9 = vmul.f32 %v6211_v11, %v1898_v59  ;;  %v2031_v35 = vmul.f32 %v5057_v25, %v2030_v38  ;;  %v2039_v0 = vmul.f32 %v5061_v23, %v6310_v61  ;;  %v1655_v15 = vpop.f32.mrf.mxu2  ;;  %v1480_v59 = vpop.f32.mrf.mxu0  ;;  %v2419_v54 = vsel %vm2416_vm15, %v2418_v47, %v2414_v30  ;;  %vm2428_vm1 = vmor %vm2426_vm0, %vm2427_vm14 }
 0x314   : > { %v6359_v50 = vsub.f32 %v8580_v8, %v1802_v36  ;;  %v2423_v45 = vsub.f32 1.0, %v2422_v37  ;;  %v2430_v36 = vand.u32 2147483647, %v6304_v44  ;;  %v1481_v44 = vadd.f32 %v1480_v59, %v6330_v3 }
 0x315   : > { %5062 = vrsqrt.f32 %v6347_v9  ;;  %v2032_v34 = vmul.f32 %v2031_v35, %v6273_v4  ;;  %v2040_v51 = vmul.f32 %v5061_v23, %v2039_v0  ;;  %v2420_v47 = vmul.f32 %v2419_v54, %v6106_v28 }
 0x316   : > { %5064 = vrcp.f32 %v6343_v2  ;;  %v1866_v21 = vmul.f32 %v6359_v50, %v6359_v50  ;;  %v2424_v38 = vmul.f32 %v6339_v56, %v2423_v45  ;;  %vm2431_vm2 = vcmp.eq.f32.partialorder %v2430_v36, 8.507059e+37 }
 0x317   : > { %v2041_v16 = vmul.f32 0.5, %v2040_v51  ;;  %v2034_v58 = vsel %vm2033_vm11, %v6273_v4, %v2032_v34  ;;  %v6393_v34 = vadd.f32 %v1655_v15, %v1567_v19  ;;  %v8583_v19 = vmax.f32 %v6180_v40, 0.0 }
 0x318   : > { %1909 = vadd.xlane.f32.xlu0 %v1866_v21  ;;  %1754 = vadd.xlane.f32.xlu2 %v1705_v33  ;;  %v2037_v1 = vsel %vm2035_vm13, %v2036_v27, %v2034_v58  ;;  %v2425_v8 = vadd.f32 %v6339_v56, %v2424_v38  ;;  %v1706_v58 = vmax.f32 %v6337_v49, 0.0  ;;  %vm2045_vm3 = vcmp.eq.f32.partialorder %v6310_v61, inf }
 0x319   : > { %v2042_v37 = vsub.f32 1.5, %v2041_v16  ;;  %v1745_v35 = vpop.xlane.xlu2 %1744  ;;  %v6391_v51 = vadd.f32 1e-05, %v2037_v1  ;;  %v1707_v40 = vmax.f32 %v6393_v34, 0.0  ;;  %v2048_v1 = vand.u32 2147483648, %v6310_v61 }
 0x31a   : > { %v6387_v0 = vpop.xlane.xlu0 %1899  ;;  %v1803_v25 = vmul.f32 %v6101_v43, %v1745_v35  ;;  %v2429_v16 = vsel %vm2428_vm1, %v6339_v56, %v2425_v8  ;;  %vm2047_vm4 = vcmp.eq.f32.partialorder %v6310_v61, 0.0  ;;  %v1569_v8 = vpop.f32.mrf.mxu1  ;;  %vm2057_vm5 = vcmp.eq.f32.partialorder %v6347_v9, inf }
 0x31b   : > { %v5063_v4 = vpop.eup %5062  ;;  %v2043_v45 = vmul.f32 %v5061_v23, %v2042_v37  ;;  %5066 = vrcp.f32 %v6391_v51  ;;  %v2434_v41 = vsel %vm2431_vm2, %v2433_v18, %v2429_v16  ;;  %vm2441_vm7 = vweird.f32 %v6343_v2 }
 0x31c   : > { %v6398_v27 = vpop.eup %5064  ;;  %v2051_v21 = vmul.f32 %v5063_v4, %v6347_v9  ;;  %v6406_v15 = vsub.f32 %v8583_v19, %v1803_v25  ;;  %v2435_v3 = vmul.f32 %v2434_v41, %v6117_v13  ;;  %v2060_v25 = vand.u32 2147483648, %v6347_v9  ;;  %v1658_v19 = vpop.f32.mrf.mxu2 }
 0x31d   : > { %v2044_v30 = vmul.f32 %v2043_v45, %v6310_v61  ;;  %v2437_v23 = vmul.f32 %v6398_v27, %v6343_v2  ;;  %vm2442_vm6 = vweird.f32 %v6398_v27  ;;  %vm2059_vm10 = vcmp.eq.f32.partialorder %v6347_v9, 0.0 }
 0x31e   : > { %v2052_v38 = vmul.f32 %v5063_v4, %v2051_v21  ;;  %v1867_v56 = vmul.f32 %v6406_v15, %v6406_v15  ;;  %v2886_v37 = vpack.c.bf16 %v2435_v3, %v2420_v47  ;;  %v2445_v3 = vand.u32 2147483647, %v6343_v2  ;;  %vm6440_vm8 = vmor %vm2441_vm7, %vm2442_vm6 }
 0x31f   : > { %v2438_v36 = vsub.f32 1.0, %v2437_v23  ;;  %v2046_v35 = vsel %vm2045_vm3, %v6310_v61, %v2044_v30  ;;  %v1393_v23 = vpop.f32.mrf.mxu3  ;;  %vm2456_vm12 = vweird.f32 %v6391_v51 }
 0x320   : > { %v2053_v59 = vmul.f32 0.5, %v2052_v38  ;;  %1911 = vadd.xlane.f32.xlu0 %v1867_v56  ;;  %1756 = vadd.xlane.f32.xlu2 %v1706_v58  ;;  %v2049_v16 = vsel %vm2047_vm4, %v2048_v1, %v2046_v35  ;;  %v2447_v38 = vand.u32 2147483648, %v6343_v2  ;;  %v8584_v56 = vmax.f32 %v6193_v55, 0.0 }
 0x321   : > { %v5067_v28 = vpop.eup %5066  ;;  %v2439_v18 = vmul.f32 %v6398_v27, %v2438_v36  ;;  %2978 = vmatmul.bf16.vlgmr.msra.gmra.mxu3 %v2886_v37  ;;  %v6431_v41 = vadd.f32 1e-05, %v2049_v16  ;;  %v2460_v1 = vand.u32 2147483647, %v6391_v51  ;;  %v2462_v37 = vand.u32 2147483648, %v6391_v51 }
 0x322   : > { %v2054_v13 = vsub.f32 1.5, %v2053_v59  ;;  %v1747_v54 = vpop.xlane.xlu0 %1746  ;;  %v2452_v21 = vmul.f32 %v5067_v28, %v6391_v51  ;;  %vm2457_vm9 = vweird.f32 %v5067_v28  ;;  %vm2446_vm11 = vcmp.eq.f32.partialorder %v2445_v3, 8.507059e+37  ;;  %v1571_v3 = vpop.f32.mrf.mxu1 }
 0x323   : > { %v1804_v45 = vmul.f32 %v6101_v43, %v1747_v54  ;;  %v2440_v30 = vadd.f32 %v6398_v27, %v2439_v18  ;;  %5068 = vrcp.f32 %v6431_v41  ;;  %v2448_v54 = vor.u32 1.1754944e-38, %v2447_v38  ;;  %vm2458_vm13 = vmor %vm2456_vm12, %vm2457_vm9 }
 0x324   : > { %v2055_v61 = vmul.f32 %v5063_v4, %v2054_v13  ;;  %v2453_v59 = vsub.f32 1.0, %v2452_v21  ;;  %v1570_v13 = vadd.f32 %v1569_v8, %v1481_v44  ;;  %v1394_v16 = vadd.f32 %v1393_v23, %v5966_v10 }
 0x325   : > { %v6435_v47 = vsub.f32 %v8584_v56, %v1804_v45  ;;  %v2444_v2 = vsel %vm6440_vm8, %v6398_v27, %v2440_v30  ;;  %v1482_v45 = vpop.f32.mrf.mxu0  ;;  %vm2461_vm14 = vcmp.eq.f32.partialorder %v2460_v1, 8.507059e+37  ;;  %v8587_v51 = vmax.f32 %v6201_v6, 0.0 }
 0x326   : > { %v2056_v36 = vmul.f32 %v2055_v61, %v6347_v9  ;;  %v2454_v35 = vmul.f32 %v5067_v28, %v2453_v59  ;;  %v2449_v8 = vsel %vm2446_vm11, %v2448_v54, %v2444_v2  ;;  %v2463_v61 = vor.u32 1.1754944e-38, %v2462_v37  ;;  %v1660_v37 = vpop.f32.mrf.mxu2 }
 0x327   : > { %v1868_v55 = vmul.f32 %v6435_v47, %v6435_v47  ;;  %v6461_v38 = vadd.f32 %v1658_v19, %v1570_v13  ;;  %v2450_v10 = vmul.f32 %v2449_v8, %v6130_v7  ;;  %v1483_v19 = vadd.f32 %v1482_v45, %v1394_v16 }
 0x328   : > { %v2058_v18 = vsel %vm2057_vm5, %v6347_v9, %v2056_v36  ;;  %1758 = vadd.xlane.f32.xlu0 %v1707_v40  ;;  %v2455_v21 = vadd.f32 %v5067_v28, %v2454_v35  ;;  %vm2471_vm0 = vweird.f32 %v6431_v41  ;;  %v2475_v16 = vand.u32 2147483647, %v6431_v41 }
 0x329   : > { %1913 = vadd.xlane.f32.xlu1 %v1868_v55  ;;  %v2061_v27 = vsel %vm2059_vm10, %v2060_v25, %v2058_v18  ;;  %v5069_v59 = vpop.eup %5068  ;;  %v1396_v55 = vpop.f32.mrf.mxu3  ;;  %v1572_v13 = vadd.f32 %v1571_v3, %v1483_v19 }
 0x32a   : > { %v1749_v44 = vpop.xlane.xlu0 %1748  ;;  %v2379_v30 = vadd.f32 1e-05, %v2061_v27  ;;  %v2459_v56 = vsel %vm2458_vm13, %v5067_v28, %v2455_v21  ;;  %v2467_v4 = vmul.f32 %v5069_v59, %v6431_v41  ;;  %v8573_v28 = vmax.f32 %v6461_v38, 0.0 }
 0x32b   : > { %v1805_v9 = vmul.f32 %v6101_v43, %v1749_v44  ;;  %v2464_v36 = vsel %vm2461_vm14, %v2463_v61, %v2459_v56  ;;  %v6477_v54 = vadd.f32 %v1660_v37, %v1572_v13  ;;  %vm2472_vm15 = vweird.f32 %v5069_v59 }
 0x32c   : > { %5070 = vrcp.f32 %v2379_v30  ;;  %v2465_v23 = vmul.f32 %v2464_v36, %v6146_v22  ;;  %v2468_v35 = vsub.f32 1.0, %v2467_v4  ;;  %v1397_v22 = vadd.f32 %v1396_v55, %v5970_v20  ;;  %vm2473_vm1 = vmor %vm2471_vm0, %vm2472_vm15 }
 0x32d   : > { %v6466_v25 = vsub.f32 %v8587_v51, %v1805_v9  ;;  %v1485_v18 = vpop.f32.mrf.mxu0  ;;  %v2477_v27 = vand.u32 2147483648, %v6431_v41  ;;  %v8572_v61 = vmax.f32 %v6477_v54, 0.0  ;;  %v1574_v9 = vpop.f32.mrf.mxu1  ;;  %v2492_v20 = vand.u32 2147483648, %v2379_v30 }
 0x32e   : > { %v2887_v1 = vpack.c.bf16 %v2465_v23, %v2450_v10  ;;  %v2469_v7 = vmul.f32 %v5069_v59, %v2468_v35  ;;  %v1486_v8 = vadd.f32 %v1485_v18, %v1397_v22  ;;  %v2490_v36 = vand.u32 2147483647, %v2379_v30  ;;  %v1663_v51 = vpop.f32.mrf.mxu2 }
 0x32f   : > { %v1869_v2 = vmul.f32 %v6466_v25, %v6466_v25  ;;  %v2478_v10 = vor.u32 1.1754944e-38, %v2477_v27  ;;  %vm2476_vm3 = vcmp.eq.f32.partialorder %v2475_v16, 8.507059e+37  ;;  %vm2486_vm4 = vweird.f32 %v2379_v30 }
 0x330   : > { %1760 = vadd.xlane.f32.xlu0 %v8573_v28  ;;  %v2470_v45 = vadd.f32 %v5069_v59, %v2469_v7  ;;  %v1575_v23 = vadd.f32 %v1574_v9, %v1486_v8  ;;  %v2493_v19 = vor.u32 1.1754944e-38, %v2492_v20  ;;  %vm2491_vm6 = vcmp.eq.f32.partialorder %v2490_v36, 8.507059e+37 }
 0x331   : > { %1915 = vadd.xlane.f32.xlu1 %v1869_v2  ;;  %2983 = vmatmul.bf16.gmra.mxu3 %v2887_v1  ;;  %v1398_v22 = vpop.f32.mrf.mxu3 }
 0x332   : > { %v5071_v6 = vpop.eup %5070  ;;  %v2474_v56 = vsel %vm2473_vm1, %v5069_v59, %v2470_v45  ;;  %v6485_v37 = vadd.f32 %v1663_v51, %v1575_v23 }
 0x333   : > { %v2482_v21 = vmul.f32 %v5071_v6, %v2379_v30  ;;  %vm2487_vm2 = vweird.f32 %v5071_v6  ;;  %v2479_v41 = vsel %vm2476_vm3, %v2478_v10, %v2474_v56  ;;  %v1964_v30 = vmul.f32 %v6211_v11, %v6387_v0 }
 0x334   : > { %vm2488_vm5 = vmor %vm2486_vm4, %vm2487_vm2  ;;  %v2480_v1 = vmul.f32 %v2479_v41, %v6159_v5  ;;  %v8571_v35 = vmax.f32 %v6485_v37, 0.0 }
 0x335   : > { %v2483_v44 = vsub.f32 1.0, %v2482_v21  ;;  %5072 = vrsqrt.f32 %v1964_v30  ;;  %v1487_v27 = vpop.f32.mrf.mxu0  ;;  %vm2069_vm7 = vcmp.eq.f32.partialorder %v1964_v30, inf  ;;  %v2072_v20 = vand.u32 2147483648, %v1964_v30  ;;  %v1576_v10 = vpop.f32.mrf.mxu1 }
 0x336   : > { %vm2071_vm8 = vcmp.eq.f32.partialorder %v1964_v30, 0.0 }
 0x337   : > { %v2484_v3 = vmul.f32 %v5071_v6, %v2483_v44 }
 0x339   : > { %1762 = vadd.xlane.f32.xlu1 %v8572_v61  ;;  %v2485_v4 = vadd.f32 %v5071_v6, %v2484_v3  ;;  %v1401_v21 = vpop.f32.mrf.mxu3 }
 0x33b   : > { %v2489_v55 = vsel %vm2488_vm5, %v5071_v6, %v2485_v4  ;;  %v5073_v7 = vpop.eup %5072 }
 0x33c   : > { %v2494_v59 = vsel %vm2491_vm6, %v2493_v19, %v2489_v55  ;;  %v2063_v6 = vmul.f32 %v5073_v7, %v1964_v30 }
 0x33d   : > { %v2495_v2 = vmul.f32 %v2494_v59, %v6172_v63  ;;  %v1490_v3 = vpop.f32.mrf.mxu0  ;;  %v1665_v59 = vpop.f32.mrf.mxu2 }
 0x33e   : > { %v2064_v18 = vmul.f32 %v5073_v7, %v2063_v6 }
 0x33f   : > { %v2888_v13 = vpack.c.bf16 %v2495_v2, %v2480_v1 }
 0x340   : > { %v2065_v45 = vmul.f32 0.5, %v2064_v18 }
 0x341   : > { %1764 = vadd.xlane.f32.xlu1 %v8571_v35  ;;  %2988 = vmatmul.bf16.gmra.mxu3 %v2888_v13  ;;  %v1403_v16 = vpop.f32.mrf.mxu3 }
 0x342   : > { %v2066_v5 = vsub.f32 1.5, %v2065_v45  ;;  %v1579_v45 = vpop.f32.mrf.mxu1 }
 0x344   : > { %v2067_v63 = vmul.f32 %v5073_v7, %v2066_v5 }
 0x345   : > { %v1492_v55 = vpop.f32.mrf.mxu0  ;;  %v1668_v29 = vpop.f32.mrf.mxu2 }
 0x346   : > { %v2068_v44 = vmul.f32 %v2067_v63, %v1964_v30 }
 0x348   : > { %v2070_v9 = vsel %vm2069_vm7, %v1964_v30, %v2068_v44 }
 0x349   : > { %v2073_v0 = vsel %vm2071_vm8, %v2072_v20, %v2070_v9  ;;  %v1406_v36 = vpop.f32.mrf.mxu3  ;;  %v1399_v20 = vadd.f32 %v1398_v22, %v5977_v39 }
 0x34a   : > { %v6495_v51 = vadd.f32 1e-05, %v2073_v0  ;;  %v1402_v0 = vadd.f32 %v1401_v21, %v5981_v24 }
 0x34b   : > { %v1488_v21 = vadd.f32 %v1487_v27, %v1399_v20 }
 0x34c   : > { %vm2501_vm14 = vweird.f32 %v6495_v51 }
 0x34d   : > { %v1495_v24 = vpop.f32.mrf.mxu0  ;;  %v1577_v61 = vadd.f32 %v1576_v10, %v1488_v21 }
 0x351   : > { %v1408_v30 = vpop.f32.mrf.mxu3 }
 0x36a   : > { %v1902_v8 = vpop.xlane.xlu1 %1901 }
 0x36b   : > { %v1965_v56 = vmul.f32 %v6211_v11, %v1902_v8 }
 0x36d   : > { %5074 = vrsqrt.f32 %v1965_v56  ;;  %vm2081_vm9 = vcmp.eq.f32.partialorder %v1965_v56, inf  ;;  %vm2083_vm10 = vcmp.eq.f32.partialorder %v1965_v56, 0.0 }
 0x36e   : > { %5076 = vrcp.f32 %v6495_v51 }
 0x372   : > { %v1904_v23 = vpop.xlane.xlu1 %1903 }
 0x373   : > { %v5075_v4 = vpop.eup %5074  ;;  %v6498_v41 = vmul.f32 %v6211_v11, %v1904_v23 }
 0x374   : > { %v2075_v19 = vmul.f32 %v5075_v4, %v1965_v56  ;;  %v6502_v13 = vpop.eup %5076 }
 0x375   : > { %5078 = vrsqrt.f32 %v6498_v41  ;;  %vm2093_vm11 = vcmp.eq.f32.partialorder %v6498_v41, inf  ;;  %vm2095_vm12 = vcmp.eq.f32.partialorder %v6498_v41, 0.0  ;;  %vm2502_vm13 = vweird.f32 %v6502_v13 }
 0x376   : > { %v2076_v1 = vmul.f32 %v5075_v4, %v2075_v19  ;;  %v2497_v19 = vmul.f32 %v6502_v13, %v6495_v51  ;;  %vm6575_vm0 = vmor %vm2501_vm14, %vm2502_vm13 }
 0x378   : > { %v2077_v2 = vmul.f32 0.5, %v2076_v1  ;;  %v1404_v1 = vadd.f32 %v1403_v16, %v5988_v62  ;;  %v2498_v62 = vsub.f32 1.0, %v2497_v19  ;;  %v1491_v16 = vadd.f32 %v1490_v3, %v1402_v0  ;;  %v1411_v3 = vpop.f32.mrf.mxu3  ;;  %v1581_v0 = vpop.f32.mrf.mxu1 }
 0x37a   : > { %v2078_v7 = vsub.f32 1.5, %v2077_v2  ;;  %v1751_v6 = vpop.xlane.xlu1 %1750  ;;  %v1580_v27 = vadd.f32 %v1579_v45, %v1491_v16  ;;  %v2499_v10 = vmul.f32 %v6502_v13, %v2498_v62  ;;  %v2507_v45 = vand.u32 2147483648, %v6495_v51 }
 0x37b   : > { %v5079_v18 = vpop.eup %5078  ;;  %v1906_v5 = vpop.xlane.xlu2 %1905  ;;  %v1806_v63 = vmul.f32 %v6101_v43, %v1751_v6  ;;  %v2084_v6 = vand.u32 2147483648, %v1965_v56 }
 0x37c   : > { %v2079_v44 = vmul.f32 %v5075_v4, %v2078_v7  ;;  %v2087_v8 = vmul.f32 %v5079_v18, %v6498_v41  ;;  %v6507_v9 = vmul.f32 %v6211_v11, %v1906_v5  ;;  %v1407_v7 = vadd.f32 %v1406_v36, %v5992_v60 }
 0x37d   : > { %v6513_v23 = vsub.f32 %v1703_v52, %v1806_v63  ;;  %v1493_v63 = vadd.f32 %v1492_v55, %v1404_v1  ;;  %v6527_v36 = vadd.f32 %v1408_v30, %v5999_v17  ;;  %v6534_v55 = vadd.f32 %v1665_v59, %v1577_v61 }
 0x37e   : > { %v2080_v2 = vmul.f32 %v2079_v44, %v1965_v56  ;;  %v2088_v4 = vmul.f32 %v5079_v18, %v2087_v8  ;;  %5080 = vrsqrt.f32 %v6507_v9  ;;  %v6524_v60 = vadd.f32 %v1495_v24, %v1407_v7 }
 0x37f   : > { %v1870_v39 = vmul.f32 %v6513_v23, %v6513_v23  ;;  %v6542_v30 = vadd.f32 %v1668_v29, %v1580_v27  ;;  %v2096_v61 = vand.u32 2147483648, %v6498_v41  ;;  %v1711_v29 = vmax.f32 %v6534_v55, 0.0 }
 0x380   : > { %v2089_v52 = vmul.f32 0.5, %v2088_v4  ;;  %v2082_v22 = vsel %vm2081_vm9, %v1965_v56, %v2080_v2  ;;  %vm2105_vm2 = vcmp.eq.f32.partialorder %v6507_v9, inf  ;;  %vm2107_vm3 = vcmp.eq.f32.partialorder %v6507_v9, 0.0 }
 0x381   : > { %1917 = vadd.xlane.f32.xlu2 %v1870_v39  ;;  %v2085_v5 = vsel %vm2083_vm10, %v2084_v6, %v2082_v22  ;;  %v2500_v6 = vadd.f32 %v6502_v13, %v2499_v10  ;;  %v1670_v22 = vpop.f32.mrf.mxu2  ;;  %v1497_v10 = vpop.f32.mrf.mxu0 }
 0x382   : > { %v2090_v44 = vsub.f32 1.5, %v2089_v52  ;;  %v1753_v8 = vpop.xlane.xlu1 %1752  ;;  %v6522_v35 = vadd.f32 1e-05, %v2085_v5  ;;  %v1712_v52 = vmax.f32 %v6542_v30, 0.0 }
 0x383   : > { %v1908_v28 = vpop.xlane.xlu2 %1907  ;;  %v1807_v2 = vmul.f32 %v6101_v43, %v1753_v8 }
 0x384   : > { %v5081_v56 = vpop.eup %5080  ;;  %v2091_v20 = vmul.f32 %v5079_v18, %v2090_v44  ;;  %v6531_v19 = vmul.f32 %v6211_v11, %v1908_v28  ;;  %5082 = vrcp.f32 %v6522_v35  ;;  %v2505_v28 = vand.u32 2147483647, %v6495_v51 }
 0x385   : > { %v2099_v1 = vmul.f32 %v5081_v56, %v6507_v9  ;;  %v6539_v17 = vsub.f32 %v1704_v42, %v1807_v2  ;;  %v6552_v42 = vadd.f32 %v1411_v3, %v6003_v14  ;;  %v1582_v14 = vadd.f32 %v1581_v0, %v1493_v63 }
 0x386   : > { %v2092_v18 = vmul.f32 %v2091_v20, %v6498_v41  ;;  %5084 = vrsqrt.f32 %v6531_v19  ;;  %vm6564_vm15 = vcmp.eq.f32.partialorder %v2505_v28, 8.507059e+37  ;;  %v2508_v20 = vor.u32 1.1754944e-38, %v2507_v45 }
 0x387   : > { %v2100_v59 = vmul.f32 %v5081_v56, %v2099_v1  ;;  %v1871_v12 = vmul.f32 %v6539_v17, %v6539_v17  ;;  %v2504_v0 = vsel %vm6575_vm0, %v6502_v13, %v2500_v6  ;;  %v2520_v28 = vand.u32 2147483647, %v6522_v35 }
 0x388   : > { %v2094_v4 = vsel %vm2093_vm11, %v6498_v41, %v2092_v18  ;;  %v2108_v13 = vand.u32 2147483648, %v6507_v9  ;;  %vm2516_vm4 = vweird.f32 %v6522_v35  ;;  %vm2117_vm7 = vcmp.eq.f32.partialorder %v6531_v19, inf }
 0x389   : > { %v2101_v7 = vmul.f32 0.5, %v2100_v59  ;;  %1919 = vadd.xlane.f32.xlu2 %v1871_v12  ;;  %v2097_v39 = vsel %vm2095_vm12, %v2096_v61, %v2094_v4  ;;  %v2522_v61 = vand.u32 2147483648, %v6522_v35  ;;  %v1584_v59 = vpop.f32.mrf.mxu1  ;;  %vm2521_vm6 = vcmp.eq.f32.partialorder %v2520_v28, 8.507059e+37 }
 0x38a   : > { %v5083_v24 = vpop.eup %5082  ;;  %v6561_v21 = vadd.f32 1e-05, %v2097_v39  ;;  %v1585_v39 = vadd.f32 %v1584_v59, %v6524_v60  ;;  %v6617_v28 = vadd.f32 %v1670_v22, %v1582_v14  ;;  %vm2119_vm8 = vcmp.eq.f32.partialorder %v6531_v19, 0.0 }
 0x38b   : > { %v2102_v5 = vsub.f32 1.5, %v2101_v7  ;;  %v1755_v62 = vpop.xlane.xlu2 %1754  ;;  %v1910_v16 = vpop.xlane.xlu0 %1909  ;;  %v2512_v44 = vmul.f32 %v5083_v24, %v6522_v35  ;;  %vm2517_vm1 = vweird.f32 %v5083_v24  ;;  %v1498_v14 = vadd.f32 %v1497_v10, %v6527_v36 }
 0x38c   : > { %v5085_v8 = vpop.eup %5084  ;;  %v1808_v2 = vmul.f32 %v6101_v43, %v1755_v62  ;;  %v6571_v27 = vmul.f32 %v6211_v11, %v1910_v16  ;;  %5086 = vrcp.f32 %v6561_v21  ;;  %vm2518_vm5 = vmor %vm2516_vm4, %vm2517_vm1  ;;  %v2523_v62 = vor.u32 1.1754944e-38, %v2522_v61 }
 0x38d   : > { %v2103_v51 = vmul.f32 %v5081_v56, %v2102_v5  ;;  %v2111_v3 = vmul.f32 %v5085_v8, %v6531_v19  ;;  %v2513_v1 = vsub.f32 1.0, %v2512_v44  ;;  %v2509_v5 = vsel %vm6564_vm15, %v2508_v20, %v2504_v0 }
 0x38e   : > { %v6586_v18 = vsub.f32 %v1705_v33, %v1808_v2  ;;  %5088 = vrsqrt.f32 %v6571_v27  ;;  %v2510_v59 = vmul.f32 %v2509_v5, %v6185_v57  ;;  %v2120_v57 = vand.u32 2147483648, %v6531_v19 }
 0x38f   : > { %v2104_v56 = vmul.f32 %v2103_v51, %v6507_v9  ;;  %v2112_v12 = vmul.f32 %v5085_v8, %v2111_v3  ;;  %v2514_v45 = vmul.f32 %v5083_v24, %v2513_v1  ;;  %v1673_v3 = vpop.f32.mrf.mxu2  ;;  %v2535_v10 = vand.u32 2147483647, %v6561_v21 }
 0x390   : > { %v1872_v26 = vmul.f32 %v6586_v18, %v6586_v18  ;;  %vm2531_vm9 = vweird.f32 %v6561_v21  ;;  %vm2129_vm11 = vcmp.eq.f32.partialorder %v6571_v27, inf  ;;  %vm2131_vm14 = vcmp.eq.f32.partialorder %v6571_v27, 0.0 }
 0x391   : > { %v2113_v33 = vmul.f32 0.5, %v2112_v12  ;;  %1766 = vadd.xlane.f32.xlu2 %v1711_v29  ;;  %v2515_v4 = vadd.f32 %v5083_v24, %v2514_v45  ;;  %v2106_v7 = vsel %vm2105_vm2, %v6507_v9, %v2104_v56  ;;  %v6624_v45 = vadd.f32 %v1673_v3, %v1585_v39 }
 0x392   : > { %v6601_v6 = vpop.eup %5086  ;;  %1921 = vadd.xlane.f32.xlu0 %v1872_v26  ;;  %v2109_v16 = vsel %vm2107_vm3, %v2108_v13, %v2106_v7  ;;  %v1713_v39 = vmax.f32 %v6617_v28, 0.0  ;;  %vm6666_vm12 = vcmp.eq.f32.partialorder %v2535_v10, 8.507059e+37 }
 0x393   : > { %v2114_v44 = vsub.f32 1.5, %v2113_v33  ;;  %v1757_v2 = vpop.xlane.xlu2 %1756  ;;  %v1912_v63 = vpop.xlane.xlu0 %1911  ;;  %v2519_v51 = vsel %vm2518_vm5, %v5083_v24, %v2515_v4  ;;  %v2527_v35 = vmul.f32 %v6601_v6, %v6561_v21  ;;  %v6612_v20 = vadd.f32 1e-05, %v2109_v16 }
 0x394   : > { %v5089_v9 = vpop.eup %5088  ;;  %v1809_v1 = vmul.f32 %v6101_v43, %v1757_v2  ;;  %v6610_v60 = vmul.f32 %v6211_v11, %v1912_v63  ;;  %v2524_v41 = vsel %vm2521_vm6, %v2523_v62, %v2519_v51  ;;  %v1500_v33 = vpop.f32.mrf.mxu0  ;;  %v1714_v63 = vmax.f32 %v6624_v45, 0.0 }
 0x395   : > { %v2115_v0 = vmul.f32 %v5085_v8, %v2114_v44  ;;  %v2123_v61 = vmul.f32 %v5089_v9, %v6571_v27  ;;  %v2525_v24 = vmul.f32 %v2524_v41, %v6232_v48  ;;  %v2528_v12 = vsub.f32 1.0, %v2527_v35 }
 0x396   : > { %v6621_v56 = vsub.f32 %v1706_v58, %v1809_v1  ;;  %5090 = vrsqrt.f32 %v6610_v60  ;;  %v6639_v7 = vadd.f32 %v1500_v33, %v6552_v42  ;;  %vm2532_vm10 = vweird.f32 %v6601_v6 }
 0x397   : > { %v2116_v13 = vmul.f32 %v2115_v0, %v6531_v19  ;;  %v2124_v8 = vmul.f32 %v5089_v9, %v2123_v61  ;;  %v2889_v26 = vpack.c.bf16 %v2525_v24, %v2510_v59  ;;  %5092 = vrcp.f32 %v6612_v20  ;;  %v1586_v24 = vpop.f32.mrf.mxu1  ;;  %vm6673_vm13 = vmor %vm2531_vm9, %vm2532_vm10  ;;  %v1675_v33 = vpop.f32.mrf.mxu2 }
 0x398   : > { %v1873_v48 = vmul.f32 %v6621_v56, %v6621_v56  ;;  %v2529_v22 = vmul.f32 %v6601_v6, %v2528_v12  ;;  %v2132_v61 = vand.u32 2147483648, %v6571_v27  ;;  %vm2546_vm0 = vweird.f32 %v6612_v20 }
 0x399   : > { %v2125_v49 = vmul.f32 0.5, %v2124_v8  ;;  %1768 = vadd.xlane.f32.xlu2 %v1712_v52  ;;  %2993 = vmatmul.bf16.gmra.mxu3 %v2889_v26  ;;  %v2118_v58 = vsel %vm2117_vm7, %v6531_v19, %v2116_v13  ;;  %vm2141_vm3 = vcmp.eq.f32.partialorder %v6610_v60, inf  ;;  %v2144_v13 = vand.u32 2147483648, %v6610_v60 }
 0x39a   : > { %1923 = vadd.xlane.f32.xlu0 %v1873_v48  ;;  %v2121_v4 = vsel %vm2119_vm8, %v2120_v57, %v2118_v58  ;;  %v2530_v1 = vadd.f32 %v6601_v6, %v2529_v22  ;;  %v2552_v48 = vand.u32 2147483648, %v6612_v20  ;;  %vm2143_vm4 = vcmp.eq.f32.partialorder %v6610_v60, 0.0 }
 0x39b   : > { %v2126_v5 = vsub.f32 1.5, %v2125_v49  ;;  %v1759_v16 = vpop.xlane.xlu0 %1758  ;;  %v6642_v44 = vadd.f32 1e-05, %v2121_v4 }
 0x39c   : > { %v1914_v62 = vpop.xlane.xlu1 %1913  ;;  %v5091_v2 = vpop.eup %5090  ;;  %v1810_v36 = vmul.f32 %v6101_v43, %v1759_v16  ;;  %v2534_v57 = vsel %vm6673_vm13, %v6601_v6, %v2530_v1 }
 0x39d   : > { %v6646_v19 = vmul.f32 %v6211_v11, %v1914_v62  ;;  %v2127_v51 = vmul.f32 %v5089_v9, %v2126_v5  ;;  %v2135_v42 = vmul.f32 %v5091_v2, %v6610_v60  ;;  %5094 = vrcp.f32 %v6642_v44  ;;  %v5093_v35 = vpop.eup %5092 }
 0x39e   : > { %v6656_v3 = vsub.f32 %v1707_v40, %v1810_v36  ;;  %v2542_v0 = vmul.f32 %v5093_v35, %v6612_v20  ;;  %v2537_v40 = vand.u32 2147483648, %v6561_v21  ;;  %v2550_v21 = vand.u32 2147483647, %v6612_v20 }
 0x39f   : > { %5096 = vrsqrt.f32 %v6646_v19  ;;  %v2128_v41 = vmul.f32 %v2127_v51, %v6571_v27  ;;  %v2136_v9 = vmul.f32 %v5091_v2, %v2135_v42  ;;  %vm2547_vm15 = vweird.f32 %v5093_v35 }
 0x3a0   : > { %v1874_v59 = vmul.f32 %v6656_v3, %v6656_v3  ;;  %v2543_v8 = vsub.f32 1.0, %v2542_v0  ;;  %v2538_v10 = vor.u32 1.1754944e-38, %v2537_v40  ;;  %vm2548_vm1 = vmor %vm2546_vm0, %vm2547_vm15  ;;  %vm2551_vm2 = vcmp.eq.f32.partialorder %v2550_v21, 8.507059e+37 }
 0x3a1   : > { %v2137_v12 = vmul.f32 0.5, %v2136_v9  ;;  %v2130_v26 = vsel %vm2129_vm11, %v6571_v27, %v2128_v41  ;;  %v1587_v41 = vadd.f32 %v1586_v24, %v1498_v14  ;;  %v2553_v0 = vor.u32 1.1754944e-38, %v2552_v48 }
 0x3a2   : > { %1770 = vadd.xlane.f32.xlu0 %v1713_v39  ;;  %1925 = vadd.xlane.f32.xlu1 %v1874_v59  ;;  %v2133_v49 = vsel %vm2131_vm14, %v2132_v61, %v2130_v26  ;;  %v2544_v5 = vmul.f32 %v5093_v35, %v2543_v8  ;;  %v2539_v9 = vsel %vm6666_vm12, %v2538_v10, %v2534_v57  ;;  %v1413_v61 = vpop.f32.mrf.mxu3  ;;  %v8596_v40 = vmax.f32 %v6461_v38, 0.0 }
 0x3a3   : > { %v6686_v58 = vpop.eup %5094  ;;  %v2138_v22 = vsub.f32 1.5, %v2137_v12  ;;  %v1761_v27 = vpop.xlane.xlu0 %1760  ;;  %v6690_v62 = vadd.f32 1e-05, %v2133_v49  ;;  %v2540_v8 = vmul.f32 %v2539_v9, %v6257_v31  ;;  %v6712_v21 = vadd.f32 %v1413_v61, %v6010_v46 }
 0x3a4   : > { %v6688_v4 = vpop.xlane.xlu1 %1915  ;;  %v1811_v36 = vmul.f32 %v6101_v43, %v1761_v27  ;;  %v2557_v6 = vmul.f32 %v6686_v58, %v6642_v44  ;;  %v2545_v1 = vadd.f32 %v5093_v35, %v2544_v5  ;;  %v6719_v49 = vadd.f32 %v1675_v33, %v1587_v41  ;;  %v1589_v31 = vpop.f32.mrf.mxu1 }
 0x3a5   : > { %v5097_v16 = vpop.eup %5096  ;;  %v2139_v51 = vmul.f32 %v5091_v2, %v2138_v22  ;;  %5098 = vrcp.f32 %v6690_v62  ;;  %vm2153_vm5 = vcmp.eq.f32.partialorder %v6646_v19, inf  ;;  %v2156_v46 = vand.u32 2147483648, %v6646_v19 }
 0x3a6   : > { %v2147_v42 = vmul.f32 %v5097_v16, %v6646_v19  ;;  %v6703_v12 = vsub.f32 %v8596_v40, %v1811_v36  ;;  %v2549_v2 = vsel %vm2548_vm1, %v5093_v35, %v2545_v1  ;;  %v2558_v24 = vsub.f32 1.0, %v2557_v6  ;;  %v1678_v6 = vpop.f32.mrf.mxu2 }
 0x3a7   : > { %v2140_v59 = vmul.f32 %v2139_v51, %v6610_v60  ;;  %v2554_v14 = vsel %vm2551_vm2, %v2553_v0, %v2549_v2  ;;  %vm2562_vm6 = vweird.f32 %v6686_v58  ;;  %vm2561_vm7 = vweird.f32 %v6642_v44 }
 0x3a8   : > { %v2148_v20 = vmul.f32 %v5097_v16, %v2147_v42  ;;  %v2555_v26 = vmul.f32 %v2554_v14, %v6282_v32  ;;  %v1875_v57 = vmul.f32 %v6703_v12, %v6703_v12  ;;  %v2559_v38 = vmul.f32 %v6686_v58, %v2558_v24  ;;  %vm6741_vm8 = vmor %vm2561_vm7, %vm2562_vm6  ;;  %v1502_v14 = vpop.f32.mrf.mxu0 }
 0x3a9   : > { %v2142_v35 = vsel %vm2141_vm3, %v6610_v60, %v2140_v59  ;;  %v8597_v42 = vmax.f32 %v6477_v54, 0.0  ;;  %v2567_v41 = vand.u32 2147483648, %v6642_v44  ;;  %v2582_v61 = vand.u32 2147483648, %v6690_v62 }
 0x3aa   : > { %v2149_v34 = vmul.f32 0.5, %v2148_v20  ;;  %1772 = vadd.xlane.f32.xlu0 %v1714_v63  ;;  %v2890_v22 = vpack.c.bf16 %v2555_v26, %v2540_v8  ;;  %1927 = vadd.xlane.f32.xlu1 %v1875_v57  ;;  %v2145_v5 = vsel %vm2143_vm4, %v2144_v13, %v2142_v35  ;;  %v2560_v60 = vadd.f32 %v6686_v58, %v2559_v38 }
 0x3ab   : > { %v5099_v48 = vpop.eup %5098  ;;  %v6727_v33 = vadd.f32 1e-05, %v2145_v5  ;;  %v2580_v40 = vand.u32 2147483647, %v6690_v62  ;;  %v1715_v2 = vmax.f32 %v6719_v49, 0.0  ;;  %vm2155_vm10 = vcmp.eq.f32.partialorder %v6646_v19, 0.0 }
 0x3ac   : > { %v2150_v32 = vsub.f32 1.5, %v2149_v34  ;;  %v1763_v27 = vpop.xlane.xlu1 %1762  ;;  %v2572_v10 = vmul.f32 %v5099_v48, %v6690_v62  ;;  %2998 = vmatmul.bf16.gmra.mxu3 %v2890_v22  ;;  %vm2577_vm9 = vweird.f32 %v5099_v48  ;;  %v2568_v24 = vor.u32 1.1754944e-38, %v2567_v41 }
 0x3ad   : > { %v1812_v36 = vmul.f32 %v6101_v43, %v1763_v27  ;;  %5100 = vrcp.f32 %v6727_v33  ;;  %vm2576_vm11 = vweird.f32 %v6690_v62  ;;  %v1590_v26 = vadd.f32 %v1589_v31, %v6639_v7  ;;  %v1591_v62 = vpop.f32.mrf.mxu1 }
 0x3ae   : > { %v2151_v51 = vmul.f32 %v5097_v16, %v2150_v32  ;;  %v2573_v9 = vsub.f32 1.0, %v2572_v10  ;;  %v2565_v16 = vand.u32 2147483647, %v6642_v44  ;;  %v2564_v44 = vsel %vm6741_vm8, %v6686_v58, %v2560_v60  ;;  %vm2578_vm13 = vmor %vm2576_vm11, %vm2577_vm9  ;;  %v1680_v10 = vpop.f32.mrf.mxu2  ;;  %v1416_v60 = vpop.f32.mrf.mxu3 }
 0x3af   : > { %v6731_v1 = vsub.f32 %v8597_v42, %v1812_v36  ;;  %v2583_v58 = vor.u32 1.1754944e-38, %v2582_v61  ;;  %vm2581_vm14 = vcmp.eq.f32.partialorder %v2580_v40, 8.507059e+37  ;;  %v6760_v27 = vadd.f32 %v1678_v6, %v1590_v26 }
 0x3b0   : > { %v2152_v0 = vmul.f32 %v2151_v51, %v6646_v19  ;;  %v2574_v20 = vmul.f32 %v5099_v48, %v2573_v9  ;;  %vm2566_vm12 = vcmp.eq.f32.partialorder %v2565_v16, 8.507059e+37  ;;  %v8600_v7 = vmax.f32 %v6485_v37, 0.0 }
 0x3b1   : > { %v1876_v59 = vmul.f32 %v6731_v1, %v6731_v1  ;;  %v2569_v35 = vsel %vm2566_vm12, %v2568_v24, %v2564_v44  ;;  %v1716_v41 = vmax.f32 %v6760_v27, 0.0  ;;  %vm2591_vm0 = vweird.f32 %v6727_v33 }
 0x3b2   : > { %v2154_v13 = vsel %vm2153_vm5, %v6646_v19, %v2152_v0  ;;  %v2575_v34 = vadd.f32 %v5099_v48, %v2574_v20  ;;  %1774 = vadd.xlane.f32.xlu1 %v1715_v2  ;;  %v2570_v51 = vmul.f32 %v2569_v35, %v6320_v53  ;;  %v1505_v53 = vpop.f32.mrf.mxu0  ;;  %v2597_v20 = vand.u32 2147483648, %v6727_v33 }
 0x3b3   : > { %1929 = vadd.xlane.f32.xlu2 %v1876_v59  ;;  %v2157_v8 = vsel %vm2155_vm10, %v2156_v46, %v2154_v13  ;;  %v5101_v22 = vpop.eup %5100 }
 0x3b4   : > { %v1765_v57 = vpop.xlane.xlu1 %1764  ;;  %v2387_v38 = vadd.f32 1e-05, %v2157_v8  ;;  %v2579_v32 = vsel %vm2578_vm13, %v5099_v48, %v2575_v34  ;;  %v2587_v36 = vmul.f32 %v5101_v22, %v6727_v33  ;;  %v1503_v48 = vadd.f32 %v1502_v14, %v6712_v21 }
 0x3b5   : > { %v1813_v19 = vmul.f32 %v6101_v43, %v1765_v57  ;;  %v2584_v5 = vsel %vm2581_vm14, %v2583_v58, %v2579_v32  ;;  %vm2592_vm15 = vweird.f32 %v5101_v22  ;;  %v1594_v13 = vpop.f32.mrf.mxu1  ;;  %v2595_v14 = vand.u32 2147483647, %v6727_v33 }
 0x3b6   : > { %5102 = vrcp.f32 %v2387_v38  ;;  %v2585_v46 = vmul.f32 %v2584_v5, %v6359_v50  ;;  %v2588_v42 = vsub.f32 1.0, %v2587_v36  ;;  %v1592_v37 = vadd.f32 %v1591_v62, %v1503_v48  ;;  %v8601_v50 = vld [vmem:[#allocation5_spill] sm:$0xff]  ;;  %vm6782_vm1 = vmor %vm2591_vm0, %vm2592_vm15  ;;  %v1683_v58 = vpop.f32.mrf.mxu2 }
 0x3b7   : > { %v6764_v31 = vsub.f32 %v8600_v7, %v1813_v19  ;;  %v1417_v61 = vadd.f32 %v1416_v60, %v8601_v50  ;;  %v2612_v24 = vand.u32 2147483648, %v2387_v38  ;;  %v2610_v57 = vand.u32 2147483647, %v2387_v38 }
 0x3b8   : > { %v2891_v9 = vpack.c.bf16 %v2585_v46, %v2570_v51  ;;  %v2589_v0 = vmul.f32 %v5101_v22, %v2588_v42  ;;  %v6776_v59 = vadd.f32 %v1680_v10, %v1592_v37  ;;  %v2598_v32 = vor.u32 1.1754944e-38, %v2597_v20 }
 0x3b9   : > { %v1877_v6 = vmul.f32 %v6764_v31, %v6764_v31  ;;  %v1506_v44 = vadd.f32 %v1505_v53, %v1417_v61  ;;  %vm2606_vm3 = vweird.f32 %v2387_v38  ;;  %vm2596_vm4 = vcmp.eq.f32.partialorder %v2595_v14, 8.507059e+37 }
 0x3ba   : > { %1776 = vadd.xlane.f32.xlu1 %v1716_v41  ;;  %v2590_v54 = vadd.f32 %v5101_v22, %v2589_v0  ;;  %v1717_v34 = vmax.f32 %v6776_v59, 0.0  ;;  %v2613_v62 = vor.u32 1.1754944e-38, %v2612_v24  ;;  %vm2611_vm6 = vcmp.eq.f32.partialorder %v2610_v57, 8.507059e+37  ;;  %v1418_v57 = vpop.f32.mrf.mxu3 }
 0x3bb   : > { %1931 = vadd.xlane.f32.xlu2 %v1877_v6  ;;  %v1595_v35 = vadd.f32 %v1594_v13, %v1506_v44 }
 0x3bc   : > { %v5103_v16 = vpop.eup %5102  ;;  %3003 = vmatmul.bf16.gmra.mxu3 %v2891_v9  ;;  %v2594_v19 = vsel %vm6782_vm1, %v5101_v22, %v2590_v54 }
 0x3bd   : > { %v2602_v21 = vmul.f32 %v5103_v16, %v2387_v38  ;;  %vm2607_vm2 = vweird.f32 %v5103_v16  ;;  %v6790_v5 = vadd.f32 %v1683_v58, %v1595_v35  ;;  %v2599_v7 = vsel %vm2596_vm4, %v2598_v32, %v2594_v19  ;;  %v1596_v55 = vpop.f32.mrf.mxu1 }
 0x3be   : > { %vm2608_vm5 = vmor %vm2606_vm3, %vm2607_vm2  ;;  %v2600_v22 = vmul.f32 %v2599_v7, %v6406_v15  ;;  %v1972_v38 = vmul.f32 %v6211_v11, %v6688_v4 }
 0x3bf   : > { %v2603_v40 = vsub.f32 1.0, %v2602_v21  ;;  %v1718_v51 = vmax.f32 %v6790_v5, 0.0 }
 0x3c0   : > { %5104 = vrsqrt.f32 %v1972_v38  ;;  %vm2165_vm7 = vcmp.eq.f32.partialorder %v1972_v38, inf  ;;  %v2168_v50 = vand.u32 2147483648, %v1972_v38  ;;  %vm2167_vm8 = vcmp.eq.f32.partialorder %v1972_v38, 0.0 }
 0x3c1   : > { %v2604_v26 = vmul.f32 %v5103_v16, %v2603_v40 }
 0x3c3   : > { %1778 = vadd.xlane.f32.xlu2 %v1717_v34  ;;  %v2605_v33 = vadd.f32 %v5103_v16, %v2604_v26 }
 0x3c5   : > { %v2609_v46 = vsel %vm2608_vm5, %v5103_v16, %v2605_v33 }
 0x3c6   : > { %v2614_v36 = vsel %vm2611_vm6, %v2613_v62, %v2609_v46  ;;  %v5105_v60 = vpop.eup %5104  ;;  %v8604_v46 = vld [vmem:[#allocation6_spill] sm:$0xff] }
 0x3c7   : > { %v2615_v10 = vmul.f32 %v2614_v36, %v6435_v47  ;;  %v2159_v6 = vmul.f32 %v5105_v60, %v1972_v38  ;;  %v1419_v36 = vadd.f32 %v1418_v57, %v8604_v46 }
 0x3c9   : > { %v2892_v48 = vpack.c.bf16 %v2615_v10, %v2600_v22  ;;  %v2160_v42 = vmul.f32 %v5105_v60, %v2159_v6 }
 0x3cb   : > { %1780 = vadd.xlane.f32.xlu2 %v1718_v51  ;;  %v2161_v9 = vmul.f32 0.5, %v2160_v42 }
 0x3cc   : > { %3008 = vmatmul.bf16.gmra.mxu3 %v2892_v48  ;;  %v1507_v48 = vpop.f32.mrf.mxu0 }
 0x3cd   : > { %v2162_v37 = vsub.f32 1.5, %v2161_v9 }
 0x3cf   : > { %v2163_v0 = vmul.f32 %v5105_v60, %v2162_v37  ;;  %v1508_v37 = vadd.f32 %v1507_v48, %v1419_v36 }
 0x3d1   : > { %v2164_v47 = vmul.f32 %v2163_v0, %v1972_v38 }
 0x3d3   : > { %v2166_v16 = vsel %vm2165_vm7, %v1972_v38, %v2164_v47 }
 0x3d4   : > { %v2169_v53 = vsel %vm2167_vm8, %v2168_v50, %v2166_v16  ;;  %v1685_v16 = vpop.f32.mrf.mxu2 }
 0x3d5   : > { %v6800_v21 = vadd.f32 1e-05, %v2169_v53 }
 0x3d7   : > { %vm2621_vm14 = vweird.f32 %v6800_v21 }
 0x3f4   : > { %v1918_v15 = vpop.xlane.xlu2 %1917 }
 0x3f5   : > { %v1973_v61 = vmul.f32 %v6211_v11, %v1918_v15 }
 0x3f7   : > { %5106 = vrsqrt.f32 %v1973_v61  ;;  %vm2177_vm9 = vcmp.eq.f32.partialorder %v1973_v61, inf  ;;  %v2180_v38 = vand.u32 2147483648, %v1973_v61  ;;  %vm2179_vm10 = vcmp.eq.f32.partialorder %v1973_v61, 0.0 }
 0x3f8   : > { %5108 = vrcp.f32 %v6800_v21 }
 0x3fc   : > { %v1920_v4 = vpop.xlane.xlu2 %1919 }
 0x3fd   : > { %v5107_v54 = vpop.eup %5106  ;;  %v6803_v20 = vmul.f32 %v6211_v11, %v1920_v4 }
 0x3fe   : > { %v2171_v40 = vmul.f32 %v5107_v54, %v1973_v61  ;;  %v6807_v14 = vpop.eup %5108 }
 0x3ff   : > { %5110 = vrsqrt.f32 %v6803_v20  ;;  %v2617_v7 = vmul.f32 %v6807_v14, %v6800_v21  ;;  %vm2189_vm11 = vcmp.eq.f32.partialorder %v6803_v20, inf  ;;  %vm2191_vm12 = vcmp.eq.f32.partialorder %v6803_v20, 0.0 }
 0x400   : > { %v2172_v44 = vmul.f32 %v5107_v54, %v2171_v40  ;;  %v6827_v40 = vpop.f32.mrf.mxu3  ;;  %vm2622_vm13 = vweird.f32 %v6807_v14 }
 0x401   : > { %v2618_v9 = vsub.f32 1.0, %v2617_v7  ;;  %vm6866_vm0 = vmor %vm2621_vm14, %vm2622_vm13 }
 0x402   : > { %v2173_v13 = vmul.f32 0.5, %v2172_v44 }
 0x404   : > { %v2174_v24 = vsub.f32 1.5, %v2173_v13  ;;  %v1767_v8 = vpop.xlane.xlu2 %1766 }
 0x405   : > { %v5111_v26 = vpop.eup %5110  ;;  %v1814_v58 = vmul.f32 %v6101_v43, %v1767_v8  ;;  %v1922_v19 = vpop.xlane.xlu0 %1921  ;;  %v2619_v8 = vmul.f32 %v6807_v14, %v2618_v9 }
 0x406   : > { %v2175_v35 = vmul.f32 %v5107_v54, %v2174_v24  ;;  %v2183_v32 = vmul.f32 %v5111_v26, %v6803_v20  ;;  %v6812_v33 = vmul.f32 %v6211_v11, %v1922_v19  ;;  %v1597_v54 = vadd.f32 %v1596_v55, %v1508_v37 }
 0x407   : > { %v6816_v62 = vsub.f32 %v1711_v29, %v1814_v58  ;;  %v2192_v19 = vand.u32 2147483648, %v6803_v20  ;;  %v2620_v46 = vadd.f32 %v6807_v14, %v2619_v8 }
 0x408   : > { %v2176_v10 = vmul.f32 %v2175_v35, %v1973_v61  ;;  %v2184_v22 = vmul.f32 %v5111_v26, %v2183_v32  ;;  %5112 = vrsqrt.f32 %v6812_v33  ;;  %v6839_v57 = vadd.f32 %v1685_v16, %v1597_v54 }
 0x409   : > { %v1878_v60 = vmul.f32 %v6816_v62, %v6816_v62  ;;  %v2624_v16 = vsel %vm6866_vm0, %v6807_v14, %v2620_v46  ;;  %vm2201_vm2 = vcmp.eq.f32.partialorder %v6812_v33, inf  ;;  %v2204_v14 = vand.u32 2147483648, %v6812_v33 }
 0x40a   : > { %v2185_v6 = vmul.f32 0.5, %v2184_v22  ;;  %v2178_v42 = vsel %vm2177_vm9, %v1973_v61, %v2176_v10  ;;  %v1719_v22 = vmax.f32 %v6839_v57, 0.0  ;;  %vm2203_vm3 = vcmp.eq.f32.partialorder %v6812_v33, 0.0 }
 0x40b   : > { %1933 = vadd.xlane.f32.xlu0 %v1878_v60  ;;  %v2181_v29 = vsel %vm2179_vm10, %v2180_v38, %v2178_v42 }
 0x40c   : > { %v2186_v0 = vsub.f32 1.5, %v2185_v6  ;;  %v1769_v47 = vpop.xlane.xlu2 %1768  ;;  %v6824_v15 = vadd.f32 1e-05, %v2181_v29 }
 0x40d   : > { %v1815_v50 = vmul.f32 %v6101_v43, %v1769_v47  ;;  %v1924_v53 = vpop.xlane.xlu0 %1923 }
 0x40e   : > { %v5113_v4 = vpop.eup %5112  ;;  %v2187_v44 = vmul.f32 %v5111_v26, %v2186_v0  ;;  %v6830_v61 = vmul.f32 %v6211_v11, %v1924_v53  ;;  %5114 = vrcp.f32 %v6824_v15  ;;  %v2625_v26 = vand.u32 2147483647, %v6800_v21  ;;  %v2981_v53 = vpop.f32.mrf.mxu3 }
 0x40f   : > { %v2195_v13 = vmul.f32 %v5113_v4, %v6812_v33  ;;  %v6836_v24 = vsub.f32 %v1712_v52, %v1815_v50  ;;  %v2627_v52 = vand.u32 2147483648, %v6800_v21  ;;  %vm2636_vm4 = vweird.f32 %v6824_v15 }
 0x410   : > { %v2188_v58 = vmul.f32 %v2187_v44, %v6803_v20  ;;  %5116 = vrsqrt.f32 %v6830_v61  ;;  %vm6857_vm15 = vcmp.eq.f32.partialorder %v2625_v26, 8.507059e+37  ;;  %v2640_v44 = vand.u32 2147483647, %v6824_v15 }
 0x411   : > { %v2196_v35 = vmul.f32 %v5113_v4, %v2195_v13  ;;  %v1879_v30 = vmul.f32 %v6836_v24, %v6836_v24  ;;  %v2628_v0 = vor.u32 1.1754944e-38, %v2627_v52  ;;  %v2642_v13 = vand.u32 2147483648, %v6824_v15 }
 0x412   : > { %v2190_v32 = vsel %vm2189_vm11, %v6803_v20, %v2188_v58  ;;  %vm2641_vm6 = vcmp.eq.f32.partialorder %v2640_v44, 8.507059e+37  ;;  %vm2213_vm7 = vcmp.eq.f32.partialorder %v6830_v61, inf  ;;  %vm2215_vm9 = vcmp.eq.f32.partialorder %v6830_v61, 0.0 }
 0x413   : > { %v2197_v7 = vmul.f32 0.5, %v2196_v35  ;;  %1935 = vadd.xlane.f32.xlu0 %v1879_v30  ;;  %v2193_v36 = vsel %vm2191_vm12, %v2192_v19, %v2190_v32  ;;  %v2629_v30 = vsel %vm6857_vm15, %v2628_v0, %v2624_v16  ;;  %v2643_v52 = vor.u32 1.1754944e-38, %v2642_v13 }
 0x414   : > { %v5115_v10 = vpop.eup %5114  ;;  %v6854_v48 = vadd.f32 1e-05, %v2193_v36  ;;  %v2630_v0 = vmul.f32 %v2629_v30, %v6466_v25  ;;  %vm3091_vm12 = vcmask 523264  }
 0x415   : > { %v2198_v38 = vsub.f32 1.5, %v2197_v7  ;;  %v1926_v60 = vpop.xlane.xlu1 %1925  ;;  %v1771_v6 = vpop.xlane.xlu0 %1770  ;;  %v2632_v20 = vmul.f32 %v5115_v10, %v6824_v15  ;;  %vm2637_vm1 = vweird.f32 %v5115_v10 }
 0x416   : > { %v5117_v55 = vpop.eup %5116  ;;  %v6863_v29 = vmul.f32 %v6211_v11, %v1926_v60  ;;  %v1816_v9 = vmul.f32 %v6101_v43, %v1771_v6  ;;  %5118 = vrcp.f32 %v6854_v48  ;;  %vm2638_vm5 = vmor %vm2636_vm4, %vm2637_vm1  ;;  %v6919_v45 = vpop.f32.mrf.mxu3  ;;  %vm2651_vm8 = vweird.f32 %v6854_v48 }
 0x417   : > { %v2199_v21 = vmul.f32 %v5113_v4, %v2198_v38  ;;  %v2207_v47 = vmul.f32 %v5117_v55, %v6830_v61  ;;  %v2633_v50 = vsub.f32 1.0, %v2632_v20 }
 0x418   : > { %5120 = vrsqrt.f32 %v6863_v29  ;;  %v6878_v54 = vsub.f32 %v1713_v39, %v1816_v9  ;;  %vm2225_vm10 = vcmp.eq.f32.partialorder %v6863_v29, inf  ;;  %vm2227_vm13 = vcmp.eq.f32.partialorder %v6863_v29, 0.0 }
 0x419   : > { %v2200_v4 = vmul.f32 %v2199_v21, %v6812_v33  ;;  %v2208_v8 = vmul.f32 %v5117_v55, %v2207_v47  ;;  %v2634_v58 = vmul.f32 %v5115_v10, %v2633_v50  ;;  %v6915_v47 = vld [vmem:[%s8561_s4] ss:$0 sm:$0xff] }
 0x41a   : > { %v1880_v26 = vmul.f32 %v6878_v54, %v6878_v54  ;;  %v6927_v13 = vadd.f32 %v6915_v47, %v6827_v40 }
 0x41b   : > { %v2209_v28 = vmul.f32 0.5, %v2208_v8  ;;  %1782 = vadd.xlane.f32.xlu0 %v1719_v22  ;;  %v2635_v39 = vadd.f32 %v5115_v10, %v2634_v58  ;;  %v2202_v19 = vsel %vm2201_vm2, %v6812_v33, %v2200_v4  ;;  %v2216_v4 = vand.u32 2147483648, %v6830_v61 }
 0x41c   : > { %v6892_v35 = vpop.eup %5118  ;;  %1937 = vadd.xlane.f32.xlu1 %v1880_v26  ;;  %v2205_v32 = vsel %vm2203_vm3, %v2204_v14, %v2202_v19 }
 0x41d   : > { %v2210_v7 = vsub.f32 1.5, %v2209_v28  ;;  %v1773_v46 = vpop.xlane.xlu0 %1772  ;;  %v2639_v36 = vsel %vm2638_vm5, %v5115_v10, %v2635_v39  ;;  %v6896_v38 = vadd.f32 1e-05, %v2205_v32  ;;  %v1928_v6 = vpop.xlane.xlu1 %1927  ;;  %v2647_v20 = vmul.f32 %v6892_v35, %v6854_v48 }
 0x41e   : > { %v5121_v60 = vpop.eup %5120  ;;  %v1817_v15 = vmul.f32 %v6101_v43, %v1773_v46  ;;  %v2644_v33 = vsel %vm2641_vm6, %v2643_v52, %v2639_v36  ;;  %v6903_v37 = vmul.f32 %v6211_v11, %v1928_v6  ;;  %v6934_v28 = vadd.f32 %v6915_v47, %v2981_v53 }
 0x41f   : > { %v2211_v9 = vmul.f32 %v5117_v55, %v2210_v7  ;;  %v2219_v42 = vmul.f32 %v5121_v60, %v6863_v29  ;;  %v2645_v21 = vmul.f32 %v2644_v33, %v6513_v23  ;;  %5122 = vrcp.f32 %v6896_v38 }
 0x420   : > { %v6907_v10 = vsub.f32 %v1714_v63, %v1817_v15  ;;  %5124 = vrsqrt.f32 %v6903_v37  ;;  %v2648_v50 = vsub.f32 1.0, %v2647_v20  ;;  %v2655_v32 = vand.u32 2147483647, %v6854_v48 }
 0x421   : > { %v2212_v55 = vmul.f32 %v2211_v9, %v6830_v61  ;;  %v2220_v16 = vmul.f32 %v5121_v60, %v2219_v42  ;;  %v2893_v63 = vpack.c.bf16 %v2645_v21, %v2630_v0  ;;  %vm2652_vm11 = vweird.f32 %v6892_v35 }
 0x422   : > { %v1881_v25 = vmul.f32 %v6907_v10, %v6907_v10  ;;  %v2649_v14 = vmul.f32 %v6892_v35, %v2648_v50  ;;  %v2228_v6 = vand.u32 2147483648, %v6863_v29  ;;  %v2657_v33 = vand.u32 2147483648, %v6854_v48  ;;  %vm6969_vm14 = vmor %vm2651_vm8, %vm2652_vm11 }
 0x423   : > { %v2221_v23 = vmul.f32 0.5, %v2220_v16  ;;  %3013 = vmatmul.bf16.gmra.mxu3 %v2893_v63  ;;  %v2214_v44 = vsel %vm2213_vm7, %v6830_v61, %v2212_v55  ;;  %v2672_v55 = vand.u32 2147483648, %v6896_v38  ;;  %v2670_v48 = vand.u32 2147483647, %v6896_v38 }
 0x424   : > { %1939 = vadd.xlane.f32.xlu1 %v1881_v25  ;;  %v2217_v7 = vsel %vm2215_vm9, %v2216_v4, %v2214_v44  ;;  %v2650_v36 = vadd.f32 %v6892_v35, %v2649_v14  ;;  %vm2656_vm0 = vcmp.eq.f32.partialorder %v2655_v32, 8.507059e+37  ;;  %v2658_v4 = vor.u32 1.1754944e-38, %v2657_v33 }
 0x425   : > { %v2222_v8 = vsub.f32 1.5, %v2221_v23  ;;  %v6931_v26 = vpop.eup %5122  ;;  %v1775_v19 = vpop.xlane.xlu1 %1774  ;;  %v6957_v20 = vadd.f32 1e-05, %v2217_v7  ;;  %vm2666_vm1 = vweird.f32 %v6896_v38  ;;  %v2673_v7 = vor.u32 1.1754944e-38, %v2672_v55 }
 0x426   : > { %v1930_v58 = vpop.xlane.xlu2 %1929  ;;  %v5125_v40 = vpop.eup %5124  ;;  %v1818_v52 = vmul.f32 %v6101_v43, %v1775_v19  ;;  %vm2667_vm15 = vweird.f32 %v6931_v26  ;;  %vm2671_vm3 = vcmp.eq.f32.partialorder %v2670_v48, 8.507059e+37  ;;  %vm2237_vm4 = vcmp.eq.f32.partialorder %v6903_v37, inf }
 0x427   : > { %v6937_v39 = vmul.f32 %v6211_v11, %v1930_v58  ;;  %v2223_v30 = vmul.f32 %v5121_v60, %v2222_v8  ;;  %v2231_v53 = vmul.f32 %v5125_v40, %v6903_v37  ;;  %v2662_v60 = vmul.f32 %v6931_v26, %v6896_v38  ;;  %vm2668_vm2 = vmor %vm2666_vm1, %vm2667_vm15 }
 0x428   : > { %v6950_v61 = vsub.f32 %v1715_v2, %v1818_v52  ;;  %v6963_v2 = vpop.f32.mrf.mxu3  ;;  %v3060_v38 = vmax.f32 %v6934_v28, 0.0  ;;  %vm2239_vm5 = vcmp.eq.f32.partialorder %v6903_v37, 0.0  ;;  %vm2681_vm9 = vweird.f32 %v6957_v20 }
 0x429   : > { %5126 = vrsqrt.f32 %v6937_v39  ;;  %v2224_v46 = vmul.f32 %v2223_v30, %v6863_v29  ;;  %v2232_v15 = vmul.f32 %v5125_v40, %v2231_v53  ;;  %v2663_v42 = vsub.f32 1.0, %v2662_v60 }
 0x42a   : > { %v1882_v9 = vmul.f32 %v6950_v61, %v6950_v61  ;;  %5128 = vrcp.f32 %v6957_v20  ;;  %vm2249_vm6 = vcmp.eq.f32.partialorder %v6937_v39, inf  ;;  %vm2251_vm8 = vcmp.eq.f32.partialorder %v6937_v39, 0.0 }
 0x42b   : > { %v2226_v49 = vsel %vm2225_vm10, %v6863_v29, %v2224_v46  ;;  %v2233_v0 = vmul.f32 0.5, %v2232_v15  ;;  %v2654_v29 = vsel %vm6969_vm14, %v6892_v35, %v2650_v36  ;;  %v2664_v63 = vmul.f32 %v6931_v26, %v2663_v42 }
 0x42c   : > { %v2229_v16 = vsel %vm2227_vm13, %v2228_v6, %v2226_v49  ;;  %1941 = vadd.xlane.f32.xlu2 %v1882_v9  ;;  %v3059_v35 = vmax.f32 %v6927_v13, 0.0  ;;  %v2659_v52 = vsel %vm2656_vm0, %v2658_v4, %v2654_v29  ;;  %v2685_v59 = vand.u32 2147483647, %v6957_v20 }
 0x42d   : > { %v2234_v23 = vsub.f32 1.5, %v2233_v0  ;;  %v1777_v44 = vpop.xlane.xlu1 %1776  ;;  %v6983_v8 = vadd.f32 1e-05, %v2229_v16  ;;  %v2665_v19 = vadd.f32 %v6931_v26, %v2664_v63  ;;  %v2660_v27 = vmul.f32 %v2659_v52, %v6539_v17 }
 0x42e   : > { %v6975_v50 = vpop.xlane.xlu2 %1931  ;;  %v1819_v14 = vmul.f32 %v6101_v43, %v1777_v44  ;;  %v3092_v33 = vsel %vm3091_vm12, %v3059_v35, 0.0  ;;  %v3095_v63 = vsel %vm3091_vm12, %v3060_v38, 0.0  ;;  %v2252_v44 = vand.u32 2147483648, %v6937_v39 }
 0x42f   : > { %v5127_v25 = vpop.eup %5126  ;;  %v2235_v30 = vmul.f32 %v5125_v40, %v2234_v23  ;;  %v2669_v46 = vsel %vm2668_vm2, %v6931_v26, %v2665_v19  ;;  %5130 = vrcp.f32 %v6983_v8  ;;  %v2240_v26 = vand.u32 2147483648, %v6903_v37 }
 0x430   : > { %v2243_v58 = vmul.f32 %v5127_v25, %v6937_v39  ;;  %v6994_v53 = vsub.f32 %v1716_v41, %v1819_v14  ;;  %v6997_v36 = vpop.eup %5128  ;;  %v2674_v40 = vsel %vm2671_vm3, %v2673_v7, %v2669_v46  ;;  %v7044_v7 = vadd.f32 %v6915_v47, %v6919_v45 }
 0x431   : > { %v2236_v60 = vmul.f32 %v2235_v30, %v6903_v37  ;;  %v2675_v41 = vmul.f32 %v2674_v40, %v6586_v18  ;;  %v2677_v9 = vmul.f32 %v6997_v36, %v6957_v20  ;;  %v7015_v18 = vpop.f32.mrf.mxu3  ;;  %vm2682_vm7 = vweird.f32 %v6997_v36 }
 0x432   : > { %v2244_v32 = vmul.f32 %v5127_v25, %v2243_v58  ;;  %v1883_v15 = vmul.f32 %v6994_v53, %v6994_v53  ;;  %v2687_v30 = vand.u32 2147483648, %v6957_v20  ;;  %vm7046_vm10 = vmor %vm2681_vm9, %vm2682_vm7  ;;  %v2700_v46 = vand.u32 2147483647, %v6983_v8 }
 0x433   : > { %v2894_v49 = vpack.c.bf16 %v2675_v41, %v2660_v27  ;;  %v2238_v17 = vsel %vm2237_vm4, %v6903_v37, %v2236_v60  ;;  %v2678_v55 = vsub.f32 1.0, %v2677_v9  ;;  %v2702_v60 = vand.u32 2147483648, %v6983_v8 }
 0x434   : > { %v2245_v6 = vmul.f32 0.5, %v2244_v32  ;;  %3093 = vadd.xlane.f32.xlu2 %v3092_v33  ;;  %1943 = vadd.xlane.f32.xlu0 %v1883_v15  ;;  %v2241_v16 = vsel %vm2239_vm5, %v2240_v26, %v2238_v17  ;;  %v2688_v27 = vor.u32 1.1754944e-38, %v2687_v30  ;;  %vm2686_vm13 = vcmp.eq.f32.partialorder %v2685_v59, 8.507059e+37 }
 0x435   : > { %3018 = vmatmul.bf16.gmra.mxu3 %v2894_v49  ;;  %v7021_v48 = vadd.f32 1e-05, %v2241_v16  ;;  %v5131_v23 = vpop.eup %5130  ;;  %v2679_v4 = vmul.f32 %v6997_v36, %v2678_v55  ;;  %vm2696_vm14 = vweird.f32 %v6983_v8  ;;  %v3061_v33 = vmax.f32 %v7044_v7, 0.0 }
 0x436   : > { %v2246_v42 = vsub.f32 1.5, %v2245_v6  ;;  %v1779_v0 = vpop.xlane.xlu2 %1778  ;;  %v2692_v58 = vmul.f32 %v5131_v23, %v6983_v8  ;;  %vm2697_vm11 = vweird.f32 %v5131_v23  ;;  %v2703_v49 = vor.u32 1.1754944e-38, %v2702_v60 }
 0x437   : > { %v1820_v21 = vmul.f32 %v6101_v43, %v1779_v0  ;;  %v2680_v19 = vadd.f32 %v6997_v36, %v2679_v4  ;;  %5132 = vrcp.f32 %v7021_v48  ;;  %vm2698_vm15 = vmor %vm2696_vm14, %vm2697_vm11  ;;  %vm2701_vm0 = vcmp.eq.f32.partialorder %v2700_v46, 8.507059e+37 }
 0x438   : > { %v2247_v29 = vmul.f32 %v5127_v25, %v2246_v42  ;;  %vm2711_vm2 = vweird.f32 %v7021_v48  ;;  %v2715_v30 = vand.u32 2147483647, %v7021_v48 }
 0x439   : > { %v7027_v37 = vsub.f32 %v1717_v34, %v1820_v21  ;;  %v2693_v34 = vsub.f32 1.0, %v2692_v58  ;;  %v2991_v9 = vpop.f32.mrf.mxu3  ;;  %v7065_v21 = vadd.f32 %v6915_v47, %v6963_v2 }
 0x43a   : > { %v2248_v25 = vmul.f32 %v2247_v29, %v6937_v39  ;;  %v7070_v16 = vadd.f32 %v6915_v47, %v2991_v9 }
 0x43b   : > { %v1884_v14 = vmul.f32 %v7027_v37, %v7027_v37  ;;  %v2694_v20 = vmul.f32 %v5131_v23, %v2693_v34 }
 0x43c   : > { %v2250_v52 = vsel %vm2249_vm6, %v6937_v39, %v2248_v25  ;;  %3096 = vadd.xlane.f32.xlu0 %v3095_v63  ;;  %v2684_v39 = vsel %vm7046_vm10, %v6997_v36, %v2680_v19  ;;  %v3098_v63 = vsel %vm3091_vm12, %v3061_v33, 0.0  ;;  %v3062_v25 = vmax.f32 %v7065_v21, 0.0 }
 0x43d   : > { %1945 = vadd.xlane.f32.xlu1 %v1884_v14  ;;  %v2253_v40 = vsel %vm2251_vm8, %v2252_v44, %v2250_v52  ;;  %v2695_v41 = vadd.f32 %v5131_v23, %v2694_v20  ;;  %v5133_v26 = vpop.eup %5132  ;;  %v2689_v36 = vsel %vm2686_vm13, %v2688_v27, %v2684_v39  ;;  %v3064_v58 = vmax.f32 %v7070_v16, 0.0 }
 0x43e   : > { %v1781_v6 = vpop.xlane.xlu2 %1780  ;;  %v2395_v45 = vadd.f32 1e-05, %v2253_v40  ;;  %v2707_v17 = vmul.f32 %v5133_v26, %v7021_v48  ;;  %v2690_v5 = vmul.f32 %v2689_v36, %v6621_v56  ;;  %vm2712_vm1 = vweird.f32 %v5133_v26 }
 0x43f   : > { %v1821_v15 = vmul.f32 %v6101_v43, %v1781_v6  ;;  %v2699_v0 = vsel %vm2698_vm15, %v5131_v23, %v2695_v41  ;;  %v2717_v56 = vand.u32 2147483648, %v7021_v48  ;;  %vm7082_vm3 = vmor %vm2711_vm2, %vm2712_vm1  ;;  %v3107_v46 = vsel %vm3091_vm12, %v3064_v58, 0.0 }
 0x440   : > { %5134 = vrcp.f32 %v2395_v45  ;;  %v2704_v8 = vsel %vm2701_vm0, %v2703_v49, %v2699_v0  ;;  %v2708_v29 = vsub.f32 1.0, %v2707_v17  ;;  %v2732_v59 = vand.u32 2147483648, %v2395_v45 }
 0x441   : > { %v7060_v42 = vsub.f32 %v1718_v51, %v1821_v15  ;;  %v2705_v51 = vmul.f32 %v2704_v8, %v6656_v3  ;;  %v2994_v19 = vpop.f32.mrf.mxu3  ;;  %v2730_v32 = vand.u32 2147483647, %v2395_v45  ;;  %v3101_v60 = vsel %vm3091_vm12, %v3062_v25, 0.0 }
 0x442   : > { %v2709_v44 = vmul.f32 %v5133_v26, %v2708_v29  ;;  %v7095_v48 = vadd.f32 %v6915_v47, %v2994_v19  ;;  %v2718_v6 = vor.u32 1.1754944e-38, %v2717_v56  ;;  %vm2726_vm5 = vweird.f32 %v2395_v45 }
 0x443   : > { %v1885_v55 = vmul.f32 %v7060_v42, %v7060_v42  ;;  %v2895_v2 = vpack.c.bf16 %v2705_v51, %v2690_v5  ;;  %vm2716_vm6 = vcmp.eq.f32.partialorder %v2715_v30, 8.507059e+37  ;;  %v2733_v20 = vor.u32 1.1754944e-38, %v2732_v59 }
 0x444   : > { %3099 = vadd.xlane.f32.xlu0 %v3098_v63  ;;  %v2710_v14 = vadd.f32 %v5133_v26, %v2709_v44  ;;  %vm2731_vm8 = vcmp.eq.f32.partialorder %v2730_v32, 8.507059e+37  ;;  %v3065_v9 = vmax.f32 %v7095_v48, 0.0  ;;  %v5377_v59 = vmov 64.0  }
 0x445   : > { %1947 = vadd.xlane.f32.xlu1 %v1885_v55  ;;  %3023 = vmatmul.bf16.gmra.mxu3 %v2895_v2 }
 0x446   : > { %v5135_v23 = vpop.eup %5134  ;;  %v2714_v40 = vsel %vm7082_vm3, %v5133_v26, %v2710_v14  ;;  %v3110_v0 = vsel %vm3091_vm12, %v3065_v9, 0.0 }
 0x447   : > { %v2722_v4 = vmul.f32 %v5135_v23, %v2395_v45  ;;  %vm2727_vm4 = vweird.f32 %v5135_v23  ;;  %v2719_v15 = vsel %vm2716_vm6, %v2718_v6, %v2714_v40  ;;  %v1980_v45 = vmul.f32 %v6211_v11, %v6975_v50 }
 0x448   : > { %vm2728_vm7 = vmor %vm2726_vm5, %vm2727_vm4  ;;  %v2720_v26 = vmul.f32 %v2719_v15, %v6703_v12 }
 0x449   : > { %v2723_v3 = vsub.f32 1.0, %v2722_v4  ;;  %5136 = vrsqrt.f32 %v1980_v45  ;;  %vm2261_vm9 = vcmp.eq.f32.partialorder %v1980_v45, inf  ;;  %vm2263_vm10 = vcmp.eq.f32.partialorder %v1980_v45, 0.0  ;;  %v2996_v6 = vpop.f32.mrf.mxu3 }
 0x44b   : > { %v2724_v52 = vmul.f32 %v5135_v23, %v2723_v3 }
 0x44c   : > { %3108 = vadd.xlane.f32.xlu0 %v3107_v46 }
 0x44d   : > { %3102 = vadd.xlane.f32.xlu1 %v3101_v60  ;;  %v2725_v39 = vadd.f32 %v5135_v23, %v2724_v52 }
 0x44f   : > { %v2729_v27 = vsel %vm2728_vm7, %v5135_v23, %v2725_v39  ;;  %v5137_v17 = vpop.eup %5136  ;;  %v2264_v23 = vand.u32 2147483648, %v1980_v45 }
 0x450   : > { %v2734_v41 = vsel %vm2731_vm8, %v2733_v20, %v2729_v27  ;;  %v2255_v8 = vmul.f32 %v5137_v17, %v1980_v45 }
 0x451   : > { %v2735_v36 = vmul.f32 %v2734_v41, %v6731_v1 }
 0x452   : > { %v2256_v55 = vmul.f32 %v5137_v17, %v2255_v8 }
 0x453   : > { %v2896_v49 = vpack.c.bf16 %v2735_v36, %v2720_v26 }
 0x454   : > { %3111 = vadd.xlane.f32.xlu0 %v3110_v0  ;;  %v2257_v5 = vmul.f32 0.5, %v2256_v55 }
 0x455   : > { %3028 = vmatmul.bf16.gmra.mxu3 %v2896_v49 }
 0x456   : > { %v2258_v51 = vsub.f32 1.5, %v2257_v5 }
 0x458   : > { %v2259_v29 = vmul.f32 %v5137_v17, %v2258_v51 }
 0x45a   : > { %v2260_v1 = vmul.f32 %v2259_v29, %v1980_v45 }
 0x45c   : > { %v2262_v63 = vsel %vm2261_vm9, %v1980_v45, %v2260_v1  ;;  %v7129_v45 = vadd.f32 %v6915_v47, %v7015_v18 }
 0x45d   : > { %v2265_v44 = vsel %vm2263_vm10, %v2264_v23, %v2262_v63 }
 0x45e   : > { %v7106_v4 = vadd.f32 1e-05, %v2265_v44 }
 0x460   : > { %vm2741_vm1 = vweird.f32 %v7106_v4 }
 0x47e   : > { %v1934_v12 = vpop.xlane.xlu0 %1933 }
 0x47f   : > { %v1981_v2 = vmul.f32 %v6211_v11, %v1934_v12  ;;  %v3063_v12 = vmax.f32 %v7129_v45, 0.0 }
 0x481   : > { %5138 = vrsqrt.f32 %v1981_v2  ;;  %vm2273_vm11 = vcmp.eq.f32.partialorder %v1981_v2, inf  ;;  %vm2275_vm13 = vcmp.eq.f32.partialorder %v1981_v2, 0.0 }
 0x482   : > { %5140 = vrcp.f32 %v7106_v4 }
 0x486   : > { %v1936_v50 = vpop.xlane.xlu0 %1935 }
 0x487   : > { %v5139_v14 = vpop.eup %5138  ;;  %v1982_v56 = vmul.f32 %v6211_v11, %v1936_v50 }
 0x488   : > { %v2267_v3 = vmul.f32 %v5139_v14, %v1981_v2  ;;  %v7110_v34 = vpop.eup %5140 }
 0x489   : > { %5142 = vrsqrt.f32 %v1982_v56  ;;  %v2737_v26 = vmul.f32 %v7110_v34, %v7106_v4  ;;  %vm2285_vm14 = vcmp.eq.f32.partialorder %v1982_v56, inf  ;;  %vm2287_vm15 = vcmp.eq.f32.partialorder %v1982_v56, 0.0 }
 0x48a   : > { %v2268_v19 = vmul.f32 %v5139_v14, %v2267_v3  ;;  %5144 = vrcp.f32 %v5377_v59  ;;  %v2288_v3 = vand.u32 2147483648, %v1982_v56  ;;  %v2745_v59 = vand.u32 2147483647, %v7106_v4 }
 0x48b   : > { %v2738_v51 = vsub.f32 1.0, %v2737_v26  ;;  %vm2742_vm0 = vweird.f32 %v7110_v34 }
 0x48c   : > { %v2269_v30 = vmul.f32 0.5, %v2268_v19  ;;  %vm7156_vm2 = vcmp.eq.f32.partialorder %v2745_v59, 8.507059e+37  ;;  %vm7166_vm3 = vmor %vm2741_vm1, %vm2742_vm0 }
 0x48e   : > { %v2270_v52 = vsub.f32 1.5, %v2269_v30  ;;  %v1783_v32 = vpop.xlane.xlu0 %1782  ;;  %v3104_v30 = vsel %vm3091_vm12, %v3063_v12, 0.0 }
 0x48f   : > { %v5143_v46 = vpop.eup %5142  ;;  %v1938_v60 = vpop.xlane.xlu1 %1937  ;;  %v1822_v40 = vmul.f32 %v6101_v43, %v1783_v32  ;;  %v2276_v43 = vand.u32 2147483648, %v1981_v2 }
 0x490   : > { %v2271_v39 = vmul.f32 %v5139_v14, %v2270_v52  ;;  %v2279_v20 = vmul.f32 %v5143_v46, %v1982_v56  ;;  %v7114_v15 = vmul.f32 %v6211_v11, %v1938_v60  ;;  %v7123_v49 = vpop.eup %5144  ;;  %v2739_v14 = vmul.f32 %v7110_v34, %v2738_v51 }
 0x491   : > { %v7118_v27 = vsub.f32 %v1719_v22, %v1822_v40  ;;  %v3189_v55 = vmul.f32 64.0, %v7123_v49  ;;  %vm3193_vm5 = vweird.f32 %v7123_v49 }
 0x492   : > { %v2272_v41 = vmul.f32 %v2271_v39, %v1981_v2  ;;  %v2280_v36 = vmul.f32 %v5143_v46, %v2279_v20  ;;  %5146 = vrsqrt.f32 %v7114_v15  ;;  %v2740_v39 = vadd.f32 %v7110_v34, %v2739_v14 }
 0x493   : > { %v1886_v0 = vmul.f32 %v7118_v27, %v7118_v27  ;;  %v3190_v50 = vsub.f32 1.0, %v3189_v55  ;;  %vm2297_vm4 = vcmp.eq.f32.partialorder %v7114_v15, inf  ;;  %vm2299_vm7 = vcmp.eq.f32.partialorder %v7114_v15, 0.0 }
 0x494   : > { %v2281_v57 = vmul.f32 0.5, %v2280_v36  ;;  %v2274_v22 = vsel %vm2273_vm11, %v1981_v2, %v2272_v41  ;;  %v2999_v2 = vpop.f32.mrf.mxu3  ;;  %v7152_v41 = vadd.f32 %v6915_v47, %v2996_v6 }
 0x495   : > { %1949 = vadd.xlane.f32.xlu2 %v1886_v0  ;;  %v2277_v17 = vsel %vm2275_vm13, %v2276_v43, %v2274_v22  ;;  %v3191_v40 = vmul.f32 %v7123_v49, %v3190_v50 }
 0x496   : > { %v2282_v8 = vsub.f32 1.5, %v2281_v57  ;;  %v7132_v5 = vadd.f32 1e-05, %v2277_v17  ;;  %v2747_v57 = vand.u32 2147483648, %v7106_v4  ;;  %v2744_v4 = vsel %vm7166_vm3, %v7110_v34, %v2740_v39 }
 0x497   : > { %v1940_v29 = vpop.xlane.xlu1 %1939  ;;  %v3192_v51 = vadd.f32 %v7123_v49, %v3191_v40 }
 0x498   : > { %v5147_v1 = vpop.eup %5146  ;;  %v2283_v63 = vmul.f32 %v5143_v46, %v2282_v8  ;;  %v7136_v23 = vmul.f32 %v6211_v11, %v1940_v29  ;;  %5148 = vrcp.f32 %v7132_v5  ;;  %v2760_v14 = vand.u32 2147483647, %v7132_v5 }
 0x499   : > { %v2291_v18 = vmul.f32 %v5147_v1, %v7114_v15  ;;  %v7188_v59 = vsel %vm3193_vm5, %v7123_v49, %v3192_v51  ;;  %vm2756_vm8 = vweird.f32 %v7132_v5  ;;  %v3066_v51 = vmax.f32 %v7152_v41, 0.0 }
 0x49a   : > { %v2284_v44 = vmul.f32 %v2283_v63, %v1982_v56  ;;  %5150 = vrsqrt.f32 %v7136_v23  ;;  %v2762_v63 = vand.u32 2147483648, %v7132_v5  ;;  %vm2761_vm10 = vcmp.eq.f32.partialorder %v2760_v14, 8.507059e+37 }
 0x49b   : > { %v2292_v19 = vmul.f32 %v5147_v1, %v2291_v18  ;;  %vm2309_vm11 = vcmp.eq.f32.partialorder %v7136_v23, inf  ;;  %vm2311_vm13 = vcmp.eq.f32.partialorder %v7136_v23, 0.0 }
 0x49c   : > { %v2286_v52 = vsel %vm2285_vm14, %v1982_v56, %v2284_v44  ;;  %v3001_v18 = vpop.f32.mrf.mxu3  ;;  %v2300_v44 = vand.u32 2147483648, %v7114_v15 }
 0x49d   : > { %v2293_v32 = vmul.f32 0.5, %v2292_v19  ;;  %3105 = vadd.xlane.f32.xlu2 %v3104_v30  ;;  %v2289_v46 = vsel %vm2287_vm15, %v2288_v3, %v2286_v52  ;;  %v2748_v19 = vor.u32 1.1754944e-38, %v2747_v57  ;;  %v7221_v13 = vadd.f32 %v6915_v47, %v3001_v18 }
 0x49e   : > { %v5149_v60 = vpop.eup %5148  ;;  %v7149_v20 = vadd.f32 1e-05, %v2289_v46  ;;  %v7192_v46 = vadd.f32 %v6915_v47, %v2999_v2  ;;  %v3113_v18 = vsel %vm3091_vm12, %v3066_v51, 0.0 }
 0x49f   : > { %v2294_v36 = vsub.f32 1.5, %v2293_v32  ;;  %v2752_v26 = vmul.f32 %v5149_v60, %v7132_v5  ;;  %v1942_v56 = vpop.xlane.xlu2 %1941  ;;  %vm2757_vm6 = vweird.f32 %v5149_v60  ;;  %v2749_v39 = vsel %vm7156_vm2, %v2748_v19, %v2744_v4 }
 0x4a0   : > { %v5151_v43 = vpop.eup %5150  ;;  %5152 = vrcp.f32 %v7149_v20  ;;  %v7164_v6 = vmul.f32 %v6211_v11, %v1942_v56  ;;  %vm2758_vm9 = vmor %vm2756_vm8, %vm2757_vm6  ;;  %vm2771_vm1 = vweird.f32 %v7149_v20 }
 0x4a1   : > { %v2295_v22 = vmul.f32 %v5147_v1, %v2294_v36  ;;  %v2303_v17 = vmul.f32 %v5151_v43, %v7136_v23  ;;  %v2753_v55 = vsub.f32 1.0, %v2752_v26 }
 0x4a2   : > { %5154 = vrsqrt.f32 %v7164_v6  ;;  %vm2321_vm14 = vcmp.eq.f32.partialorder %v7164_v6, inf  ;;  %vm2323_vm0 = vcmp.eq.f32.partialorder %v7164_v6, 0.0 }
 0x4a3   : > { %v2296_v29 = vmul.f32 %v2295_v22, %v7114_v15  ;;  %v2304_v1 = vmul.f32 %v5151_v43, %v2303_v17  ;;  %v2754_v50 = vmul.f32 %v5149_v60, %v2753_v55  ;;  %v2750_v55 = vmul.f32 %v2749_v39, %v6764_v31 }
 0x4a4   : > { %v2312_v31 = vand.u32 2147483648, %v7136_v23 }
 0x4a5   : > { %v2305_v3 = vmul.f32 0.5, %v2304_v1  ;;  %v2298_v30 = vsel %vm2297_vm4, %v7114_v15, %v2296_v29  ;;  %v2755_v52 = vadd.f32 %v5149_v60, %v2754_v50  ;;  %v2763_v15 = vor.u32 1.1754944e-38, %v2762_v63 }
 0x4a6   : > { %v7183_v34 = vpop.eup %5152  ;;  %v2301_v32 = vsel %vm2299_vm7, %v2300_v44, %v2298_v30 }
 0x4a7   : > { %v2306_v40 = vsub.f32 1.5, %v2305_v3  ;;  %v3094_v36 = vpop.xlane.xlu2 %3093  ;;  %v1944_v26 = vpop.xlane.xlu0 %1943  ;;  %v2759_v56 = vsel %vm2758_vm9, %v5149_v60, %v2755_v52  ;;  %v7196_v57 = vadd.f32 1e-05, %v2301_v32  ;;  %v2767_v49 = vmul.f32 %v7183_v34, %v7149_v20 }
 0x4a8   : > { %v5155_v5 = vpop.eup %5154  ;;  %v3195_v2 = vmul.f32 %v7188_v59, %v3094_v36  ;;  %v7202_v17 = vmul.f32 %v6211_v11, %v1944_v26  ;;  %v2764_v0 = vsel %vm2761_vm10, %v2763_v15, %v2759_v56  ;;  %v3068_v56 = vmax.f32 %v7221_v13, 0.0  ;;  %v4967_v13 = vld [vmem:[%s8562_s5 + $0x8] sm:$0xff] }
 0x4a9   : > { %v2307_v22 = vmul.f32 %v5151_v43, %v2306_v40  ;;  %v2315_v8 = vmul.f32 %v5155_v5, %v7164_v6  ;;  %v2765_v60 = vmul.f32 %v2764_v0, %v6816_v62  ;;  %v3067_v43 = vmax.f32 %v7192_v46, 0.0 }
 0x4aa   : > { %v7211_v29 = vsub.f32 %v3059_v35, %v3195_v2  ;;  %5156 = vrsqrt.f32 %v7202_v17  ;;  %v2768_v44 = vsub.f32 1.0, %v2767_v49  ;;  %v7223_v35 = vpop.f32.mrf.mxu3  ;;  %vm2772_vm15 = vweird.f32 %v7183_v34 }
 0x4ab   : > { %v2308_v4 = vmul.f32 %v2307_v22, %v7136_v23  ;;  %v2316_v1 = vmul.f32 %v5155_v5, %v2315_v8  ;;  %v2897_v63 = vpack.c.bf16 %v2765_v60, %v2750_v55  ;;  %5158 = vrcp.f32 %v7196_v57  ;;  %vm7272_vm2 = vmor %vm2771_vm1, %vm2772_vm15 }
 0x4ac   : > { %v3259_v62 = vmul.f32 %v7211_v29, %v7211_v29  ;;  %v2769_v36 = vmul.f32 %v7183_v34, %v2768_v44  ;;  %v2775_v8 = vand.u32 2147483647, %v7149_v20  ;;  %v2777_v55 = vand.u32 2147483648, %v7149_v20 }
 0x4ad   : > { %v2317_v50 = vmul.f32 0.5, %v2316_v1  ;;  %3033 = vmatmul.bf16.gmra.mxu3 %v2897_v63  ;;  %v2310_v14 = vsel %vm2309_vm11, %v7136_v23, %v2308_v4  ;;  %v7239_v23 = vsel %vm3091_vm12, %v3067_v43, 0.0  ;;  %v2324_v4 = vand.u32 2147483648, %v7164_v6 }
 0x4ae   : > { %v3291_v3 = vsel %vm3091_vm12, %v3259_v62, 0.0  ;;  %v2313_v30 = vsel %vm2311_vm13, %v2312_v31, %v2310_v14  ;;  %v2770_v31 = vadd.f32 %v7183_v34, %v2769_v36  ;;  %v2790_v14 = vand.u32 2147483647, %v7196_v57 }
 0x4af   : > { %v2318_v52 = vsub.f32 1.5, %v2317_v50  ;;  %3292 = vadd.xlane.f32.xlu1 %v3291_v3  ;;  %v3097_v40 = vpop.xlane.xlu0 %3096  ;;  %v7241_v26 = vadd.f32 1e-05, %v2313_v30  ;;  %v2792_v36 = vand.u32 2147483648, %v7196_v57  ;;  %vm2776_vm4 = vcmp.eq.f32.partialorder %v2775_v8, 8.507059e+37 }
 0x4b0   : > { %v1946_v19 = vpop.xlane.xlu1 %1945  ;;  %v5157_v39 = vpop.eup %5156  ;;  %v3196_v15 = vmul.f32 %v7188_v59, %v3097_v40  ;;  %vm2786_vm5 = vweird.f32 %v7196_v57  ;;  %vm2791_vm6 = vcmp.eq.f32.partialorder %v2790_v14, 8.507059e+37  ;;  %v7299_v7 = vadd.f32 %v6915_v47, %v7223_v35 }
 0x4b1   : > { %v7229_v32 = vmul.f32 %v6211_v11, %v1946_v19  ;;  %v2319_v49 = vmul.f32 %v5155_v5, %v2318_v52  ;;  %v2327_v22 = vmul.f32 %v5157_v39, %v7202_v17  ;;  %v5159_v2 = vpop.eup %5158  ;;  %vm2333_vm8 = vcmp.eq.f32.partialorder %v7202_v17, inf }
 0x4b2   : > { %v7249_v0 = vsub.f32 %v3060_v38, %v3196_v15  ;;  %v2782_v1 = vmul.f32 %v5159_v2, %v7196_v57  ;;  %v7268_v30 = vpop.f32.mrf.mxu3  ;;  %vm2787_vm3 = vweird.f32 %v5159_v2  ;;  %vm2335_vm10 = vcmp.eq.f32.partialorder %v7202_v17, 0.0 }
 0x4b3   : > { %5160 = vrsqrt.f32 %v7229_v32  ;;  %v2320_v60 = vmul.f32 %v2319_v49, %v7164_v6  ;;  %v2328_v5 = vmul.f32 %v5157_v39, %v2327_v22  ;;  %vm2788_vm7 = vmor %vm2786_vm5, %vm2787_vm3  ;;  %vm2345_vm9 = vcmp.eq.f32.partialorder %v7229_v32, inf }
 0x4b4   : > { %v3260_v63 = vmul.f32 %v7249_v0, %v7249_v0  ;;  %5162 = vrcp.f32 %v7241_v26  ;;  %v2783_v38 = vsub.f32 1.0, %v2782_v1  ;;  %vm2801_vm11 = vweird.f32 %v7241_v26 }
 0x4b5   : > { %v2329_v28 = vmul.f32 0.5, %v2328_v5  ;;  %v2322_v62 = vsel %vm2321_vm14, %v7164_v6, %v2320_v60  ;;  %v2336_v6 = vand.u32 2147483648, %v7202_v17  ;;  %v2807_v16 = vand.u32 2147483648, %v7241_v26 }
 0x4b6   : > { %v3294_v50 = vsel %vm3091_vm12, %v3260_v63, 0.0  ;;  %v2325_v3 = vsel %vm2323_vm0, %v2324_v4, %v2322_v62  ;;  %v2784_v15 = vmul.f32 %v5159_v2, %v2783_v38  ;;  %v2778_v4 = vor.u32 1.1754944e-38, %v2777_v55 }
 0x4b7   : > { %v2330_v52 = vsub.f32 1.5, %v2329_v28  ;;  %3114 = vadd.xlane.f32.xlu1 %v3113_v18  ;;  %3295 = vadd.xlane.f32.xlu2 %v3294_v50  ;;  %v3100_v40 = vpop.xlane.xlu0 %3099  ;;  %v7277_v20 = vadd.f32 1e-05, %v2325_v3  ;;  %v2774_v18 = vsel %vm7272_vm2, %v7183_v34, %v2770_v31  ;;  %v2793_v62 = vor.u32 1.1754944e-38, %v2792_v36 }
 0x4b8   : > { %v7263_v44 = vpop.xlane.xlu1 %1947  ;;  %v3197_v22 = vmul.f32 %v7188_v59, %v3100_v40  ;;  %v2785_v28 = vadd.f32 %v5159_v2, %v2784_v15  ;;  %v2779_v38 = vsel %vm2776_vm4, %v2778_v4, %v2774_v18  ;;  %v3119_v31 = vsel %vm3091_vm12, %v3068_v56, 0.0 }
 0x4b9   : > { %v5161_v19 = vpop.eup %5160  ;;  %v2331_v60 = vmul.f32 %v5157_v39, %v2330_v52  ;;  %5164 = vrcp.f32 %v7277_v20  ;;  %v2780_v3 = vmul.f32 %v2779_v38, %v6836_v24  ;;  %v2348_v4 = vand.u32 2147483648, %v7229_v32 }
 0x4ba   : > { %v2339_v49 = vmul.f32 %v5161_v19, %v7229_v32  ;;  %v7285_v5 = vpop.eup %5162  ;;  %v7289_v63 = vsub.f32 %v3061_v33, %v3197_v22  ;;  %v2789_v8 = vsel %vm2788_vm7, %v5159_v2, %v2785_v28  ;;  %vm2347_vm14 = vcmp.eq.f32.partialorder %v7229_v32, 0.0 }
 0x4bb   : > { %v2797_v34 = vmul.f32 %v7285_v5, %v7241_v26  ;;  %v2332_v39 = vmul.f32 %v2331_v60, %v7202_v17  ;;  %v2794_v33 = vsel %vm2791_vm6, %v2793_v62, %v2789_v8  ;;  %v7314_v60 = vpop.f32.mrf.mxu3  ;;  %vm2802_vm13 = vweird.f32 %v7285_v5 }
 0x4bc   : > { %v2340_v1 = vmul.f32 %v5161_v19, %v2339_v49  ;;  %v3261_v55 = vmul.f32 %v7289_v63, %v7289_v63  ;;  %v2795_v52 = vmul.f32 %v2794_v33, %v6878_v54  ;;  %v2805_v62 = vand.u32 2147483647, %v7241_v26  ;;  %vm7349_vm15 = vmor %vm2801_vm11, %vm2802_vm13 }
 0x4bd   : > { %v2798_v50 = vsub.f32 1.0, %v2797_v34  ;;  %v2334_v54 = vsel %vm2333_vm8, %v7202_v17, %v2332_v39  ;;  %v2820_v39 = vand.u32 2147483647, %v7277_v20  ;;  %v2822_v33 = vand.u32 2147483648, %v7277_v20 }
 0x4be   : > { %v2341_v57 = vmul.f32 0.5, %v2340_v1  ;;  %v3297_v2 = vsel %vm3091_vm12, %v3261_v55, 0.0  ;;  %v2898_v22 = vpack.c.bf16 %v2795_v52, %v2780_v3  ;;  %v2337_v38 = vsel %vm2335_vm10, %v2336_v6, %v2334_v54 }
 0x4bf   : > { %3117 = vadd.xlane.f32.xlu1 %v7239_v23  ;;  %3298 = vadd.xlane.f32.xlu2 %v3297_v2  ;;  %v3109_v15 = vpop.xlane.xlu0 %3108  ;;  %v2799_v36 = vmul.f32 %v7285_v5, %v2798_v50  ;;  %v5165_v18 = vpop.eup %5164  ;;  %v2808_v2 = vor.u32 1.1754944e-38, %v2807_v16  ;;  %vm2806_vm1 = vcmp.eq.f32.partialorder %v2805_v62, 8.507059e+37  ;;  %vm2816_vm2 = vweird.f32 %v7277_v20 }
 0x4c0   : > { %v2342_v14 = vsub.f32 1.5, %v2341_v57  ;;  %v3103_v40 = vpop.xlane.xlu1 %3102  ;;  %v3200_v24 = vmul.f32 %v7188_v59, %v3109_v15  ;;  %3038 = vmatmul.bf16.gmra.mxu3 %v2898_v22  ;;  %vm2817_vm0 = vweird.f32 %v5165_v18  ;;  %v2823_v15 = vor.u32 1.1754944e-38, %v2822_v33 }
 0x4c1   : > { %v3198_v35 = vmul.f32 %v7188_v59, %v3103_v40  ;;  %v2800_v21 = vadd.f32 %v7285_v5, %v2799_v36  ;;  %vm2818_vm3 = vmor %vm2816_vm2, %vm2817_vm0  ;;  %vm2821_vm4 = vcmp.eq.f32.partialorder %v2820_v39, 8.507059e+37 }
 0x4c2   : > { %v2343_v49 = vmul.f32 %v5161_v19, %v2342_v14  ;;  %v7326_v1 = vsub.f32 %v3064_v58, %v3200_v24  ;;  %v7354_v14 = vadd.f32 1e-05, %v2337_v38 }
 0x4c3   : > { %v7320_v23 = vsub.f32 %v3062_v25, %v3198_v35  ;;  %v2812_v25 = vmul.f32 %v5165_v18, %v7277_v20  ;;  %v3011_v36 = vpop.f32.mrf.mxu3 }
 0x4c4   : > { %v2344_v19 = vmul.f32 %v2343_v49, %v7229_v32  ;;  %v3264_v17 = vmul.f32 %v7326_v1, %v7326_v1  ;;  %5166 = vrcp.f32 %v7354_v14  ;;  %v2837_v62 = vand.u32 2147483648, %v7354_v14 }
 0x4c5   : > { %v3262_v28 = vmul.f32 %v7320_v23, %v7320_v23  ;;  %v2813_v34 = vsub.f32 1.0, %v2812_v25  ;;  %vm2831_vm7 = vweird.f32 %v7354_v14 }
 0x4c6   : > { %v2346_v57 = vsel %vm2345_vm9, %v7229_v32, %v2344_v19  ;;  %v3306_v8 = vsel %vm3091_vm12, %v3264_v17, 0.0  ;;  %v2804_v32 = vsel %vm7349_vm15, %v7285_v5, %v2800_v21  ;;  %v7372_v19 = vadd.f32 %v6915_v47, %v3011_v36 }
 0x4c7   : > { %v3300_v58 = vsel %vm3091_vm12, %v3262_v28, 0.0  ;;  %v2349_v50 = vsel %vm2347_vm14, %v2348_v4, %v2346_v57  ;;  %3120 = vadd.xlane.f32.xlu2 %v3119_v31  ;;  %3307 = vadd.xlane.f32.xlu1 %v3306_v8  ;;  %v3112_v3 = vpop.xlane.xlu0 %3111  ;;  %v2814_v52 = vmul.f32 %v5165_v18, %v2813_v34  ;;  %v3069_v31 = vmax.f32 %v7299_v7, 0.0  ;;  %v7386_v8 = vld [vmem:[%s8561_s4] ss:$0 sm:$0xff] }
 0x4c8   : > { %3301 = vadd.xlane.f32.xlu0 %v3300_v58  ;;  %v2403_v40 = vadd.f32 1e-05, %v2349_v50  ;;  %v3201_v26 = vmul.f32 %v7188_v59, %v3112_v3  ;;  %v2809_v5 = vsel %vm2806_vm1, %v2808_v2, %v2804_v32  ;;  %v2835_v58 = vand.u32 2147483647, %v7354_v14 }
 0x4c9   : > { %v2815_v6 = vadd.f32 %v5165_v18, %v2814_v52  ;;  %v2810_v54 = vmul.f32 %v2809_v5, %v6907_v10  ;;  %v3122_v48 = vsel %vm3091_vm12, %v3069_v31, 0.0  ;;  %v2838_v32 = vor.u32 1.1754944e-38, %v2837_v62 }
 0x4ca   : > { %5168 = vrcp.f32 %v2403_v40  ;;  %v7365_v35 = vsub.f32 %v3065_v9, %v3201_v26  ;;  %v5167_v4 = vpop.eup %5166  ;;  %v2852_v16 = vand.u32 2147483648, %v2403_v40  ;;  %v2850_v39 = vand.u32 2147483647, %v2403_v40 }
 0x4cb   : > { %v2819_v49 = vsel %vm2818_vm3, %v5165_v18, %v2815_v6  ;;  %v2827_v21 = vmul.f32 %v5167_v4, %v7354_v14  ;;  %v3014_v47 = vpop.f32.mrf.mxu3  ;;  %vm2832_vm5 = vweird.f32 %v5167_v4  ;;  %vm2846_vm9 = vweird.f32 %v2403_v40 }
 0x4cc   : > { %v2824_v22 = vsel %vm2821_vm4, %v2823_v15, %v2819_v49  ;;  %v3265_v24 = vmul.f32 %v7365_v35, %v7365_v35  ;;  %v7389_v55 = vadd.f32 %v7386_v8, %v3014_v47  ;;  %vm2833_vm8 = vmor %vm2831_vm7, %vm2832_vm5  ;;  %v2853_v14 = vor.u32 1.1754944e-38, %v2852_v16 }
 0x4cd   : > { %v2825_v20 = vmul.f32 %v2824_v22, %v6950_v61  ;;  %v2828_v10 = vsub.f32 1.0, %v2827_v21  ;;  %v3072_v61 = vmax.f32 %v7372_v19, 0.0  ;;  %vm2836_vm11 = vcmp.eq.f32.partialorder %v2835_v58, 8.507059e+37 }
 0x4ce   : > { %v3309_v9 = vsel %vm3091_vm12, %v3265_v24, 0.0  ;;  %vm2851_vm13 = vcmp.eq.f32.partialorder %v2850_v39, 8.507059e+37  ;;  %v3073_v6 = vmax.f32 %v7389_v55, 0.0  ;;  %v1988_v49 = vmul.f32 %v6211_v11, %v7263_v44 }
 0x4cf   : > { %v2899_v28 = vpack.c.bf16 %v2825_v20, %v2810_v54  ;;  %3123 = vadd.xlane.f32.xlu2 %v3122_v48  ;;  %3310 = vadd.xlane.f32.xlu1 %v3309_v9  ;;  %v2829_v17 = vmul.f32 %v5167_v4, %v2828_v10  ;;  %v3131_v33 = vsel %vm3091_vm12, %v3072_v61, 0.0  ;;  %v5378_v9 = vmov 63.0  }
 0x4d0   : > { %v5169_v18 = vpop.eup %5168  ;;  %5170 = vrsqrt.f32 %v1988_v49  ;;  %vm2357_vm14 = vcmp.eq.f32.partialorder %v1988_v49, inf  ;;  %v2360_v21 = vand.u32 2147483648, %v1988_v49  ;;  %vm2359_vm15 = vcmp.eq.f32.partialorder %v1988_v49, 0.0 }
 0x4d1   : > { %v2842_v25 = vmul.f32 %v5169_v18, %v2403_v40  ;;  %3043 = vmatmul.bf16.gmra.mxu3 %v2899_v28  ;;  %vm2847_vm6 = vweird.f32 %v5169_v18  ;;  %v2830_v57 = vadd.f32 %v5167_v4, %v2829_v17  ;;  %v3134_v40 = vsel %vm3091_vm12, %v3073_v6, 0.0 }
 0x4d2   : > { %vm2848_vm10 = vmor %vm2846_vm9, %vm2847_vm6  ;;  %5172 = vrcp.f32 %v5378_v9 }
 0x4d3   : > { %v2843_v38 = vsub.f32 1.0, %v2842_v25  ;;  %v2834_v3 = vsel %vm2833_vm8, %v5167_v4, %v2830_v57 }
 0x4d4   : > { %v2839_v26 = vsel %vm2836_vm11, %v2838_v32, %v2834_v3 }
 0x4d5   : > { %v2844_v34 = vmul.f32 %v5169_v18, %v2843_v38  ;;  %v2840_v15 = vmul.f32 %v2839_v26, %v6994_v53 }
 0x4d6   : > { %v5171_v22 = vpop.eup %5170 }
 0x4d7   : > { %v2845_v50 = vadd.f32 %v5169_v18, %v2844_v34  ;;  %3132 = vadd.xlane.f32.xlu1 %v3131_v33  ;;  %v2351_v24 = vmul.f32 %v5171_v22, %v1988_v49  ;;  %v7415_v33 = vadd.f32 %v7386_v8, %v7268_v30 }
 0x4d8   : > { %v5173_v44 = vpop.eup %5172 }
 0x4d9   : > { %v2849_v52 = vsel %vm2848_vm10, %v5169_v18, %v2845_v50  ;;  %v2352_v54 = vmul.f32 %v5171_v22, %v2351_v24  ;;  %v3388_v62 = vmul.f32 63.0, %v5173_v44  ;;  %vm3392_vm1 = vweird.f32 %v5173_v44 }
 0x4da   : > { %v2854_v2 = vsel %vm2851_vm13, %v2853_v14, %v2849_v52  ;;  %v3070_v52 = vmax.f32 %v7415_v33, 0.0 }
 0x4db   : > { %v2855_v5 = vmul.f32 %v2854_v2, %v7027_v37  ;;  %v2353_v20 = vmul.f32 0.5, %v2352_v54  ;;  %v3389_v39 = vsub.f32 1.0, %v3388_v62 }
 0x4dd   : > { %v2900_v36 = vpack.c.bf16 %v2855_v5, %v2840_v15  ;;  %v2354_v4 = vsub.f32 1.5, %v2353_v20  ;;  %v3390_v45 = vmul.f32 %v5173_v44, %v3389_v39 }
 0x4df   : > { %3135 = vadd.xlane.f32.xlu1 %v3134_v40  ;;  %v2355_v48 = vmul.f32 %v5171_v22, %v2354_v4  ;;  %v3391_v15 = vadd.f32 %v5173_v44, %v3390_v45  ;;  %v3125_v40 = vsel %vm3091_vm12, %v3070_v52, 0.0 }
 0x4e1   : > { %3048 = vmatmul.bf16.gmra.mxu3 %v2900_v36  ;;  %v2356_v37 = vmul.f32 %v2355_v48, %v1988_v49  ;;  %v7424_v36 = vadd.f32 %v7386_v8, %v7314_v60  ;;  %v7429_v54 = vsel %vm3392_vm1, %v5173_v44, %v3391_v15 }
 0x4e3   : > { %v2358_v28 = vsel %vm2357_vm14, %v1988_v49, %v2356_v37  ;;  %v3071_v20 = vmax.f32 %v7424_v36, 0.0 }
 0x4e4   : > { %v2361_v25 = vsel %vm2359_vm15, %v2360_v21, %v2358_v28 }
 0x4e5   : > { %v7403_v10 = vadd.f32 1e-05, %v2361_v25 }
 0x4e7   : > { %vm2861_vm4 = vweird.f32 %v7403_v10  ;;  %v2867_v21 = vand.u32 2147483648, %v7403_v10 }
 0x508   : > { %v1950_v53 = vpop.xlane.xlu2 %1949 }
 0x509   : > { %v1989_v18 = vmul.f32 %v6211_v11, %v1950_v53  ;;  %v3128_v53 = vsel %vm3091_vm12, %v3071_v20, 0.0 }
 0x50b   : > { %5174 = vrsqrt.f32 %v1989_v18  ;;  %vm2369_vm0 = vcmp.eq.f32.partialorder %v1989_v18, inf  ;;  %v2372_v5 = vand.u32 2147483648, %v1989_v18  ;;  %vm2371_vm2 = vcmp.eq.f32.partialorder %v1989_v18, 0.0 }
 0x50c   : > { %5176 = vrcp.f32 %v7403_v10 }
 0x510   : > { %v3106_v38 = vpop.xlane.xlu2 %3105 }
 0x511   : > { %v5175_v47 = vpop.eup %5174  ;;  %v3199_v17 = vmul.f32 %v7188_v59, %v3106_v38 }
 0x512   : > { %v2363_v16 = vmul.f32 %v5175_v47, %v1989_v18  ;;  %v5177_v32 = vpop.eup %5176 }
 0x513   : > { %v7408_v58 = vsub.f32 %v3063_v12, %v3199_v17  ;;  %v7418_v12 = vpop.f32.mrf.mxu3  ;;  %v2857_v2 = vmul.f32 %v5177_v32, %v7403_v10  ;;  %vm2862_vm3 = vweird.f32 %v5177_v32 }
 0x514   : > { %v2364_v11 = vmul.f32 %v5175_v47, %v2363_v16  ;;  %vm7443_vm5 = vmor %vm2861_vm4, %vm2862_vm3 }
 0x515   : > { %v3263_v34 = vmul.f32 %v7408_v58, %v7408_v58  ;;  %v2858_v24 = vsub.f32 1.0, %v2857_v2 }
 0x516   : > { %v2365_v57 = vmul.f32 0.5, %v2364_v11 }
 0x517   : > { %v3303_v50 = vsel %vm3091_vm12, %v3263_v34, 0.0  ;;  %v2859_v60 = vmul.f32 %v5177_v32, %v2858_v24 }
 0x518   : > { %v2366_v3 = vsub.f32 1.5, %v2365_v57  ;;  %3304 = vadd.xlane.f32.xlu0 %v3303_v50 }
 0x51a   : > { %v2367_v14 = vmul.f32 %v5175_v47, %v2366_v3  ;;  %v2865_v47 = vand.u32 2147483647, %v7403_v10 }
 0x51b   : > { %v7432_v48 = vpop.f32.mrf.mxu3 }
 0x51c   : > { %v2368_v26 = vmul.f32 %v2367_v14, %v1989_v18  ;;  %v2868_v14 = vor.u32 1.1754944e-38, %v2867_v21  ;;  %vm2866_vm7 = vcmp.eq.f32.partialorder %v2865_v47, 8.507059e+37 }
 0x51e   : > { %v2370_v30 = vsel %vm2369_vm0, %v1989_v18, %v2368_v26  ;;  %v2860_v18 = vadd.f32 %v5177_v32, %v2859_v60 }
 0x51f   : > { %v2373_v49 = vsel %vm2371_vm2, %v2372_v5, %v2370_v30 }
 0x520   : > { %3126 = vadd.xlane.f32.xlu0 %v3125_v40  ;;  %v2405_v22 = vadd.f32 1e-05, %v2373_v49  ;;  %v2864_v34 = vsel %vm7443_vm5, %v5177_v32, %v2860_v18 }
 0x521   : > { %v2869_v5 = vsel %vm2866_vm7, %v2868_v14, %v2864_v34 }
 0x522   : > { %5178 = vrcp.f32 %v2405_v22  ;;  %v3293_v4 = vpop.xlane.xlu1 %3292  ;;  %v2882_v39 = vand.u32 2147483648, %v2405_v22  ;;  %v2880_v3 = vand.u32 2147483647, %v2405_v22  ;;  %vm2876_vm8 = vweird.f32 %v2405_v22 }
 0x523   : > { %v7435_v37 = vmul.f32 %v7429_v54, %v3293_v4  ;;  %v7455_v45 = vpop.f32.mrf.mxu3  ;;  %v2870_v60 = vmul.f32 %v2869_v5, %v7060_v42 }
 0x524   : > { %v2883_v15 = vor.u32 1.1754944e-38, %v2882_v39  ;;  %vm2881_vm10 = vcmp.eq.f32.partialorder %v2880_v3, 8.507059e+37 }
 0x525   : > { %5180 = vrsqrt.f32 %v7435_v37  ;;  %vm3433_vm11 = vcmp.eq.f32.partialorder %v7435_v37, inf  ;;  %v3436_v47 = vand.u32 2147483648, %v7435_v37  ;;  %vm3435_vm13 = vcmp.eq.f32.partialorder %v7435_v37, 0.0 }
 0x528   : > { %v5179_v9 = vpop.eup %5178  ;;  %3129 = vadd.xlane.f32.xlu0 %v3128_v53 }
 0x529   : > { %v2872_v28 = vmul.f32 %v5179_v9, %v2405_v22  ;;  %vm2877_vm6 = vweird.f32 %v5179_v9 }
 0x52a   : > { %v3115_v25 = vpop.xlane.xlu1 %3114  ;;  %v3296_v44 = vpop.xlane.xlu2 %3295  ;;  %vm2878_vm9 = vmor %vm2876_vm8, %vm2877_vm6 }
 0x52b   : > { %v2873_v17 = vsub.f32 1.0, %v2872_v28  ;;  %v5181_v62 = vpop.eup %5180  ;;  %v3202_v16 = vmul.f32 %v7188_v59, %v3115_v25  ;;  %v7450_v11 = vmul.f32 %v7429_v54, %v3296_v44 }
 0x52c   : > { %v3427_v57 = vmul.f32 %v5181_v62, %v7435_v37 }
 0x52d   : > { %v2874_v50 = vmul.f32 %v5179_v9, %v2873_v17  ;;  %v7459_v10 = vsub.f32 %v3066_v51, %v3202_v16  ;;  %5182 = vrsqrt.f32 %v7450_v11  ;;  %v7491_v16 = vadd.f32 %v7386_v8, %v7418_v12  ;;  %v4968_v12 = vld [vmem:[%s8562_s5 + $0x10] sm:$0xff] }
 0x52e   : > { %v3428_v26 = vmul.f32 %v5181_v62, %v3427_v57  ;;  %vm3445_vm14 = vcmp.eq.f32.partialorder %v7450_v11, inf  ;;  %vm3447_vm15 = vcmp.eq.f32.partialorder %v7450_v11, 0.0 }
 0x52f   : > { %v2875_v2 = vadd.f32 %v5179_v9, %v2874_v50  ;;  %v3266_v32 = vmul.f32 %v7459_v10, %v7459_v10 }
 0x530   : > { %v3429_v30 = vmul.f32 0.5, %v3428_v26 }
 0x531   : > { %v2879_v40 = vsel %vm2878_vm9, %v5179_v9, %v2875_v2  ;;  %v3312_v41 = vsel %vm3091_vm12, %v3266_v32, 0.0 }
 0x532   : > { %v2884_v51 = vsel %vm2881_vm10, %v2883_v15, %v2879_v40  ;;  %v3430_v49 = vsub.f32 1.5, %v3429_v30  ;;  %v3118_v24 = vpop.xlane.xlu1 %3117  ;;  %3313 = vadd.xlane.f32.xlu2 %v3312_v41  ;;  %v3299_v4 = vpop.xlane.xlu2 %3298  ;;  %v3074_v30 = vmax.f32 %v7491_v16, 0.0 }
 0x533   : > { %v2885_v22 = vmul.f32 %v2884_v51, %v7118_v27  ;;  %v5183_v53 = vpop.eup %5182  ;;  %v3203_v18 = vmul.f32 %v7188_v59, %v3118_v24  ;;  %v7469_v28 = vmul.f32 %v7429_v54, %v3299_v4  ;;  %v7478_v27 = vpop.f32.mrf.mxu3  ;;  %v3448_v24 = vand.u32 2147483648, %v7450_v11 }
 0x534   : > { %v3431_v21 = vmul.f32 %v5181_v62, %v3430_v49  ;;  %v3439_v9 = vmul.f32 %v5183_v53, %v7450_v11  ;;  %v7516_v49 = vadd.f32 %v7386_v8, %v7432_v48 }
 0x535   : > { %v2901_v25 = vpack.c.bf16 %v2885_v22, %v2870_v60  ;;  %v7474_v44 = vsub.f32 %v3067_v43, %v3203_v18  ;;  %5184 = vrsqrt.f32 %v7469_v28  ;;  %v4969_v43 = vld [vmem:[%s8562_s5 + $0x18] sm:$0xff]  ;;  %v3137_v18 = vsel %vm3091_vm12, %v3074_v30, 0.0 }
 0x536   : > { %v3432_v42 = vmul.f32 %v3431_v21, %v7435_v37  ;;  %v3440_v38 = vmul.f32 %v5183_v53, %v3439_v9  ;;  %4426 = vmatpush.bf16.msra.mxu0 %v4969_v43  ;;  %vm3457_vm0 = vcmp.eq.f32.partialorder %v7469_v28, inf  ;;  %vm3459_vm1 = vcmp.eq.f32.partialorder %v7469_v28, 0.0 }
 0x537   : > { %3053 = vmatmul.bf16.gmra.mxu3 %v2901_v25  ;;  %v3267_v17 = vmul.f32 %v7474_v44, %v7474_v44 }
 0x538   : > { %v3434_v62 = vsel %vm3433_vm11, %v7435_v37, %v3432_v42  ;;  %v3441_v46 = vmul.f32 0.5, %v3440_v38 }
 0x539   : > { %v3437_v34 = vsel %vm3435_vm13, %v3436_v47, %v3434_v62  ;;  %v3315_v39 = vsel %vm3091_vm12, %v3267_v17, 0.0  ;;  %v4966_v47 = vld [vmem:[%s8562_s5] sm:$0xff] }
 0x53a   : > { %v7494_v50 = vadd.f32 1e-05, %v3437_v34  ;;  %v3442_v3 = vsub.f32 1.5, %v3441_v46  ;;  %3316 = vadd.xlane.f32.xlu2 %v3315_v39  ;;  %v3121_v14 = vpop.xlane.xlu2 %3120  ;;  %v7496_v26 = vpop.xlane.xlu1 %3307  ;;  %4427 = vmatpush.bf16.msra.mxu0 %v4968_v12  ;;  %v3075_v46 = vmax.f32 %v7516_v49, 0.0 }
 0x53b   : > { %v3302_v57 = vpop.xlane.xlu0 %3301  ;;  %v5185_v2 = vpop.eup %5184  ;;  %v3204_v32 = vmul.f32 %v7188_v59, %v3121_v14 }
 0x53c   : > { %v7499_v37 = vmul.f32 %v7429_v54, %v3302_v57  ;;  %5186 = vrcp.f32 %v7494_v50  ;;  %v3443_v5 = vmul.f32 %v5183_v53, %v3442_v3  ;;  %v3451_v15 = vmul.f32 %v5185_v2, %v7469_v28  ;;  %v7531_v22 = vpop.f32.mrf.mxu3 }
 0x53d   : > { %v7510_v40 = vsub.f32 %v3068_v56, %v3204_v32  ;;  %v7527_v56 = vadd.f32 %v7386_v8, %v7455_v45  ;;  %vm3847_vm4 = vweird.f32 %v7494_v50 }
 0x53e   : > { %v3444_v41 = vmul.f32 %v3443_v5, %v7450_v11  ;;  %v3452_v51 = vmul.f32 %v5185_v2, %v3451_v15  ;;  %5188 = vrsqrt.f32 %v7499_v37  ;;  %4428 = vmatpush.bf16.msra.mxu0 %v4967_v13  ;;  %v7562_v5 = vadd.f32 %v7386_v8, %v7478_v27 }
 0x53f   : > { %v3268_v4 = vmul.f32 %v7510_v40, %v7510_v40  ;;  %v3076_v43 = vmax.f32 %v7527_v56, 0.0  ;;  %v3460_v27 = vand.u32 2147483648, %v7469_v28  ;;  %vm3469_vm3 = vcmp.eq.f32.partialorder %v7499_v37, inf }
 0x540   : > { %v3446_v60 = vsel %vm3445_vm14, %v7450_v11, %v3444_v41  ;;  %v3453_v48 = vmul.f32 0.5, %v3452_v51  ;;  %vm3471_vm5 = vcmp.eq.f32.partialorder %v7499_v37, 0.0 }
 0x541   : > { %v3449_v53 = vsel %vm3447_vm15, %v3448_v24, %v3446_v60  ;;  %v3318_v21 = vsel %vm3091_vm12, %v3268_v4, 0.0  ;;  %v3143_v7 = vsel %vm3091_vm12, %v3076_v43, 0.0 }
 0x542   : > { %v7537_v9 = vpop.eup %5186  ;;  %v7539_v25 = vadd.f32 1e-05, %v3449_v53  ;;  %v3454_v45 = vsub.f32 1.5, %v3453_v48  ;;  %3138 = vadd.xlane.f32.xlu2 %v3137_v18  ;;  %3319 = vadd.xlane.f32.xlu0 %v3318_v21  ;;  %v3124_v42 = vpop.xlane.xlu2 %3123  ;;  %v3851_v21 = vand.u32 2147483647, %v7494_v50 }
 0x543   : > { %v7541_v38 = vpop.xlane.xlu1 %3310  ;;  %v3205_v11 = vmul.f32 %v7188_v59, %v3124_v42  ;;  %v3843_v17 = vmul.f32 %v7537_v9, %v7494_v50  ;;  %4429 = vmatpush.bf16.msra.mxu0 %v4966_v47  ;;  %vm3848_vm2 = vweird.f32 %v7537_v9 }
 0x544   : > { %v5189_v62 = vpop.eup %5188  ;;  %5190 = vrcp.f32 %v7539_v25  ;;  %v3455_v34 = vmul.f32 %v5185_v2, %v3454_v45  ;;  %v3140_v2 = vsel %vm3091_vm12, %v3075_v46, 0.0  ;;  %v7580_v18 = vpop.f32.mrf.mxu3  ;;  %v3853_v45 = vand.u32 2147483648, %v7494_v50  ;;  %vm7595_vm6 = vmor %vm3847_vm4, %vm3848_vm2 }
 0x545   : > { %v3463_v39 = vmul.f32 %v5189_v62, %v7499_v37  ;;  %v7555_v57 = vsub.f32 %v3069_v31, %v3205_v11  ;;  %v3844_v32 = vsub.f32 1.0, %v3843_v17  ;;  %v3866_v50 = vand.u32 2147483647, %v7539_v25 }
 0x546   : > { %v3456_v3 = vmul.f32 %v3455_v34, %v7469_v28  ;;  %vm3852_vm8 = vcmp.eq.f32.partialorder %v3851_v21, 8.507059e+37  ;;  %vm3862_vm9 = vweird.f32 %v7539_v25 }
 0x547   : > { %v3464_v14 = vmul.f32 %v5189_v62, %v3463_v39  ;;  %v3269_v12 = vmul.f32 %v7555_v57, %v7555_v57  ;;  %v3845_v41 = vmul.f32 %v7537_v9, %v3844_v32  ;;  %vm3867_vm11 = vcmp.eq.f32.partialorder %v3866_v50, 8.507059e+37 }
 0x548   : > { %v3458_v24 = vsel %vm3457_vm0, %v7469_v28, %v3456_v3  ;;  %v3472_v3 = vand.u32 2147483648, %v7499_v37 }
 0x549   : > { %v3465_v31 = vmul.f32 0.5, %v3464_v14  ;;  %v3321_v15 = vsel %vm3091_vm12, %v3269_v12, 0.0  ;;  %v3846_v48 = vadd.f32 %v7537_v9, %v3845_v41  ;;  %v3461_v17 = vsel %vm3459_vm1, %v3460_v27, %v3458_v24 }
 0x54a   : > { %v5191_v51 = vpop.eup %5190  ;;  %3141 = vadd.xlane.f32.xlu2 %v3140_v2  ;;  %3322 = vadd.xlane.f32.xlu0 %v3321_v15  ;;  %v3854_v14 = vor.u32 1.1754944e-38, %v3853_v45  ;;  %v3812_v12 = vadd.f32 1e-05, %v3461_v17 }
 0x54b   : > { %v3133_v4 = vpop.xlane.xlu1 %3132  ;;  %v3466_v13 = vsub.f32 1.5, %v3465_v31  ;;  %v3858_v53 = vmul.f32 %v5191_v51, %v7539_v25  ;;  %vm3863_vm7 = vweird.f32 %v5191_v51  ;;  %v3850_v28 = vsel %vm7595_vm6, %v7537_v9, %v3846_v48 }
 0x54c   : > { %v3208_v60 = vmul.f32 %v7188_v59, %v3133_v4  ;;  %v3855_v41 = vsel %vm3852_vm8, %v3854_v14, %v3850_v28  ;;  %vm3864_vm10 = vmor %vm3862_vm9, %vm3863_vm7  ;;  %5192 = vrcp.f32 %v3812_v12  ;;  %vm3877_vm14 = vweird.f32 %v3812_v12 }
 0x54d   : > { %v3467_v42 = vmul.f32 %v5189_v62, %v3466_v13  ;;  %v3859_v47 = vsub.f32 1.0, %v3858_v53  ;;  %v3868_v62 = vand.u32 2147483648, %v7539_v25 }
 0x54e   : > { %v7588_v11 = vsub.f32 %v3072_v61, %v3208_v60  ;;  %v3077_v60 = vmax.f32 %v7562_v5, 0.0 }
 0x54f   : > { %v3468_v19 = vmul.f32 %v3467_v42, %v7499_v37  ;;  %v3860_v39 = vmul.f32 %v5191_v51, %v3859_v47  ;;  %v3869_v9 = vor.u32 1.1754944e-38, %v3868_v62  ;;  %v3883_v62 = vand.u32 2147483648, %v3812_v12 }
 0x550   : > { %v3272_v61 = vmul.f32 %v7588_v11, %v7588_v11  ;;  %v3146_v55 = vsel %vm3091_vm12, %v3077_v60, 0.0 }
 0x551   : > { %v3470_v32 = vsel %vm3469_vm3, %v7499_v37, %v3468_v19  ;;  %v3861_v31 = vadd.f32 %v5191_v51, %v3860_v39  ;;  %v3031_v37 = vpop.f32.mrf.mxu3 }
 0x552   : > { %v3330_v2 = vsel %vm3091_vm12, %v3272_v61, 0.0  ;;  %3144 = vadd.xlane.f32.xlu0 %v3143_v7  ;;  %v3473_v24 = vsel %vm3471_vm5, %v3472_v3, %v3470_v32  ;;  %v3856_v7 = vmul.f32 %v3855_v41, %v7211_v29  ;;  %v7627_v42 = vadd.f32 %v7386_v8, %v3031_v37 }
 0x553   : > { %3331 = vadd.xlane.f32.xlu2 %v3330_v2  ;;  %v3136_v15 = vpop.xlane.xlu1 %3135  ;;  %v3865_v4 = vsel %vm3864_vm10, %v5191_v51, %v3861_v31  ;;  %v3813_v13 = vadd.f32 1e-05, %v3473_v24  ;;  %v5193_v51 = vpop.eup %5192  ;;  %v3881_v61 = vand.u32 2147483647, %v3812_v12  ;;  %v3884_v41 = vor.u32 1.1754944e-38, %v3883_v62 }
 0x554   : > { %v3209_v27 = vmul.f32 %v7188_v59, %v3136_v15  ;;  %v3870_v48 = vsel %vm3867_vm11, %v3869_v9, %v3865_v4  ;;  %v3080_v34 = vmax.f32 %v7627_v42, 0.0  ;;  %vm3878_vm13 = vweird.f32 %v5193_v51 }
 0x555   : > { %v3871_v53 = vmul.f32 %v3870_v48, %v7249_v0  ;;  %5194 = vrcp.f32 %v3813_v13  ;;  %v3898_v3 = vand.u32 2147483648, %v3813_v13  ;;  %vm3879_vm15 = vmor %vm3877_vm14, %vm3878_vm13  ;;  %v3896_v32 = vand.u32 2147483647, %v3813_v13 }
 0x556   : > { %v7620_v25 = vsub.f32 %v3073_v6, %v3209_v27  ;;  %v3873_v6 = vmul.f32 %v5193_v51, %v3812_v12  ;;  %v3155_v31 = vsel %vm3091_vm12, %v3080_v34, 0.0  ;;  %vm3882_vm1 = vcmp.eq.f32.partialorder %v3881_v61, 8.507059e+37 }
 0x557   : > { %v4322_v21 = vpack.c.bf16 %v3871_v53, %v3856_v7  ;;  %vm3892_vm2 = vweird.f32 %v3813_v13  ;;  %v3899_v12 = vor.u32 1.1754944e-38, %v3898_v3  ;;  %vm3897_vm4 = vcmp.eq.f32.partialorder %v3896_v32, 8.507059e+37 }
 0x558   : > { %v3273_v45 = vmul.f32 %v7620_v25, %v7620_v25  ;;  %v3874_v47 = vsub.f32 1.0, %v3873_v6  ;;  %v3399_v7 = vmul.f32 %v7429_v54, %v7496_v26 }
 0x559   : > { %4888 = vmatmul.msk.bf16.vlgmr.msra.gmra.mxu0 %vm3091_vm12, %v4322_v21  ;;  %v3034_v19 = vpop.f32.mrf.mxu3 }
 0x55a   : > { %v3333_v29 = vsel %vm3091_vm12, %v3273_v45, 0.0  ;;  %3147 = vadd.xlane.f32.xlu0 %v3146_v55  ;;  %v3875_v50 = vmul.f32 %v5193_v51, %v3874_v47  ;;  %v7636_v2 = vadd.f32 %v7386_v8, %v3034_v19  ;;  %5196 = vrsqrt.f32 %v3399_v7 }
 0x55b   : > { %3334 = vadd.xlane.f32.xlu2 %v3333_v29  ;;  %v5195_v0 = vpop.eup %5194  ;;  %vm3493_vm5 = vcmp.eq.f32.partialorder %v3399_v7, inf  ;;  %vm3495_vm6 = vcmp.eq.f32.partialorder %v3399_v7, 0.0 }
 0x55c   : > { %v3888_v17 = vmul.f32 %v5195_v0, %v3813_v13  ;;  %v3876_v39 = vadd.f32 %v5193_v51, %v3875_v50  ;;  %vm3893_vm0 = vweird.f32 %v5195_v0  ;;  %v3081_v4 = vmax.f32 %v7636_v2, 0.0 }
 0x55d   : > { %vm3894_vm3 = vmor %vm3892_vm2, %vm3893_vm0  ;;  %v3496_v50 = vand.u32 2147483648, %v3399_v7 }
 0x55e   : > { %v3889_v28 = vsub.f32 1.0, %v3888_v17  ;;  %v3880_v15 = vsel %vm3879_vm15, %v5193_v51, %v3876_v39  ;;  %v3158_v13 = vsel %vm3091_vm12, %v3081_v4, 0.0 }
 0x55f   : > { %v3885_v24 = vsel %vm3882_vm1, %v3884_v41, %v3880_v15 }
 0x560   : > { %v3890_v14 = vmul.f32 %v5195_v0, %v3889_v28  ;;  %v3886_v53 = vmul.f32 %v3885_v24, %v7289_v63  ;;  %v5197_v45 = vpop.eup %5196  ;;  %v7652_v63 = vmul.f32 %v7429_v54, %v7541_v38 }
 0x561   : > { %v3487_v51 = vmul.f32 %v5197_v45, %v3399_v7 }
 0x562   : > { %v3891_v9 = vadd.f32 %v5195_v0, %v3890_v14  ;;  %5198 = vrsqrt.f32 %v7652_v63  ;;  %vm3505_vm9 = vcmp.eq.f32.partialorder %v7652_v63, inf  ;;  %vm3507_vm10 = vcmp.eq.f32.partialorder %v7652_v63, 0.0 }
 0x563   : > { %3156 = vadd.xlane.f32.xlu2 %v3155_v31  ;;  %v3488_v55 = vmul.f32 %v5197_v45, %v3487_v51 }
 0x564   : > { %v3895_v27 = vsel %vm3894_vm3, %v5195_v0, %v3891_v9 }
 0x565   : > { %v3900_v48 = vsel %vm3897_vm4, %v3899_v12, %v3895_v27  ;;  %v3489_v29 = vmul.f32 0.5, %v3488_v55 }
 0x566   : > { %v3901_v37 = vmul.f32 %v3900_v48, %v7320_v23 }
 0x567   : > { %v3490_v6 = vsub.f32 1.5, %v3489_v29 }
 0x568   : > { %v4323_v21 = vpack.c.bf16 %v3901_v37, %v3886_v53  ;;  %v5199_v62 = vpop.eup %5198 }
 0x569   : > { %v3491_v0 = vmul.f32 %v5197_v45, %v3490_v6  ;;  %v3499_v61 = vmul.f32 %v5199_v62, %v7652_v63  ;;  %v7681_v6 = vadd.f32 %v7386_v8, %v7531_v22 }
 0x56a   : > { %4889 = vmatmul.msk.bf16.gmra.mxu0 %vm3091_vm12, %v4323_v21 }
 0x56b   : > { %3159 = vadd.xlane.f32.xlu2 %v3158_v13  ;;  %v3492_v23 = vmul.f32 %v3491_v0, %v3399_v7  ;;  %v3500_v14 = vmul.f32 %v5199_v62, %v3499_v61 }
 0x56d   : > { %v3494_v47 = vsel %vm3493_vm5, %v3399_v7, %v3492_v23  ;;  %v3501_v9 = vmul.f32 0.5, %v3500_v14 }
 0x56e   : > { %v3497_v19 = vsel %vm3495_vm6, %v3496_v50, %v3494_v47  ;;  %v3078_v50 = vmax.f32 %v7681_v6, 0.0 }
 0x56f   : > { %v7657_v28 = vadd.f32 1e-05, %v3497_v19  ;;  %v3502_v33 = vsub.f32 1.5, %v3501_v9  ;;  %v7695_v19 = vadd.f32 %v7386_v8, %v7580_v18 }
 0x571   : > { %v3503_v55 = vmul.f32 %v5199_v62, %v3502_v33  ;;  %vm3922_vm13 = vweird.f32 %v7657_v28 }
 0x573   : > { %v3504_v47 = vmul.f32 %v3503_v55, %v7652_v63 }
 0x575   : > { %v3506_v61 = vsel %vm3505_vm9, %v7652_v63, %v3504_v47 }
 0x58b   : > { %v3305_v26 = vpop.xlane.xlu0 %3304 }
 0x58c   : > { %v3398_v17 = vmul.f32 %v7429_v54, %v3305_v26  ;;  %v7684_v26 = vpop.f32.mrf.mxu3 }
 0x58e   : > { %5200 = vrsqrt.f32 %v3398_v17  ;;  %vm3481_vm7 = vcmp.eq.f32.partialorder %v3398_v17, inf  ;;  %v3484_v45 = vand.u32 2147483648, %v3398_v17  ;;  %vm3483_vm8 = vcmp.eq.f32.partialorder %v3398_v17, 0.0 }
 0x58f   : > { %5202 = vrcp.f32 %v7657_v28 }
 0x593   : > { %v3127_v39 = vpop.xlane.xlu0 %3126 }
 0x594   : > { %v5201_v38 = vpop.eup %5200  ;;  %v3206_v3 = vmul.f32 %v7188_v59, %v3127_v39  ;;  %v3508_v39 = vand.u32 2147483648, %v7652_v63  ;;  %v3926_v63 = vand.u32 2147483647, %v7657_v28 }
 0x595   : > { %v3475_v32 = vmul.f32 %v5201_v38, %v3398_v17  ;;  %v7668_v7 = vpop.eup %5202 }
 0x596   : > { %v7662_v31 = vsub.f32 %v3070_v52, %v3206_v3  ;;  %v3918_v13 = vmul.f32 %v7668_v7, %v7657_v28  ;;  %vm3923_vm11 = vweird.f32 %v7668_v7  ;;  %vm3927_vm1 = vcmp.eq.f32.partialorder %v3926_v63, 8.507059e+37 }
 0x597   : > { %v3476_v15 = vmul.f32 %v5201_v38, %v3475_v32  ;;  %v3509_v32 = vsel %vm3507_vm10, %v3508_v39, %v3506_v61  ;;  %vm7709_vm14 = vmor %vm3922_vm13, %vm3923_vm11 }
 0x598   : > { %v3270_v41 = vmul.f32 %v7662_v31, %v7662_v31  ;;  %v3919_v23 = vsub.f32 1.0, %v3918_v13 }
 0x599   : > { %v3477_v24 = vmul.f32 0.5, %v3476_v15  ;;  %v3079_v15 = vmax.f32 %v7695_v19, 0.0 }
 0x59a   : > { %v3324_v12 = vsel %vm3091_vm12, %v3270_v41, 0.0  ;;  %v3920_v22 = vmul.f32 %v7668_v7, %v3919_v23  ;;  %v3928_v41 = vand.u32 2147483648, %v7657_v28 }
 0x59b   : > { %v3478_v27 = vsub.f32 1.5, %v3477_v24  ;;  %3325 = vadd.xlane.f32.xlu1 %v3324_v12  ;;  %v3130_v48 = vpop.xlane.xlu0 %3129  ;;  %v3152_v28 = vsel %vm3091_vm12, %v3079_v15, 0.0 }
 0x59c   : > { %v3207_v53 = vmul.f32 %v7188_v59, %v3130_v48  ;;  %v3921_v14 = vadd.f32 %v7668_v7, %v3920_v22  ;;  %v7714_v48 = vpop.f32.mrf.mxu3  ;;  %v3929_v55 = vor.u32 1.1754944e-38, %v3928_v41 }
 0x59d   : > { %v3479_v52 = vmul.f32 %v5201_v38, %v3478_v27  ;;  %v3149_v38 = vsel %vm3091_vm12, %v3078_v50, 0.0 }
 0x59e   : > { %v7673_v37 = vsub.f32 %v3071_v20, %v3207_v53 }
 0x59f   : > { %v3480_v21 = vmul.f32 %v3479_v52, %v3398_v17  ;;  %v3925_v52 = vsel %vm7709_vm14, %v7668_v7, %v3921_v14 }
 0x5a0   : > { %v3271_v51 = vmul.f32 %v7673_v37, %v7673_v37 }
 0x5a1   : > { %v3482_v29 = vsel %vm3481_vm7, %v3398_v17, %v3480_v21  ;;  %v7722_v21 = vadd.f32 1e-05, %v3509_v32 }
 0x5a2   : > { %v3327_v36 = vsel %vm3091_vm12, %v3271_v51, 0.0  ;;  %v3485_v20 = vsel %vm3483_vm8, %v3484_v45, %v3482_v29 }
 0x5a3   : > { %3328 = vadd.xlane.f32.xlu1 %v3327_v36  ;;  %v3814_v0 = vadd.f32 1e-05, %v3485_v20  ;;  %v3930_v20 = vsel %vm3927_vm1, %v3929_v55, %v3925_v52  ;;  %vm3937_vm8 = vweird.f32 %v7722_v21 }
 0x5a4   : > { %v3931_v14 = vmul.f32 %v3930_v20, %v7326_v1 }
 0x5a5   : > { %5204 = vrcp.f32 %v3814_v0  ;;  %v3314_v62 = vpop.xlane.xlu2 %3313  ;;  %v3913_v33 = vand.u32 2147483648, %v3814_v0  ;;  %v3911_v51 = vand.u32 2147483647, %v3814_v0  ;;  %vm3907_vm0 = vweird.f32 %v3814_v0 }
 0x5a6   : > { %v7689_v17 = vmul.f32 %v7429_v54, %v3314_v62 }
 0x5a7   : > { %v3914_v7 = vor.u32 1.1754944e-38, %v3913_v33  ;;  %vm3912_vm3 = vcmp.eq.f32.partialorder %v3911_v51, 8.507059e+37 }
 0x5a8   : > { %5206 = vrsqrt.f32 %v7689_v17  ;;  %vm3517_vm4 = vcmp.eq.f32.partialorder %v7689_v17, inf  ;;  %vm3519_vm5 = vcmp.eq.f32.partialorder %v7689_v17, 0.0 }
 0x5ab   : > { %v5205_v3 = vpop.eup %5204  ;;  %3150 = vadd.xlane.f32.xlu1 %v3149_v38 }
 0x5ac   : > { %v3903_v18 = vmul.f32 %v5205_v3, %v3814_v0  ;;  %vm3908_vm15 = vweird.f32 %v5205_v3 }
 0x5ad   : > { %v3317_v9 = vpop.xlane.xlu2 %3316  ;;  %vm3909_vm2 = vmor %vm3907_vm0, %vm3908_vm15 }
 0x5ae   : > { %v3904_v24 = vsub.f32 1.0, %v3903_v18  ;;  %v5207_v27 = vpop.eup %5206  ;;  %v7717_v53 = vmul.f32 %v7429_v54, %v3317_v9 }
 0x5af   : > { %v3511_v13 = vmul.f32 %v5207_v27, %v7689_v17 }
 0x5b0   : > { %v3905_v45 = vmul.f32 %v5205_v3, %v3904_v24  ;;  %5208 = vrsqrt.f32 %v7717_v53  ;;  %v7737_v24 = vpop.f32.mrf.mxu3  ;;  %vm3529_vm6 = vcmp.eq.f32.partialorder %v7717_v53, inf  ;;  %vm3531_vm7 = vcmp.eq.f32.partialorder %v7717_v53, 0.0 }
 0x5b1   : > { %v3512_v29 = vmul.f32 %v5207_v27, %v3511_v13  ;;  %5210 = vrcp.f32 %v7722_v21 }
 0x5b2   : > { %v3906_v36 = vadd.f32 %v5205_v3, %v3905_v45 }
 0x5b3   : > { %3153 = vadd.xlane.f32.xlu1 %v3152_v28  ;;  %v3513_v23 = vmul.f32 0.5, %v3512_v29 }
 0x5b4   : > { %v3910_v47 = vsel %vm3909_vm2, %v5205_v3, %v3906_v36 }
 0x5b5   : > { %v3915_v62 = vsel %vm3912_vm3, %v3914_v7, %v3910_v47  ;;  %v3514_v22 = vsub.f32 1.5, %v3513_v23  ;;  %v3139_v61 = vpop.xlane.xlu2 %3138  ;;  %v3320_v39 = vpop.xlane.xlu0 %3319 }
 0x5b6   : > { %v3916_v38 = vmul.f32 %v3915_v62, %v7408_v58  ;;  %v5209_v18 = vpop.eup %5208  ;;  %v3210_v0 = vmul.f32 %v7188_v59, %v3139_v61  ;;  %v7734_v32 = vmul.f32 %v7429_v54, %v3320_v39 }
 0x5b7   : > { %v3515_v41 = vmul.f32 %v5207_v27, %v3514_v22  ;;  %v3523_v3 = vmul.f32 %v5209_v18, %v7717_v53  ;;  %v7744_v58 = vpop.eup %5210  ;;  %v3520_v27 = vand.u32 2147483648, %v7689_v17 }
 0x5b8   : > { %v4324_v9 = vpack.c.bf16 %v3931_v14, %v3916_v38  ;;  %v7741_v12 = vsub.f32 %v3074_v30, %v3210_v0  ;;  %5212 = vrsqrt.f32 %v7734_v32  ;;  %v3933_v45 = vmul.f32 %v7744_v58, %v7722_v21  ;;  %v7773_v39 = vpop.f32.mrf.mxu3 }
 0x5b9   : > { %v3516_v1 = vmul.f32 %v3515_v41, %v7689_v17  ;;  %v3524_v63 = vmul.f32 %v5209_v18, %v3523_v3  ;;  %vm3938_vm9 = vweird.f32 %v7744_v58  ;;  %vm3541_vm10 = vcmp.eq.f32.partialorder %v7734_v32, inf }
 0x5ba   : > { %4890 = vmatmul.msk.bf16.gmra.mxu0 %vm3091_vm12, %v4324_v9  ;;  %v3274_v33 = vmul.f32 %v7741_v12, %v7741_v12  ;;  %v3934_v62 = vsub.f32 1.0, %v3933_v45  ;;  %v3943_v45 = vand.u32 2147483648, %v7722_v21  ;;  %vm3543_vm11 = vcmp.eq.f32.partialorder %v7734_v32, 0.0  ;;  %vm7815_vm13 = vmor %vm3937_vm8, %vm3938_vm9 }
 0x5bb   : > { %v3518_v16 = vsel %vm3517_vm4, %v7689_v17, %v3516_v1  ;;  %v3525_v30 = vmul.f32 0.5, %v3524_v63  ;;  %v7764_v17 = vadd.f32 %v7386_v8, %v7684_v26  ;;  %v3532_v26 = vand.u32 2147483648, %v7717_v53 }
 0x5bc   : > { %v3336_v52 = vsel %vm3091_vm12, %v3274_v33, 0.0  ;;  %v3521_v13 = vsel %vm3519_vm5, %v3520_v27, %v3518_v16  ;;  %v3935_v0 = vmul.f32 %v7744_v58, %v3934_v62 }
 0x5bd   : > { %v3526_v51 = vsub.f32 1.5, %v3525_v30  ;;  %3337 = vadd.xlane.f32.xlu0 %v3336_v52  ;;  %v3142_v28 = vpop.xlane.xlu2 %3141  ;;  %v7757_v55 = vpop.xlane.xlu0 %3322  ;;  %v7759_v29 = vadd.f32 1e-05, %v3521_v13  ;;  %v3082_v14 = vmax.f32 %v7764_v17, 0.0 }
 0x5be   : > { %v5213_v36 = vpop.eup %5212  ;;  %v3211_v7 = vmul.f32 %v7188_v59, %v3142_v28  ;;  %v3936_v13 = vadd.f32 %v7744_v58, %v3935_v0 }
 0x5bf   : > { %v3527_v20 = vmul.f32 %v5209_v18, %v3526_v51  ;;  %v3535_v23 = vmul.f32 %v5213_v36, %v7734_v32  ;;  %5214 = vrcp.f32 %v7759_v29  ;;  %v3161_v52 = vsel %vm3091_vm12, %v3082_v14, 0.0 }
 0x5c0   : > { %v7770_v47 = vsub.f32 %v3075_v46, %v3211_v7  ;;  %v3958_v7 = vand.u32 2147483648, %v7759_v29  ;;  %v3940_v62 = vsel %vm7815_vm13, %v7744_v58, %v3936_v13  ;;  %vm3952_vm15 = vweird.f32 %v7759_v29 }
 0x5c1   : > { %v3528_v22 = vmul.f32 %v3527_v20, %v7717_v53  ;;  %v3536_v61 = vmul.f32 %v5213_v36, %v3535_v23 }
 0x5c2   : > { %v3275_v38 = vmul.f32 %v7770_v47, %v7770_v47 }
 0x5c3   : > { %v3530_v18 = vsel %vm3529_vm6, %v7717_v53, %v3528_v22  ;;  %v3537_v49 = vmul.f32 0.5, %v3536_v61  ;;  %v7792_v53 = vadd.f32 %v7386_v8, %v7714_v48  ;;  %v3941_v48 = vand.u32 2147483647, %v7722_v21  ;;  %v7819_v21 = vpop.f32.mrf.mxu3 }
 0x5c4   : > { %v3339_v46 = vsel %vm3091_vm12, %v3275_v38, 0.0  ;;  %v3533_v41 = vsel %vm3531_vm7, %v3532_v26, %v3530_v18  ;;  %v3944_v22 = vor.u32 1.1754944e-38, %v3943_v45  ;;  %v3956_v61 = vand.u32 2147483647, %v7759_v29 }
 0x5c5   : > { %v5215_v3 = vpop.eup %5214  ;;  %v3538_v9 = vsub.f32 1.5, %v3537_v49  ;;  %3340 = vadd.xlane.f32.xlu0 %v3339_v46  ;;  %v3145_v63 = vpop.xlane.xlu0 %3144  ;;  %v7786_v27 = vadd.f32 1e-05, %v3533_v41  ;;  %vm3942_vm0 = vcmp.eq.f32.partialorder %v3941_v48, 8.507059e+37 }
 0x5c6   : > { %v7784_v1 = vpop.xlane.xlu2 %3331  ;;  %v3212_v33 = vmul.f32 %v7188_v59, %v3145_v63  ;;  %v3948_v16 = vmul.f32 %v5215_v3, %v7759_v29  ;;  %vm3953_vm14 = vweird.f32 %v5215_v3  ;;  %vm3957_vm2 = vcmp.eq.f32.partialorder %v3956_v61, 8.507059e+37 }
 0x5c7   : > { %v3539_v30 = vmul.f32 %v5213_v36, %v3538_v9  ;;  %5216 = vrcp.f32 %v7786_v27  ;;  %v3544_v36 = vand.u32 2147483648, %v7734_v32  ;;  %vm3954_vm1 = vmor %vm3952_vm15, %vm3953_vm14  ;;  %v3945_v9 = vsel %vm3942_vm0, %v3944_v22, %v3940_v62 }
 0x5c8   : > { %v7805_v8 = vsub.f32 %v3076_v43, %v3212_v33  ;;  %v3949_v28 = vsub.f32 1.0, %v3948_v16  ;;  %v3959_v33 = vor.u32 1.1754944e-38, %v3958_v7  ;;  %v3083_v16 = vmax.f32 %v7792_v53, 0.0 }
 0x5c9   : > { %v3540_v51 = vmul.f32 %v3539_v30, %v7734_v32  ;;  %v3973_v22 = vand.u32 2147483648, %v7786_v27  ;;  %vm3967_vm4 = vweird.f32 %v7786_v27 }
 0x5ca   : > { %v3276_v23 = vmul.f32 %v7805_v8, %v7805_v8  ;;  %v3950_v43 = vmul.f32 %v5215_v3, %v3949_v28  ;;  %v3164_v5 = vsel %vm3091_vm12, %v3083_v16, 0.0 }
 0x5cb   : > { %v3542_v20 = vsel %vm3541_vm10, %v7734_v32, %v3540_v51  ;;  %v7853_v51 = vld [vmem:[%s8563_s6] ss:$0 sm:$0xff]  ;;  %v7874_v62 = vpop.f32.mrf.mxu3 }
 0x5cc   : > { %v3545_v26 = vsel %vm3543_vm11, %v3544_v36, %v3542_v20  ;;  %v3342_v18 = vsel %vm3091_vm12, %v3276_v23, 0.0  ;;  %v3951_v46 = vadd.f32 %v5215_v3, %v3950_v43 }
 0x5cd   : > { %v7825_v32 = vpop.eup %5216  ;;  %3162 = vadd.xlane.f32.xlu0 %v3161_v52  ;;  %v3148_v49 = vpop.xlane.xlu0 %3147  ;;  %v7831_v0 = vadd.f32 1e-05, %v3545_v26  ;;  %3343 = vadd.xlane.f32.xlu1 %v3342_v18  ;;  %v3946_v52 = vmul.f32 %v3945_v9, %v7365_v35  ;;  %v3971_v26 = vand.u32 2147483647, %v7786_v27  ;;  %v3974_v9 = vor.u32 1.1754944e-38, %v3973_v22 }
 0x5ce   : > { %v7827_v38 = vpop.xlane.xlu2 %3334  ;;  %v3213_v58 = vmul.f32 %v7188_v59, %v3148_v49  ;;  %v3963_v41 = vmul.f32 %v7825_v32, %v7786_v27  ;;  %v3955_v63 = vsel %vm3954_vm1, %v5215_v3, %v3951_v46  ;;  %vm3968_vm3 = vweird.f32 %v7825_v32 }
 0x5cf   : > { %5218 = vrcp.f32 %v7831_v0  ;;  %v3960_v30 = vsel %vm3957_vm2, %v3959_v33, %v3955_v63  ;;  %vm7888_vm5 = vmor %vm3967_vm4, %vm3968_vm3  ;;  %v3988_v42 = vand.u32 2147483648, %v7831_v0  ;;  %vm3972_vm7 = vcmp.eq.f32.partialorder %v3971_v26, 8.507059e+37 }
 0x5d0   : > { %v7842_v29 = vsub.f32 %v3077_v60, %v3213_v58  ;;  %v3961_v13 = vmul.f32 %v3960_v30, %v7459_v10  ;;  %v3964_v45 = vsub.f32 1.0, %v3963_v41  ;;  %v7862_v10 = vld [vmem:[%s8561_s4] ss:$0 sm:$0xff]  ;;  %v3986_v58 = vand.u32 2147483647, %v7831_v0 }
 0x5d1   : > { %v7866_v28 = vadd.f32 %v7862_v10, %v7737_v24  ;;  %vm3982_vm8 = vweird.f32 %v7831_v0  ;;  %v7903_v30 = vadd.f32 %v7862_v10, %v7773_v39  ;;  %v3404_v26 = vmul.f32 %v7429_v54, %v7757_v55 }
 0x5d2   : > { %v3277_v3 = vmul.f32 %v7842_v29, %v7842_v29  ;;  %v4325_v48 = vpack.c.bf16 %v3961_v13, %v3946_v52  ;;  %v3965_v35 = vmul.f32 %v7825_v32, %v3964_v45  ;;  %v3989_v45 = vor.u32 1.1754944e-38, %v3988_v42 }
 0x5d3   : > { %v3084_v49 = vmax.f32 %v7866_v28, 0.0  ;;  %vm3987_vm10 = vcmp.eq.f32.partialorder %v3986_v58, 8.507059e+37  ;;  %5220 = vrsqrt.f32 %v3404_v26  ;;  %vm3553_vm11 = vcmp.eq.f32.partialorder %v3404_v26, inf }
 0x5d4   : > { %v3345_v7 = vsel %vm3091_vm12, %v3277_v3, 0.0  ;;  %4891 = vmatmul.msk.bf16.gmra.mxu0 %vm3091_vm12, %v4325_v48  ;;  %v3966_v56 = vadd.f32 %v7825_v32, %v3965_v35  ;;  %vm3555_vm13 = vcmp.eq.f32.partialorder %v3404_v26, 0.0 }
 0x5d5   : > { %v5219_v60 = vpop.eup %5218  ;;  %3165 = vadd.xlane.f32.xlu0 %v3164_v5  ;;  %3346 = vadd.xlane.f32.xlu1 %v3345_v7  ;;  %v3167_v13 = vsel %vm3091_vm12, %v3084_v49, 0.0 }
 0x5d6   : > { %v3157_v36 = vpop.xlane.xlu2 %3156  ;;  %v4431_v23 = vpop.f32.mrf.mxu0  ;;  %v3978_v43 = vmul.f32 %v5219_v60, %v7831_v0  ;;  %v3970_v27 = vsel %vm7888_vm5, %v7825_v32, %v3966_v56  ;;  %vm3983_vm6 = vweird.f32 %v5219_v60 }
 0x5d7   : > { %v3216_v20 = vmul.f32 %v7188_v59, %v3157_v36  ;;  %v4432_v24 = vadd.f32 %v7853_v51, %v4431_v23  ;;  %v3975_v32 = vsel %vm3972_vm7, %v3974_v9, %v3970_v27  ;;  %vm3984_vm9 = vmor %vm3982_vm8, %vm3983_vm6  ;;  %v3051_v23 = vpop.f32.mrf.mxu3  ;;  %v3407_v9 = vmul.f32 %v7429_v54, %v7784_v1 }
 0x5d8   : > { %v3979_v18 = vsub.f32 1.0, %v3978_v43  ;;  %v3976_v36 = vmul.f32 %v3975_v32, %v7474_v44  ;;  %v7921_v43 = vadd.f32 %v7862_v10, %v3051_v23  ;;  %v7950_v23 = vmul.f32 %v7429_v54, %v7827_v38 }
 0x5d9   : > { %v7880_v61 = vsub.f32 %v3080_v34, %v3216_v20  ;;  %4511 = vst [vmem:[%s7885_s18] sm:$0xff] %v4432_v24  ;;  %v3085_v20 = vmax.f32 %v7903_v30, 0.0  ;;  %v5221_v27 = vpop.eup %5220  ;;  %5222 = vrsqrt.f32 %v3407_v9  ;;  %vm3589_vm14 = vcmp.eq.f32.partialorder %v3407_v9, inf }
 0x5da   : > { %v3980_v41 = vmul.f32 %v5219_v60, %v3979_v18  ;;  %vm3591_vm15 = vcmp.eq.f32.partialorder %v3407_v9, 0.0  ;;  %vm3601_vm8 = vcmp.eq.f32.partialorder %v7950_v23, inf }
 0x5db   : > { %v3280_v34 = vmul.f32 %v7880_v61, %v7880_v61  ;;  %v3170_v44 = vsel %vm3091_vm12, %v3085_v20, 0.0 }
 0x5dc   : > { %v3981_v33 = vadd.f32 %v5219_v60, %v3980_v41  ;;  %v3547_v41 = vmul.f32 %v5221_v27, %v3404_v26 }
 0x5dd   : > { %v3354_v63 = vsel %vm3091_vm12, %v3280_v34, 0.0  ;;  %3168 = vadd.xlane.f32.xlu1 %v3167_v13 }
 0x5de   : > { %3355 = vadd.xlane.f32.xlu0 %v3354_v63  ;;  %v3160_v52 = vpop.xlane.xlu2 %3159  ;;  %v4433_v48 = vpop.f32.mrf.mxu0  ;;  %v3985_v5 = vsel %vm3984_vm9, %v5219_v60, %v3981_v33  ;;  %v3548_v63 = vmul.f32 %v5221_v27, %v3547_v41 }
 0x5df   : > { %v3217_v3 = vmul.f32 %v7188_v59, %v3160_v52  ;;  %v4434_v0 = vadd.f32 %v7853_v51, %v4433_v48  ;;  %v3990_v39 = vsel %vm3987_vm10, %v3989_v45, %v3985_v5  ;;  %v3054_v22 = vpop.f32.mrf.mxu3  ;;  %v5223_v52 = vpop.eup %5222 }
 0x5e0   : > { %v3991_v7 = vmul.f32 %v3990_v39, %v7510_v40  ;;  %v7934_v18 = vadd.f32 %v7862_v10, %v3054_v22  ;;  %v3549_v33 = vmul.f32 0.5, %v3548_v63  ;;  %v3583_v32 = vmul.f32 %v5223_v52, %v3407_v9 }
 0x5e1   : > { %v7912_v35 = vsub.f32 %v3081_v4, %v3217_v3  ;;  %4512 = vst [vmem:[%s7885_s18 + $0x8] sm:$0xff] %v4434_v0  ;;  %v3088_v4 = vmax.f32 %v7921_v43, 0.0 }
 0x5e2   : > { %v4326_v56 = vpack.c.bf16 %v3991_v7, %v3976_v36  ;;  %v3089_v42 = vmax.f32 %v7934_v18, 0.0  ;;  %v3550_v13 = vsub.f32 1.5, %v3549_v33  ;;  %v3584_v3 = vmul.f32 %v5223_v52, %v3583_v32 }
 0x5e3   : > { %v3281_v60 = vmul.f32 %v7912_v35, %v7912_v35  ;;  %v3179_v46 = vsel %vm3091_vm12, %v3088_v4, 0.0  ;;  %v3556_v7 = vand.u32 2147483648, %v3404_v26 }
 0x5e4   : > { %4892 = vmatmul.msk.bf16.gmra.mxu0 %vm3091_vm12, %v4326_v56  ;;  %v3182_v55 = vsel %vm3091_vm12, %v3089_v42, 0.0  ;;  %v3551_v45 = vmul.f32 %v5221_v27, %v3550_v13  ;;  %v3585_v0 = vmul.f32 0.5, %v3584_v3  ;;  %v3592_v13 = vand.u32 2147483648, %v3407_v9 }
 0x5e5   : > { %v3357_v2 = vsel %vm3091_vm12, %v3281_v60, 0.0  ;;  %3171 = vadd.xlane.f32.xlu1 %v3170_v44 }
 0x5e6   : > { %3358 = vadd.xlane.f32.xlu0 %v3357_v2  ;;  %v3552_v48 = vmul.f32 %v3551_v45, %v3404_v26  ;;  %v3586_v1 = vsub.f32 1.5, %v3585_v0 }
 0x5e7   : > { %v4436_v40 = vpop.f32.mrf.mxu0 }
 0x5e8   : > { %v4437_v24 = vadd.f32 %v7853_v51, %v4436_v40  ;;  %v3554_v36 = vsel %vm3553_vm11, %v3404_v26, %v3552_v48  ;;  %v3587_v40 = vmul.f32 %v5223_v52, %v3586_v1 }
 0x5e9   : > { %v3557_v56 = vsel %vm3555_vm13, %v3556_v7, %v3554_v36 }
 0x5ea   : > { %4513 = vst [vmem:[%s7885_s18 + $0x10] sm:$0xff] %v4437_v24  ;;  %v7953_v2 = vadd.f32 1e-05, %v3557_v56 }
 0x5ec   : > { %vm3997_vm5 = vweird.f32 %v7953_v2 }
 0x5ee   : > { %3180 = vadd.xlane.f32.xlu0 %v3179_v46 }
 0x5ef   : > { %v4438_v58 = vpop.f32.mrf.mxu0 }
 0x5f0   : > { %v4439_v34 = vadd.f32 %v7853_v51, %v4438_v58  ;;  %v3588_v58 = vmul.f32 %v3587_v40, %v3407_v9 }
 0x5f2   : > { %4514 = vst [vmem:[%s7885_s18 + $0x18] sm:$0xff] %v4439_v34  ;;  %v3590_v63 = vsel %vm3589_vm14, %v3407_v9, %v3588_v58  ;;  %vm3603_vm14 = vcmp.eq.f32.partialorder %v7950_v23, 0.0 }
 0x5f3   : > { %v3593_v36 = vsel %vm3591_vm15, %v3592_v13, %v3590_v63 }
 0x5f6   : > { %3183 = vadd.xlane.f32.xlu0 %v3182_v55 }
 0x60e   : > { %v3326_v5 = vpop.xlane.xlu1 %3325 }
 0x60f   : > { %v3405_v39 = vmul.f32 %v7429_v54, %v3326_v5 }
 0x611   : > { %5224 = vrsqrt.f32 %v3405_v39  ;;  %vm3565_vm0 = vcmp.eq.f32.partialorder %v3405_v39, inf  ;;  %v3568_v7 = vand.u32 2147483648, %v3405_v39  ;;  %vm3567_vm1 = vcmp.eq.f32.partialorder %v3405_v39, 0.0 }
 0x612   : > { %5226 = vrsqrt.f32 %v7950_v23 }
 0x616   : > { %v3329_v60 = vpop.xlane.xlu1 %3328 }
 0x617   : > { %v5225_v44 = vpop.eup %5224  ;;  %v3406_v24 = vmul.f32 %v7429_v54, %v3329_v60 }
 0x618   : > { %v3559_v22 = vmul.f32 %v5225_v44, %v3405_v39  ;;  %v5227_v38 = vpop.eup %5226 }
 0x619   : > { %5228 = vrsqrt.f32 %v3406_v24  ;;  %v3595_v26 = vmul.f32 %v5227_v38, %v7950_v23  ;;  %vm3577_vm2 = vcmp.eq.f32.partialorder %v3406_v24, inf  ;;  %vm3579_vm3 = vcmp.eq.f32.partialorder %v3406_v24, 0.0 }
 0x61a   : > { %v3560_v46 = vmul.f32 %v5225_v44, %v3559_v22  ;;  %5230 = vrcp.f32 %v7953_v2 }
 0x61b   : > { %v3596_v48 = vmul.f32 %v5227_v38, %v3595_v26 }
 0x61c   : > { %v3561_v34 = vmul.f32 0.5, %v3560_v46 }
 0x61d   : > { %v3597_v40 = vmul.f32 0.5, %v3596_v48 }
 0x61e   : > { %v3562_v27 = vsub.f32 1.5, %v3561_v34  ;;  %v3151_v55 = vpop.xlane.xlu1 %3150 }
 0x61f   : > { %v5229_v41 = vpop.eup %5228  ;;  %v3214_v33 = vmul.f32 %v7188_v59, %v3151_v55 }
 0x620   : > { %v7959_v52 = vpop.eup %5230  ;;  %v3563_v32 = vmul.f32 %v5225_v44, %v3562_v27  ;;  %v3571_v45 = vmul.f32 %v5229_v41, %v3406_v24 }
 0x621   : > { %v7963_v3 = vsub.f32 %v3078_v50, %v3214_v33  ;;  %v3993_v56 = vmul.f32 %v7959_v52, %v7953_v2  ;;  %v7970_v50 = vadd.f32 1e-05, %v3593_v36  ;;  %v3580_v33 = vand.u32 2147483648, %v3406_v24 }
 0x622   : > { %v3564_v5 = vmul.f32 %v3563_v32, %v3405_v39  ;;  %v3572_v0 = vmul.f32 %v5229_v41, %v3571_v45  ;;  %v7983_v45 = vadd.f32 %v7862_v10, %v7819_v21  ;;  %vm3998_vm4 = vweird.f32 %v7959_v52 }
 0x623   : > { %v3278_v1 = vmul.f32 %v7963_v3, %v7963_v3  ;;  %v3994_v26 = vsub.f32 1.0, %v3993_v56  ;;  %v4003_v56 = vand.u32 2147483648, %v7953_v2  ;;  %vm8001_vm6 = vmor %vm3997_vm5, %vm3998_vm4 }
 0x624   : > { %v3566_v60 = vsel %vm3565_vm0, %v3405_v39, %v3564_v5  ;;  %v3573_v44 = vmul.f32 0.5, %v3572_v0  ;;  %v3598_v39 = vsub.f32 1.5, %v3597_v40  ;;  %v3086_v21 = vmax.f32 %v7983_v45, 0.0 }
 0x625   : > { %v3348_v9 = vsel %vm3091_vm12, %v3278_v1, 0.0  ;;  %v3569_v6 = vsel %vm3567_vm1, %v3568_v7, %v3566_v60  ;;  %v3995_v32 = vmul.f32 %v7959_v52, %v3994_v26  ;;  %v8012_v26 = vadd.f32 %v7862_v10, %v7874_v62 }
 0x626   : > { %v3574_v22 = vsub.f32 1.5, %v3573_v44  ;;  %3349 = vadd.xlane.f32.xlu2 %v3348_v9  ;;  %v3154_v46 = vpop.xlane.xlu1 %3153  ;;  %v3821_v58 = vadd.f32 1e-05, %v3569_v6  ;;  %v3599_v5 = vmul.f32 %v5227_v38, %v3598_v39  ;;  %v4001_v38 = vand.u32 2147483647, %v7953_v2 }
 0x627   : > { %v3215_v34 = vmul.f32 %v7188_v59, %v3154_v46  ;;  %v3996_v7 = vadd.f32 %v7959_v52, %v3995_v32  ;;  %v4004_v39 = vor.u32 1.1754944e-38, %v4003_v56 }
 0x628   : > { %v3575_v27 = vmul.f32 %v5229_v41, %v3574_v22  ;;  %5232 = vrcp.f32 %v3821_v58  ;;  %v3600_v44 = vmul.f32 %v3599_v5, %v7950_v23  ;;  %v4018_v40 = vand.u32 2147483648, %v3821_v58 }
 0x629   : > { %v7975_v55 = vsub.f32 %v3079_v15, %v3215_v34  ;;  %5234 = vrcp.f32 %v7970_v50  ;;  %v4000_v46 = vsel %vm8001_vm6, %v7959_v52, %v3996_v7  ;;  %v4016_v2 = vand.u32 2147483647, %v3821_v58 }
 0x62a   : > { %v3576_v63 = vmul.f32 %v3575_v27, %v3406_v24  ;;  %v3173_v27 = vsel %vm3091_vm12, %v3086_v21, 0.0  ;;  %vm4002_vm9 = vcmp.eq.f32.partialorder %v4001_v38, 8.507059e+37  ;;  %vm4012_vm10 = vweird.f32 %v3821_v58 }
 0x62b   : > { %v3279_v13 = vmul.f32 %v7975_v55, %v7975_v55  ;;  %v4019_v62 = vor.u32 1.1754944e-38, %v4018_v40  ;;  %vm4017_vm13 = vcmp.eq.f32.partialorder %v4016_v2, 8.507059e+37 }
 0x62c   : > { %v3578_v41 = vsel %vm3577_vm2, %v3406_v24, %v3576_v63 }
 0x62d   : > { %v3351_v19 = vsel %vm3091_vm12, %v3279_v13, 0.0  ;;  %v3581_v15 = vsel %vm3579_vm3, %v3580_v33, %v3578_v41  ;;  %v3602_v33 = vsel %vm3601_vm8, %v7950_v23, %v3600_v44  ;;  %v4005_v13 = vsel %vm4002_vm9, %v4004_v39, %v4000_v46 }
 0x62e   : > { %v5233_v48 = vpop.eup %5232  ;;  %3352 = vadd.xlane.f32.xlu2 %v3351_v19  ;;  %v7986_v0 = vadd.f32 1e-05, %v3581_v15  ;;  %v3604_v41 = vand.u32 2147483648, %v7950_v23  ;;  %vm4042_vm3 = vweird.f32 %v7970_v50 }
 0x62f   : > { %v7988_v36 = vpop.eup %5234  ;;  %v4008_v1 = vmul.f32 %v5233_v48, %v3821_v58  ;;  %vm4013_vm7 = vweird.f32 %v5233_v48  ;;  %v3087_v58 = vmax.f32 %v8012_v26, 0.0 }
 0x630   : > { %5236 = vrcp.f32 %v7986_v0  ;;  %v3338_v24 = vpop.xlane.xlu0 %3337  ;;  %v4038_v22 = vmul.f32 %v7988_v36, %v7970_v50  ;;  %vm4014_vm11 = vmor %vm4012_vm10, %vm4013_vm7  ;;  %v3605_v44 = vsel %vm3603_vm14, %v3604_v41, %v3602_v33  ;;  %vm4043_vm0 = vweird.f32 %v7988_v36 }
 0x631   : > { %v4009_v60 = vsub.f32 1.0, %v4008_v1  ;;  %v7999_v9 = vmul.f32 %v7429_v54, %v3338_v24  ;;  %v4006_v24 = vmul.f32 %v4005_v13, %v7555_v57  ;;  %vm4027_vm1 = vweird.f32 %v7986_v0  ;;  %vm8062_vm4 = vmor %vm4042_vm3, %vm4043_vm0 }
 0x632   : > { %v4039_v32 = vsub.f32 1.0, %v4038_v22  ;;  %v4031_v13 = vand.u32 2147483647, %v7986_v0  ;;  %v4048_v41 = vand.u32 2147483648, %v7970_v50 }
 0x633   : > { %v4010_v34 = vmul.f32 %v5233_v48, %v4009_v60  ;;  %5238 = vrsqrt.f32 %v7999_v9  ;;  %vm3613_vm7 = vcmp.eq.f32.partialorder %v7999_v9, inf  ;;  %vm3615_vm8 = vcmp.eq.f32.partialorder %v7999_v9, 0.0 }
 0x634   : > { %v4040_v40 = vmul.f32 %v7988_v36, %v4039_v32  ;;  %vm4032_vm5 = vcmp.eq.f32.partialorder %v4031_v13, 8.507059e+37 }
 0x635   : > { %v4011_v63 = vadd.f32 %v5233_v48, %v4010_v34  ;;  %v8038_v34 = vadd.f32 1e-05, %v3605_v44 }
 0x636   : > { %v8019_v52 = vpop.eup %5236  ;;  %3174 = vadd.xlane.f32.xlu2 %v3173_v27  ;;  %v4033_v27 = vand.u32 2147483648, %v7986_v0  ;;  %v4041_v39 = vadd.f32 %v7988_v36, %v4040_v40 }
 0x637   : > { %v4441_v19 = vpop.f32.mrf.mxu0  ;;  %v4015_v15 = vsel %vm4014_vm11, %v5233_v48, %v4011_v63  ;;  %v4023_v5 = vmul.f32 %v8019_v52, %v7986_v0  ;;  %vm4028_vm15 = vweird.f32 %v8019_v52 }
 0x638   : > { %v4442_v7 = vadd.f32 %v7853_v51, %v4441_v19  ;;  %v4020_v1 = vsel %vm4017_vm13, %v4019_v62, %v4015_v15  ;;  %v3341_v56 = vpop.xlane.xlu0 %3340  ;;  %vm8052_vm2 = vmor %vm4027_vm1, %vm4028_vm15  ;;  %vm4057_vm13 = vweird.f32 %v8038_v34 }
 0x639   : > { %v4021_v38 = vmul.f32 %v4020_v1, %v7662_v31  ;;  %v4024_v60 = vsub.f32 1.0, %v4023_v5  ;;  %v5239_v6 = vpop.eup %5238  ;;  %v8032_v48 = vmul.f32 %v7429_v54, %v3341_v56  ;;  %v3176_v31 = vsel %vm3091_vm12, %v3087_v58, 0.0 }
 0x63a   : > { %4515 = vst [vmem:[%s7885_s18 + $0x20] sm:$0xff] %v4442_v7  ;;  %v3607_v22 = vmul.f32 %v5239_v6, %v7999_v9  ;;  %v4046_v7 = vand.u32 2147483647, %v7970_v50 }
 0x63b   : > { %v4327_v23 = vpack.c.bf16 %v4021_v38, %v4006_v24  ;;  %v4025_v46 = vmul.f32 %v8019_v52, %v4024_v60  ;;  %5240 = vrsqrt.f32 %v8032_v48  ;;  %v4034_v38 = vor.u32 1.1754944e-38, %v4033_v27 }
 0x63c   : > { %v3608_v57 = vmul.f32 %v5239_v6, %v3607_v22  ;;  %5242 = vrcp.f32 %v8038_v34  ;;  %v4045_v60 = vsel %vm8062_vm4, %v7988_v36, %v4041_v39  ;;  %vm4047_vm6 = vcmp.eq.f32.partialorder %v4046_v7, 8.507059e+37 }
 0x63d   : > { %4893 = vmatmul.msk.bf16.gmra.mxu0 %vm3091_vm12, %v4327_v23  ;;  %v4026_v2 = vadd.f32 %v8019_v52, %v4025_v46  ;;  %v4049_v23 = vor.u32 1.1754944e-38, %v4048_v41  ;;  %vm3625_vm9 = vcmp.eq.f32.partialorder %v8032_v48, inf  ;;  %vm3627_vm10 = vcmp.eq.f32.partialorder %v8032_v48, 0.0 }
 0x63e   : > { %3177 = vadd.xlane.f32.xlu2 %v3176_v31  ;;  %v3609_v63 = vmul.f32 0.5, %v3608_v57 }
 0x63f   : > { %v4443_v33 = vpop.f32.mrf.mxu0  ;;  %v4030_v5 = vsel %vm8052_vm2, %v8019_v52, %v4026_v2  ;;  %v4050_v17 = vsel %vm4047_vm6, %v4049_v23, %v4045_v60 }
 0x640   : > { %v4444_v62 = vadd.f32 %v7853_v51, %v4443_v33  ;;  %v3610_v19 = vsub.f32 1.5, %v3609_v63  ;;  %v3163_v15 = vpop.xlane.xlu0 %3162  ;;  %v3344_v56 = vpop.xlane.xlu1 %3343  ;;  %v4035_v22 = vsel %vm4032_vm5, %v4034_v38, %v4030_v5 }
 0x641   : > { %v5241_v1 = vpop.eup %5240  ;;  %v3218_v24 = vmul.f32 %v7188_v59, %v3163_v15  ;;  %v8074_v52 = vmul.f32 %v7429_v54, %v3344_v56  ;;  %v4036_v27 = vmul.f32 %v4035_v22, %v7673_v37 }
 0x642   : > { %4516 = vst [vmem:[%s7885_s18 + $0x28] sm:$0xff] %v4444_v62  ;;  %v3611_v44 = vmul.f32 %v5239_v6, %v3610_v19  ;;  %v3619_v40 = vmul.f32 %v5241_v1, %v8032_v48  ;;  %v8082_v36 = vpop.eup %5242  ;;  %v3616_v6 = vand.u32 2147483648, %v7999_v9  ;;  %v4051_v62 = vmul.f32 %v4050_v17, %v7588_v11  ;;  %v3056_v19 = vpop.f32.mrf.mxu3 }
 0x643   : > { %v8078_v50 = vsub.f32 %v3082_v14, %v3218_v24  ;;  %5244 = vrsqrt.f32 %v8074_v52  ;;  %v4053_v41 = vmul.f32 %v8082_v36, %v8038_v34  ;;  %v8107_v56 = vadd.f32 %v7862_v10, %v3056_v19 }
 0x644   : > { %v3612_v46 = vmul.f32 %v3611_v44, %v7999_v9  ;;  %v3620_v57 = vmul.f32 %v5241_v1, %v3619_v40  ;;  %v4328_v0 = vpack.c.bf16 %v4051_v62, %v4036_v27  ;;  %vm4058_vm11 = vweird.f32 %v8082_v36 }
 0x645   : > { %v3282_v31 = vmul.f32 %v8078_v50, %v8078_v50  ;;  %v4054_v38 = vsub.f32 1.0, %v4053_v41  ;;  %vm3637_vm14 = vcmp.eq.f32.partialorder %v8074_v52, inf  ;;  %v3640_v28 = vand.u32 2147483648, %v8074_v52  ;;  %vm8147_vm0 = vmor %vm4057_vm13, %vm4058_vm11 }
 0x646   : > { %v3614_v14 = vsel %vm3613_vm7, %v7999_v9, %v3612_v46  ;;  %v3621_v2 = vmul.f32 0.5, %v3620_v57  ;;  %v4063_v19 = vand.u32 2147483648, %v8038_v34  ;;  %vm3639_vm15 = vcmp.eq.f32.partialorder %v8074_v52, 0.0 }
 0x647   : > { %v3360_v39 = vsel %vm3091_vm12, %v3282_v31, 0.0  ;;  %v3617_v63 = vsel %vm3615_vm8, %v3616_v6, %v3614_v14  ;;  %v4055_v46 = vmul.f32 %v8082_v36, %v4054_v38  ;;  %v3090_v6 = vmax.f32 %v8107_v56, 0.0 }
 0x648   : > { %v3622_v33 = vsub.f32 1.5, %v3621_v2  ;;  %3361 = vadd.xlane.f32.xlu1 %v3360_v39  ;;  %v3166_v13 = vpop.xlane.xlu0 %3165  ;;  %v8093_v32 = vadd.f32 1e-05, %v3617_v63  ;;  %v8097_v15 = vpop.xlane.xlu1 %3346 }
 0x649   : > { %v3219_v9 = vmul.f32 %v7188_v59, %v3166_v13  ;;  %v5245_v5 = vpop.eup %5244  ;;  %v3185_v62 = vsel %vm3091_vm12, %v3090_v6, 0.0 }
 0x64a   : > { %v3623_v37 = vmul.f32 %v5241_v1, %v3622_v33  ;;  %5246 = vrcp.f32 %v8093_v32  ;;  %v3631_v7 = vmul.f32 %v5245_v5, %v8074_v52  ;;  %v3628_v1 = vand.u32 2147483648, %v8032_v48 }
 0x64b   : > { %v8104_v11 = vsub.f32 %v3083_v16, %v3219_v9  ;;  %v4056_v33 = vadd.f32 %v8082_v36, %v4055_v46  ;;  %vm4072_vm3 = vweird.f32 %v8093_v32 }
 0x64c   : > { %v3624_v24 = vmul.f32 %v3623_v37, %v8032_v48  ;;  %v3632_v60 = vmul.f32 %v5245_v5, %v3631_v7  ;;  %v4061_v37 = vand.u32 2147483647, %v8038_v34  ;;  %v4076_v34 = vand.u32 2147483647, %v8093_v32 }
 0x64d   : > { %4894 = vmatmul.msk.bf16.gmra.mxu0 %vm3091_vm12, %v4328_v0  ;;  %v3283_v44 = vmul.f32 %v8104_v11, %v8104_v11 }
 0x64e   : > { %v3626_v53 = vsel %vm3625_vm9, %v8032_v48, %v3624_v24  ;;  %v3633_v16 = vmul.f32 0.5, %v3632_v60  ;;  %vm4062_vm2 = vcmp.eq.f32.partialorder %v4061_v37, 8.507059e+37  ;;  %vm4077_vm5 = vcmp.eq.f32.partialorder %v4076_v34, 8.507059e+37 }
 0x64f   : > { %v3363_v10 = vsel %vm3091_vm12, %v3283_v44, 0.0  ;;  %v3629_v40 = vsel %vm3627_vm10, %v3628_v1, %v3626_v53  ;;  %v4060_v1 = vsel %vm8147_vm0, %v8082_v36, %v4056_v33 }
 0x650   : > { %v5247_v22 = vpop.eup %5246  ;;  %3364 = vadd.xlane.f32.xlu1 %v3363_v10  ;;  %v8121_v57 = vadd.f32 1e-05, %v3629_v40  ;;  %v3634_v31 = vsub.f32 1.5, %v3633_v16  ;;  %v3169_v17 = vpop.xlane.xlu1 %3168  ;;  %v4064_v40 = vor.u32 1.1754944e-38, %v4063_v19 }
 0x651   : > { %v8118_v23 = vpop.xlane.xlu0 %3355  ;;  %v4068_v14 = vmul.f32 %v5247_v22, %v8093_v32  ;;  %v3220_v48 = vmul.f32 %v7188_v59, %v3169_v17  ;;  %v4446_v27 = vpop.f32.mrf.mxu0  ;;  %vm4073_vm1 = vweird.f32 %v5247_v22 }
 0x652   : > { %5248 = vrcp.f32 %v8121_v57  ;;  %v3635_v2 = vmul.f32 %v5245_v5, %v3634_v31  ;;  %v4447_v63 = vadd.f32 %v7853_v51, %v4446_v27  ;;  %vm4074_vm4 = vmor %vm4072_vm3, %vm4073_vm1  ;;  %v4093_v37 = vand.u32 2147483648, %v8121_v57 }
 0x653   : > { %v8129_v39 = vsub.f32 %v3084_v49, %v3220_v48  ;;  %v4069_v41 = vsub.f32 1.0, %v4068_v14  ;;  %v4065_v14 = vsel %vm4062_vm2, %v4064_v40, %v4060_v1  ;;  %vm4087_vm7 = vweird.f32 %v8121_v57 }
 0x654   : > { %v3636_v13 = vmul.f32 %v3635_v2, %v8074_v52  ;;  %4517 = vst [vmem:[%s7885_s18 + $0x30] sm:$0xff] %v4447_v63  ;;  %v4091_v43 = vand.u32 2147483647, %v8121_v57 }
 0x655   : > { %v3284_v49 = vmul.f32 %v8129_v39, %v8129_v39  ;;  %v4070_v0 = vmul.f32 %v5247_v22, %v4069_v41 }
 0x656   : > { %v3638_v9 = vsel %vm3637_vm14, %v8074_v52, %v3636_v13  ;;  %v4078_v52 = vand.u32 2147483648, %v8093_v32  ;;  %v4066_v32 = vmul.f32 %v4065_v14, %v7620_v25  ;;  %vm4092_vm10 = vcmp.eq.f32.partialorder %v4091_v43, 8.507059e+37 }
 0x657   : > { %v3366_v24 = vsel %vm3091_vm12, %v3284_v49, 0.0  ;;  %v3641_v60 = vsel %vm3639_vm15, %v3640_v28, %v3638_v9  ;;  %v4071_v53 = vadd.f32 %v5247_v22, %v4070_v0 }
 0x658   : > { %v8152_v7 = vpop.eup %5248  ;;  %3186 = vadd.xlane.f32.xlu1 %v3185_v62  ;;  %3367 = vadd.xlane.f32.xlu2 %v3366_v24  ;;  %v3172_v44 = vpop.xlane.xlu1 %3171  ;;  %v3827_v16 = vadd.f32 1e-05, %v3641_v60  ;;  %v4079_v48 = vor.u32 1.1754944e-38, %v4078_v52 }
 0x659   : > { %v8155_v38 = vpop.xlane.xlu0 %3358  ;;  %v3221_v10 = vmul.f32 %v7188_v59, %v3172_v44  ;;  %v4083_v46 = vmul.f32 %v8152_v7, %v8121_v57  ;;  %v4448_v31 = vpop.f32.mrf.mxu0  ;;  %v4075_v2 = vsel %vm4074_vm4, %v5247_v22, %v4071_v53  ;;  %vm4088_vm6 = vweird.f32 %v8152_v7 }
 0x65a   : > { %v4449_v17 = vadd.f32 %v7853_v51, %v4448_v31  ;;  %5250 = vrcp.f32 %v3827_v16  ;;  %v4080_v63 = vsel %vm4077_vm5, %v4079_v48, %v4075_v2  ;;  %vm4089_vm8 = vmor %vm4087_vm7, %vm4088_vm6  ;;  %v4108_v24 = vand.u32 2147483648, %v3827_v16 }
 0x65b   : > { %v8168_v36 = vsub.f32 %v3085_v20, %v3221_v10  ;;  %v4084_v27 = vsub.f32 1.0, %v4083_v46  ;;  %v4081_v30 = vmul.f32 %v4080_v63, %v7741_v12  ;;  %v4106_v60 = vand.u32 2147483647, %v3827_v16 }
 0x65c   : > { %4518 = vst [vmem:[%s7885_s18 + $0x38] sm:$0xff] %v4449_v17  ;;  %v4094_v44 = vor.u32 1.1754944e-38, %v4093_v37  ;;  %vm4102_vm11 = vweird.f32 %v3827_v16  ;;  %v4109_v57 = vor.u32 1.1754944e-38, %v4108_v24  ;;  %v3412_v48 = vmul.f32 %v7429_v54, %v8097_v15 }
 0x65d   : > { %v3285_v33 = vmul.f32 %v8168_v36, %v8168_v36  ;;  %v4329_v62 = vpack.c.bf16 %v4081_v30, %v4066_v32  ;;  %v4085_v41 = vmul.f32 %v8152_v7, %v4084_v27  ;;  %vm4107_vm14 = vcmp.eq.f32.partialorder %v4106_v60, 8.507059e+37 }
 0x65e   : > { %5252 = vrsqrt.f32 %v3412_v48  ;;  %v3415_v2 = vmul.f32 %v7429_v54, %v8118_v23  ;;  %vm3649_vm15 = vcmp.eq.f32.partialorder %v3412_v48, inf  ;;  %vm3651_vm0 = vcmp.eq.f32.partialorder %v3412_v48, 0.0 }
 0x65f   : > { %v3369_v20 = vsel %vm3091_vm12, %v3285_v33, 0.0  ;;  %4895 = vmatmul.msk.bf16.gmra.mxu0 %vm3091_vm12, %v4329_v62  ;;  %v4086_v9 = vadd.f32 %v8152_v7, %v4085_v41  ;;  %v3652_v41 = vand.u32 2147483648, %v3412_v48 }
 0x660   : > { %3370 = vadd.xlane.f32.xlu2 %v3369_v20  ;;  %v5251_v28 = vpop.eup %5250  ;;  %5254 = vrsqrt.f32 %v3415_v2  ;;  %v8206_v20 = vmul.f32 %v7429_v54, %v8155_v38  ;;  %vm3685_vm1 = vcmp.eq.f32.partialorder %v3415_v2, inf  ;;  %vm3687_vm2 = vcmp.eq.f32.partialorder %v3415_v2, 0.0 }
 0x661   : > { %v3181_v13 = vpop.xlane.xlu0 %3180  ;;  %v4451_v25 = vpop.f32.mrf.mxu0  ;;  %v4098_v5 = vmul.f32 %v5251_v28, %v3827_v16  ;;  %v4090_v1 = vsel %vm4089_vm8, %v8152_v7, %v4086_v9  ;;  %vm4103_vm9 = vweird.f32 %v5251_v28 }
 0x662   : > { %v3224_v22 = vmul.f32 %v7188_v59, %v3181_v13  ;;  %v4452_v12 = vadd.f32 %v7853_v51, %v4451_v25  ;;  %v4095_v40 = vsel %vm4092_vm10, %v4094_v44, %v4090_v1  ;;  %vm4104_vm13 = vmor %vm4102_vm11, %vm4103_vm9  ;;  %5256 = vrsqrt.f32 %v8206_v20 }
 0x663   : > { %v4096_v17 = vmul.f32 %v4095_v40, %v7770_v47  ;;  %vm3697_vm7 = vcmp.eq.f32.partialorder %v8206_v20, inf  ;;  %vm3699_vm9 = vcmp.eq.f32.partialorder %v8206_v20, 0.0 }
 0x664   : > { %v8182_v49 = vsub.f32 %v3088_v4, %v3224_v22  ;;  %4519 = vst [vmem:[%s7885_s18 + $0x40] sm:$0xff] %v4452_v12  ;;  %v4099_v4 = vsub.f32 1.0, %v4098_v5  ;;  %v5253_v16 = vpop.eup %5252 }
 0x666   : > { %v3288_v19 = vmul.f32 %v8182_v49, %v8182_v49  ;;  %v4100_v52 = vmul.f32 %v5251_v28, %v4099_v4  ;;  %v5255_v33 = vpop.eup %5254 }
 0x667   : > { %v3679_v47 = vmul.f32 %v5255_v33, %v3415_v2 }
 0x668   : > { %v3378_v0 = vsel %vm3091_vm12, %v3288_v19, 0.0  ;;  %v4101_v34 = vadd.f32 %v5251_v28, %v4100_v52  ;;  %v5257_v12 = vpop.eup %5256 }
 0x669   : > { %3379 = vadd.xlane.f32.xlu2 %v3378_v0  ;;  %v4453_v53 = vpop.f32.mrf.mxu0  ;;  %v3691_v0 = vmul.f32 %v5257_v12, %v8206_v20  ;;  %v3184_v60 = vpop.xlane.xlu0 %3183 }
 0x66a   : > { %v4454_v10 = vadd.f32 %v7853_v51, %v4453_v53  ;;  %v4105_v46 = vsel %vm4104_vm13, %v5251_v28, %v4101_v34  ;;  %v3643_v51 = vmul.f32 %v5253_v16, %v3412_v48 }
 0x66b   : > { %v4110_v31 = vsel %vm4107_vm14, %v4109_v57, %v4105_v46  ;;  %v3692_v1 = vmul.f32 %v5257_v12, %v3691_v0  ;;  %v3688_v46 = vand.u32 2147483648, %v3415_v2 }
 0x66c   : > { %4520 = vst [vmem:[%s7885_s18 + $0x48] sm:$0xff] %v4454_v10  ;;  %v4111_v7 = vmul.f32 %v4110_v31, %v7805_v8  ;;  %v3644_v27 = vmul.f32 %v5253_v16, %v3643_v51  ;;  %v3680_v8 = vmul.f32 %v5255_v33, %v3679_v47 }
 0x66d   : > { %v3693_v31 = vmul.f32 0.5, %v3692_v1 }
 0x66e   : > { %v4330_v14 = vpack.c.bf16 %v4111_v7, %v4096_v17  ;;  %v3645_v63 = vmul.f32 0.5, %v3644_v27  ;;  %v3681_v62 = vmul.f32 0.5, %v3680_v8 }
 0x66f   : > { %v3694_v47 = vsub.f32 1.5, %v3693_v31 }
 0x670   : > { %4896 = vmatmul.msk.bf16.gmra.mxu0 %vm3091_vm12, %v4330_v14  ;;  %v3646_v32 = vsub.f32 1.5, %v3645_v63  ;;  %v3682_v28 = vsub.f32 1.5, %v3681_v62  ;;  %v3225_v14 = vmul.f32 %v7188_v59, %v3184_v60 }
 0x672   : > { %v3647_v30 = vmul.f32 %v5253_v16, %v3646_v32  ;;  %v3683_v5 = vmul.f32 %v5255_v33, %v3682_v28  ;;  %v8233_v45 = vsub.f32 %v3089_v42, %v3225_v14 }
 0x674   : > { %v3648_v13 = vmul.f32 %v3647_v30, %v3412_v48  ;;  %v3684_v24 = vmul.f32 %v3683_v5, %v3415_v2  ;;  %v3289_v42 = vmul.f32 %v8233_v45, %v8233_v45 }
 0x676   : > { %v3650_v22 = vsel %vm3649_vm15, %v3412_v48, %v3648_v13  ;;  %v3686_v10 = vsel %vm3685_vm1, %v3415_v2, %v3684_v24 }
 0x677   : > { %v3653_v25 = vsel %vm3651_vm0, %v3652_v41, %v3650_v22  ;;  %v3689_v27 = vsel %vm3687_vm2, %v3688_v46, %v3686_v10 }
 0x678   : > { %v8210_v9 = vadd.f32 1e-05, %v3653_v25  ;;  %v8236_v13 = vadd.f32 1e-05, %v3689_v27 }
 0x67a   : > { %v4123_v10 = vand.u32 2147483648, %v8210_v9  ;;  %vm4117_vm10 = vweird.f32 %v8210_v9  ;;  %v4121_v31 = vand.u32 2147483647, %v8210_v9 }
 0x67c   : > { %vm4122_vm14 = vcmp.eq.f32.partialorder %v4121_v31, 8.507059e+37 }
 0x699   : > { %v3350_v15 = vpop.xlane.xlu2 %3349 }
 0x69a   : > { %v3413_v23 = vmul.f32 %v7429_v54, %v3350_v15 }
 0x69c   : > { %5258 = vrsqrt.f32 %v3413_v23  ;;  %vm3661_vm3 = vcmp.eq.f32.partialorder %v3413_v23, inf  ;;  %v3664_v63 = vand.u32 2147483648, %v3413_v23  ;;  %vm3663_vm4 = vcmp.eq.f32.partialorder %v3413_v23, 0.0 }
 0x6a1   : > { %v3353_v19 = vpop.xlane.xlu2 %3352 }
 0x6a2   : > { %v5259_v38 = vpop.eup %5258  ;;  %v8213_v37 = vmul.f32 %v7429_v54, %v3353_v19 }
 0x6a3   : > { %v3655_v43 = vmul.f32 %v5259_v38, %v3413_v23 }
 0x6a4   : > { %5260 = vrsqrt.f32 %v8213_v37  ;;  %vm3673_vm5 = vcmp.eq.f32.partialorder %v8213_v37, inf  ;;  %vm3675_vm6 = vcmp.eq.f32.partialorder %v8213_v37, 0.0 }
 0x6a5   : > { %v3656_v4 = vmul.f32 %v5259_v38, %v3655_v43  ;;  %5262 = vrcp.f32 %v8210_v9  ;;  %v3381_v43 = vsel %vm3091_vm12, %v3289_v42, 0.0 }
 0x6a7   : > { %v3657_v52 = vmul.f32 0.5, %v3656_v4 }
 0x6a9   : > { %v3658_v44 = vsub.f32 1.5, %v3657_v52  ;;  %v3175_v53 = vpop.xlane.xlu2 %3174 }
 0x6aa   : > { %v5261_v34 = vpop.eup %5260  ;;  %v3222_v40 = vmul.f32 %v7188_v59, %v3175_v53  ;;  %v8272_v53 = vld [vmem:[%s8563_s6] ss:$0 sm:$0xff] }
 0x6ab   : > { %v8219_v57 = vpop.eup %5262  ;;  %v3659_v17 = vmul.f32 %v5259_v38, %v3658_v44  ;;  %v3667_v7 = vmul.f32 %v5261_v34, %v8213_v37  ;;  %v3676_v38 = vand.u32 2147483648, %v8213_v37 }
 0x6ac   : > { %v8225_v48 = vsub.f32 %v3086_v21, %v3222_v40  ;;  %v4113_v32 = vmul.f32 %v8219_v57, %v8210_v9  ;;  %vm4118_vm8 = vweird.f32 %v8219_v57 }
 0x6ad   : > { %v3660_v16 = vmul.f32 %v3659_v17, %v3413_v23  ;;  %v3668_v51 = vmul.f32 %v5261_v34, %v3667_v7  ;;  %v3700_v7 = vand.u32 2147483648, %v8206_v20  ;;  %vm4119_vm11 = vmor %vm4117_vm10, %vm4118_vm8 }
 0x6ae   : > { %v3286_v33 = vmul.f32 %v8225_v48, %v8225_v48  ;;  %v4114_v28 = vsub.f32 1.0, %v4113_v32 }
 0x6af   : > { %v3662_v30 = vsel %vm3661_vm3, %v3413_v23, %v3660_v16  ;;  %v3669_v2 = vmul.f32 0.5, %v3668_v51  ;;  %v3695_v23 = vmul.f32 %v5257_v12, %v3694_v47 }
 0x6b0   : > { %v3372_v21 = vsel %vm3091_vm12, %v3286_v33, 0.0  ;;  %v3665_v8 = vsel %vm3663_vm4, %v3664_v63, %v3662_v30  ;;  %v4115_v12 = vmul.f32 %v8219_v57, %v4114_v28  ;;  %v4124_v33 = vor.u32 1.1754944e-38, %v4123_v10 }
 0x6b1   : > { %v3670_v15 = vsub.f32 1.5, %v3669_v2  ;;  %3373 = vadd.xlane.f32.xlu0 %v3372_v21  ;;  %v3178_v62 = vpop.xlane.xlu2 %3177  ;;  %v8238_v22 = vadd.f32 1e-05, %v3665_v8  ;;  %v4168_v10 = vand.u32 2147483648, %v8236_v13 }
 0x6b2   : > { %v3223_v41 = vmul.f32 %v7188_v59, %v3178_v62 }
 0x6b3   : > { %v3671_v25 = vmul.f32 %v5261_v34, %v3670_v15  ;;  %5264 = vrcp.f32 %v8238_v22  ;;  %v4138_v16 = vand.u32 2147483648, %v8238_v22  ;;  %v4136_v9 = vand.u32 2147483647, %v8238_v22 }
 0x6b4   : > { %v8244_v18 = vsub.f32 %v3087_v58, %v3223_v41  ;;  %5266 = vrcp.f32 %v8236_v13  ;;  %v3696_v58 = vmul.f32 %v3695_v23, %v8206_v20  ;;  %vm4132_vm15 = vweird.f32 %v8238_v22 }
 0x6b5   : > { %v3672_v19 = vmul.f32 %v3671_v25, %v8213_v37  ;;  %v4139_v21 = vor.u32 1.1754944e-38, %v4138_v16  ;;  %vm4137_vm1 = vcmp.eq.f32.partialorder %v4136_v9, 8.507059e+37 }
 0x6b6   : > { %v3287_v5 = vmul.f32 %v8244_v18, %v8244_v18  ;;  %v3698_v40 = vsel %vm3697_vm7, %v8206_v20, %v3696_v58 }
 0x6b7   : > { %v3674_v26 = vsel %vm3673_vm5, %v8213_v37, %v3672_v19  ;;  %v4116_v37 = vadd.f32 %v8219_v57, %v4115_v12  ;;  %v3701_v32 = vsel %vm3699_vm9, %v3700_v7, %v3698_v40 }
 0x6b8   : > { %v3375_v0 = vsel %vm3091_vm12, %v3287_v5, 0.0  ;;  %v3677_v4 = vsel %vm3675_vm6, %v3676_v38, %v3674_v26  ;;  %v8297_v41 = vadd.f32 1e-05, %v3701_v32  ;;  %vm4162_vm6 = vweird.f32 %v8236_v13 }
 0x6b9   : > { %v5265_v24 = vpop.eup %5264  ;;  %3376 = vadd.xlane.f32.xlu1 %v3375_v0  ;;  %3382 = vadd.xlane.f32.xlu0 %v3381_v43  ;;  %v8260_v1 = vadd.f32 1e-05, %v3677_v4  ;;  %v4120_v27 = vsel %vm4119_vm11, %v8219_v57, %v4116_v37 }
 0x6ba   : > { %v8262_v52 = vpop.eup %5266  ;;  %v4456_v60 = vpop.f32.mrf.mxu0  ;;  %v4128_v44 = vmul.f32 %v5265_v24, %v8238_v22  ;;  %vm4133_vm13 = vweird.f32 %v5265_v24  ;;  %v4125_v2 = vsel %vm4122_vm14, %v4124_v33, %v4120_v27 }
 0x6bb   : > { %v4457_v34 = vadd.f32 %v8272_v53, %v4456_v60  ;;  %5268 = vrcp.f32 %v8260_v1  ;;  %v3362_v46 = vpop.xlane.xlu1 %3361  ;;  %v4158_v51 = vmul.f32 %v8262_v52, %v8236_v13  ;;  %vm4134_vm0 = vmor %vm4132_vm15, %vm4133_vm13  ;;  %v4126_v23 = vmul.f32 %v4125_v2, %v7842_v29 }
 0x6bc   : > { %v4129_v17 = vsub.f32 1.0, %v4128_v44  ;;  %v8283_v14 = vmul.f32 %v7429_v54, %v3362_v46  ;;  %vm4163_vm3 = vweird.f32 %v8262_v52  ;;  %vm4147_vm4 = vweird.f32 %v8260_v1 }
 0x6bd   : > { %4521 = vst [vmem:[%s7885_s18 + $0x50] sm:$0xff] %v4457_v34  ;;  %v4159_v57 = vsub.f32 1.0, %v4158_v51  ;;  %v4151_v60 = vand.u32 2147483647, %v8260_v1  ;;  %v4166_v34 = vand.u32 2147483647, %v8236_v13  ;;  %vm8328_vm7 = vmor %vm4162_vm6, %vm4163_vm3 }
 0x6be   : > { %v4130_v63 = vmul.f32 %v5265_v24, %v4129_v17  ;;  %5270 = vrsqrt.f32 %v8283_v14  ;;  %vm3709_vm10 = vcmp.eq.f32.partialorder %v8283_v14, inf  ;;  %vm3711_vm11 = vcmp.eq.f32.partialorder %v8283_v14, 0.0 }
 0x6bf   : > { %v4160_v5 = vmul.f32 %v8262_v52, %v4159_v57  ;;  %5272 = vrcp.f32 %v8297_v41  ;;  %vm4152_vm8 = vcmp.eq.f32.partialorder %v4151_v60, 8.507059e+37  ;;  %vm4167_vm9 = vcmp.eq.f32.partialorder %v4166_v34, 8.507059e+37 }
 0x6c0   : > { %v4131_v47 = vadd.f32 %v5265_v24, %v4130_v63  ;;  %v4181_v60 = vand.u32 2147483647, %v8297_v41 }
 0x6c1   : > { %v5269_v30 = vpop.eup %5268  ;;  %v4161_v43 = vadd.f32 %v8262_v52, %v4160_v5 }
 0x6c2   : > { %v4458_v8 = vpop.f32.mrf.mxu0  ;;  %v4135_v15 = vsel %vm4134_vm0, %v5265_v24, %v4131_v47  ;;  %v4143_v62 = vmul.f32 %v5269_v30, %v8260_v1  ;;  %vm4148_vm2 = vweird.f32 %v5269_v30  ;;  %vm4177_vm0 = vweird.f32 %v8297_v41 }
 0x6c3   : > { %v4459_v20 = vadd.f32 %v8272_v53, %v4458_v8  ;;  %v4140_v28 = vsel %vm4137_vm1, %v4139_v21, %v4135_v15  ;;  %v3365_v25 = vpop.xlane.xlu1 %3364  ;;  %vm8317_vm5 = vmor %vm4147_vm4, %vm4148_vm2  ;;  %v4165_v13 = vsel %vm8328_vm7, %v8262_v52, %v4161_v43  ;;  %v3712_v21 = vand.u32 2147483648, %v8283_v14 }
 0x6c4   : > { %v4141_v22 = vmul.f32 %v4140_v28, %v7963_v3  ;;  %v4144_v42 = vsub.f32 1.0, %v4143_v62  ;;  %v5271_v19 = vpop.eup %5270  ;;  %v8304_v38 = vmul.f32 %v7429_v54, %v3365_v25  ;;  %v4153_v3 = vand.u32 2147483648, %v8260_v1 }
 0x6c5   : > { %4522 = vst [vmem:[%s7885_s18 + $0x58] sm:$0xff] %v4459_v20  ;;  %v3703_v12 = vmul.f32 %v5271_v19, %v8283_v14  ;;  %v8324_v40 = vpop.eup %5272  ;;  %vm8383_vm2 = vcmp.eq.f32.partialorder %v4181_v60, 8.507059e+37 }
 0x6c6   : > { %v4331_v26 = vpack.c.bf16 %v4141_v22, %v4126_v23  ;;  %v4145_v58 = vmul.f32 %v5269_v30, %v4144_v42  ;;  %5274 = vrsqrt.f32 %v8304_v38  ;;  %v4154_v27 = vor.u32 1.1754944e-38, %v4153_v3 }
 0x6c7   : > { %v3704_v0 = vmul.f32 %v5271_v19, %v3703_v12  ;;  %v4173_v52 = vmul.f32 %v8324_v40, %v8297_v41  ;;  %vm3721_vm13 = vcmp.eq.f32.partialorder %v8304_v38, inf  ;;  %vm3723_vm14 = vcmp.eq.f32.partialorder %v8304_v38, 0.0 }
 0x6c8   : > { %4897 = vmatmul.msk.bf16.gmra.mxu0 %vm3091_vm12, %v4331_v26  ;;  %v4146_v29 = vadd.f32 %v5269_v30, %v4145_v58  ;;  %vm4178_vm15 = vweird.f32 %v8324_v40 }
 0x6c9   : > { %v3705_v4 = vmul.f32 0.5, %v3704_v0  ;;  %v3724_v0 = vand.u32 2147483648, %v8304_v38  ;;  %vm8376_vm1 = vmor %vm4177_vm0, %vm4178_vm15 }
 0x6ca   : > { %v4461_v24 = vpop.f32.mrf.mxu0  ;;  %v4150_v17 = vsel %vm8317_vm5, %v5269_v30, %v4146_v29  ;;  %v4169_v30 = vor.u32 1.1754944e-38, %v4168_v10  ;;  %v4183_v10 = vand.u32 2147483648, %v8297_v41 }
 0x6cb   : > { %v4462_v37 = vadd.f32 %v8272_v53, %v4461_v24  ;;  %v3706_v46 = vsub.f32 1.5, %v3705_v4  ;;  %v3187_v31 = vpop.xlane.xlu1 %3186  ;;  %v3368_v16 = vpop.xlane.xlu2 %3367  ;;  %v4155_v47 = vsel %vm4152_vm8, %v4154_v27, %v4150_v17 }
 0x6cc   : > { %v5275_v7 = vpop.eup %5274  ;;  %v3226_v51 = vmul.f32 %v7188_v59, %v3187_v31  ;;  %v8339_v33 = vmul.f32 %v7429_v54, %v3368_v16  ;;  %v4156_v62 = vmul.f32 %v4155_v47, %v7975_v55 }
 0x6cd   : > { %4523 = vst [vmem:[%s7885_s18 + $0x60] sm:$0xff] %v4462_v37  ;;  %v3707_v63 = vmul.f32 %v5271_v19, %v3706_v46  ;;  %v3715_v9 = vmul.f32 %v5275_v7, %v8304_v38  ;;  %v4174_v19 = vsub.f32 1.0, %v4173_v52 }
 0x6ce   : > { %v8343_v32 = vsub.f32 %v3090_v6, %v3226_v51  ;;  %5276 = vrsqrt.f32 %v8339_v33  ;;  %v4170_v6 = vsel %vm4167_vm9, %v4169_v30, %v4165_v13  ;;  %vm3733_vm4 = vcmp.eq.f32.partialorder %v8339_v33, inf }
 0x6cf   : > { %v3708_v59 = vmul.f32 %v3707_v63, %v8283_v14  ;;  %v3716_v2 = vmul.f32 %v5275_v7, %v3715_v9  ;;  %v4171_v22 = vmul.f32 %v4170_v6, %v7880_v61  ;;  %v4175_v58 = vmul.f32 %v8324_v40, %v4174_v19 }
 0x6d0   : > { %v3290_v56 = vmul.f32 %v8343_v32, %v8343_v32  ;;  %v3736_v13 = vand.u32 2147483648, %v8339_v33  ;;  %v4184_v9 = vor.u32 1.1754944e-38, %v4183_v10  ;;  %vm3735_vm5 = vcmp.eq.f32.partialorder %v8339_v33, 0.0 }
 0x6d1   : > { %v3710_v57 = vsel %vm3709_vm10, %v8283_v14, %v3708_v59  ;;  %v3717_v8 = vmul.f32 0.5, %v3716_v2  ;;  %v4332_v26 = vpack.c.bf16 %v4171_v22, %v4156_v62  ;;  %v4176_v24 = vadd.f32 %v8324_v40, %v4175_v58 }
 0x6d2   : > { %v4463_v15 = vpop.f32.mrf.mxu0  ;;  %v3384_v28 = vsel %vm3091_vm12, %v3290_v56, 0.0  ;;  %v3713_v25 = vsel %vm3711_vm11, %v3712_v21, %v3710_v57 }
 0x6d3   : > { %v4464_v20 = vadd.f32 %v8272_v53, %v4463_v15  ;;  %v3718_v23 = vsub.f32 1.5, %v3717_v8  ;;  %3385 = vadd.xlane.f32.xlu1 %v3384_v28  ;;  %v3833_v42 = vadd.f32 1e-05, %v3713_v25  ;;  %v4180_v17 = vsel %vm8376_vm1, %v8324_v40, %v4176_v24  ;;  %v3371_v10 = vpop.xlane.xlu2 %3370 }
 0x6d4   : > { %v5277_v5 = vpop.eup %5276  ;;  %v4185_v59 = vsel %vm8383_vm2, %v4184_v9, %v4180_v17 }
 0x6d5   : > { %4524 = vst [vmem:[%s7885_s18 + $0x68] sm:$0xff] %v4464_v20  ;;  %v3719_v12 = vmul.f32 %v5275_v7, %v3718_v23  ;;  %5278 = vrcp.f32 %v3833_v42  ;;  %v3727_v14 = vmul.f32 %v5277_v5, %v8339_v33  ;;  %v4198_v7 = vand.u32 2147483648, %v3833_v42 }
 0x6d6   : > { %v4196_v27 = vand.u32 2147483647, %v3833_v42  ;;  %vm4192_vm6 = vweird.f32 %v3833_v42  ;;  %v4186_v8 = vmul.f32 %v4185_v59, %v7912_v35 }
 0x6d7   : > { %v3720_v55 = vmul.f32 %v3719_v12, %v8304_v38  ;;  %v3728_v61 = vmul.f32 %v5277_v5, %v3727_v14  ;;  %v4199_v2 = vor.u32 1.1754944e-38, %v4198_v7 }
 0x6d8   : > { %4898 = vmatmul.msk.bf16.gmra.mxu0 %vm3091_vm12, %v4332_v26  ;;  %vm4197_vm8 = vcmp.eq.f32.partialorder %v4196_v27, 8.507059e+37 }
 0x6d9   : > { %v3722_v29 = vsel %vm3721_vm13, %v8304_v38, %v3720_v55  ;;  %v3729_v3 = vmul.f32 0.5, %v3728_v61 }
 0x6da   : > { %v3725_v43 = vsel %vm3723_vm14, %v3724_v0, %v3722_v29 }
 0x6db   : > { %v5279_v4 = vpop.eup %5278  ;;  %v8371_v37 = vadd.f32 1e-05, %v3725_v43  ;;  %v3730_v44 = vsub.f32 1.5, %v3729_v3 }
 0x6dc   : > { %v4188_v34 = vmul.f32 %v5279_v4, %v3833_v42  ;;  %v4466_v16 = vpop.f32.mrf.mxu0  ;;  %vm4193_vm3 = vweird.f32 %v5279_v4 }
 0x6dd   : > { %5280 = vrcp.f32 %v8371_v37  ;;  %v3731_v38 = vmul.f32 %v5277_v5, %v3730_v44  ;;  %v4467_v63 = vadd.f32 %v8272_v53, %v4466_v16  ;;  %vm4194_vm7 = vmor %vm4192_vm6, %vm4193_vm3  ;;  %v4213_v19 = vand.u32 2147483648, %v8371_v37 }
 0x6de   : > { %v4189_v31 = vsub.f32 1.0, %v4188_v34  ;;  %vm4207_vm10 = vweird.f32 %v8371_v37 }
 0x6df   : > { %v3732_v41 = vmul.f32 %v3731_v38, %v8339_v33  ;;  %4525 = vst [vmem:[%s7885_s18 + $0x70] sm:$0xff] %v4467_v63  ;;  %v4214_v0 = vor.u32 1.1754944e-38, %v4213_v19  ;;  %v3420_v38 = vmul.f32 %v7429_v54, %v3371_v10 }
 0x6e0   : > { %v4190_v51 = vmul.f32 %v5279_v4, %v4189_v31  ;;  %v3380_v31 = vpop.xlane.xlu2 %3379 }
 0x6e1   : > { %v3734_v40 = vsel %vm3733_vm4, %v8339_v33, %v3732_v41  ;;  %v3423_v1 = vmul.f32 %v7429_v54, %v3380_v31  ;;  %vm3745_vm2 = vcmp.eq.f32.partialorder %v3420_v38, inf  ;;  %vm3747_vm3 = vcmp.eq.f32.partialorder %v3420_v38, 0.0 }
 0x6e2   : > { %v4191_v47 = vadd.f32 %v5279_v4, %v4190_v51  ;;  %v3737_v52 = vsel %vm3735_vm5, %v3736_v13, %v3734_v40 }
 0x6e3   : > { %v5281_v30 = vpop.eup %5280  ;;  %v3835_v56 = vadd.f32 1e-05, %v3737_v52  ;;  %vm3781_vm4 = vcmp.eq.f32.partialorder %v3423_v1, inf  ;;  %vm3783_vm5 = vcmp.eq.f32.partialorder %v3423_v1, 0.0 }
 0x6e4   : > { %v4195_v21 = vsel %vm4194_vm7, %v5279_v4, %v4191_v47  ;;  %v4203_v6 = vmul.f32 %v5281_v30, %v8371_v37  ;;  %v4468_v62 = vpop.f32.mrf.mxu0  ;;  %vm4208_vm9 = vweird.f32 %v5281_v30  ;;  %v3748_v47 = vand.u32 2147483648, %v3420_v38 }
 0x6e5   : > { %v4200_v57 = vsel %vm4197_vm8, %v4199_v2, %v4195_v21  ;;  %5282 = vrcp.f32 %v3835_v56  ;;  %v4469_v28 = vadd.f32 %v8272_v53, %v4468_v62  ;;  %vm4209_vm11 = vmor %vm4207_vm10, %vm4208_vm9  ;;  %v4228_v26 = vand.u32 2147483648, %v3835_v56 }
 0x6e6   : > { %v4201_v33 = vmul.f32 %v4200_v57, %v8078_v50  ;;  %v4204_v15 = vsub.f32 1.0, %v4203_v6  ;;  %v4211_v50 = vand.u32 2147483647, %v8371_v37  ;;  %v4226_v58 = vand.u32 2147483647, %v3835_v56 }
 0x6e7   : > { %4526 = vst [vmem:[%s7885_s18 + $0x78] sm:$0xff] %v4469_v28  ;;  %vm4222_vm15 = vweird.f32 %v3835_v56  ;;  %v4229_v3 = vor.u32 1.1754944e-38, %v4228_v26  ;;  %5284 = vrsqrt.f32 %v3420_v38 }
 0x6e8   : > { %v4333_v20 = vpack.c.bf16 %v4201_v33, %v4186_v8  ;;  %v4205_v25 = vmul.f32 %v5281_v30, %v4204_v15  ;;  %vm4212_vm14 = vcmp.eq.f32.partialorder %v4211_v50, 8.507059e+37  ;;  %vm4227_vm1 = vcmp.eq.f32.partialorder %v4226_v58, 8.507059e+37 }
 0x6e9   : > { %5286 = vrsqrt.f32 %v3423_v1 }
 0x6ea   : > { %4899 = vmatmul.msk.bf16.gmra.mxu0 %vm3091_vm12, %v4333_v20  ;;  %v4206_v22 = vadd.f32 %v5281_v30, %v4205_v25 }
 0x6eb   : > { %v5283_v23 = vpop.eup %5282 }
 0x6ec   : > { %v4218_v42 = vmul.f32 %v5283_v23, %v3835_v56  ;;  %v4210_v14 = vsel %vm4209_vm11, %v5281_v30, %v4206_v22  ;;  %vm4223_vm13 = vweird.f32 %v5283_v23  ;;  %v3784_v22 = vand.u32 2147483648, %v3423_v1 }
 0x6ed   : > { %v4471_v35 = vpop.f32.mrf.mxu0  ;;  %v4215_v29 = vsel %vm4212_vm14, %v4214_v0, %v4210_v14  ;;  %vm4224_vm0 = vmor %vm4222_vm15, %vm4223_vm13  ;;  %v5285_v46 = vpop.eup %5284 }
 0x6ee   : > { %v4219_v5 = vsub.f32 1.0, %v4218_v42  ;;  %v4472_v12 = vadd.f32 %v8272_v53, %v4471_v35  ;;  %v4216_v60 = vmul.f32 %v4215_v29, %v8104_v11  ;;  %v3739_v17 = vmul.f32 %v5285_v46, %v3420_v38 }
 0x6ef   : > { %v5287_v41 = vpop.eup %5286 }
 0x6f0   : > { %v4220_v55 = vmul.f32 %v5283_v23, %v4219_v5  ;;  %4527 = vst [vmem:[%s7885_s18 + $0x80] sm:$0xff] %v4472_v12  ;;  %v3740_v7 = vmul.f32 %v5285_v46, %v3739_v17  ;;  %v3775_v16 = vmul.f32 %v5287_v41, %v3423_v1 }
 0x6f2   : > { %v4221_v61 = vadd.f32 %v5283_v23, %v4220_v55  ;;  %v3741_v11 = vmul.f32 0.5, %v3740_v7  ;;  %v3776_v27 = vmul.f32 %v5287_v41, %v3775_v16 }
 0x6f4   : > { %v4225_v43 = vsel %vm4224_vm0, %v5283_v23, %v4221_v61  ;;  %v3777_v63 = vmul.f32 0.5, %v3776_v27 }
 0x6f5   : > { %v4230_v4 = vsel %vm4227_vm1, %v4229_v3, %v4225_v43  ;;  %v4473_v24 = vpop.f32.mrf.mxu0 }
 0x6f6   : > { %v4231_v37 = vmul.f32 %v4230_v4, %v8129_v39  ;;  %v4474_v44 = vadd.f32 %v8272_v53, %v4473_v24  ;;  %v3742_v39 = vsub.f32 1.5, %v3741_v11  ;;  %v3778_v59 = vsub.f32 1.5, %v3777_v63 }
 0x6f8   : > { %v4334_v34 = vpack.c.bf16 %v4231_v37, %v4216_v60  ;;  %4528 = vst [vmem:[%s7885_s18 + $0x88] sm:$0xff] %v4474_v44  ;;  %v3743_v51 = vmul.f32 %v5285_v46, %v3742_v39  ;;  %v3779_v21 = vmul.f32 %v5287_v41, %v3778_v59 }
 0x6fa   : > { %4900 = vmatmul.msk.bf16.gmra.mxu0 %vm3091_vm12, %v4334_v34  ;;  %v3744_v13 = vmul.f32 %v3743_v51, %v3420_v38  ;;  %v3780_v62 = vmul.f32 %v3779_v21, %v3423_v1 }
 0x6fc   : > { %v3746_v9 = vsel %vm3745_vm2, %v3420_v38, %v3744_v13  ;;  %v3782_v25 = vsel %vm3781_vm4, %v3423_v1, %v3780_v62 }
 0x6fd   : > { %v3749_v2 = vsel %vm3747_vm3, %v3748_v47, %v3746_v9  ;;  %v3785_v12 = vsel %vm3783_vm5, %v3784_v22, %v3782_v25 }
 0x6fe   : > { %v8415_v52 = vadd.f32 1e-05, %v3749_v2  ;;  %v8428_v29 = vadd.f32 1e-05, %v3785_v12 }
 0x700   : > { %vm4237_vm11 = vweird.f32 %v8415_v52  ;;  %v4243_v9 = vand.u32 2147483648, %v8415_v52 }
 0x702   : > { %v4244_v62 = vor.u32 1.1754944e-38, %v4243_v9 }
 0x724   : > { %v3374_v40 = vpop.xlane.xlu0 %3373 }
 0x725   : > { %v3421_v30 = vmul.f32 %v7429_v54, %v3374_v40 }
 0x727   : > { %5288 = vrsqrt.f32 %v3421_v30  ;;  %vm3757_vm6 = vcmp.eq.f32.partialorder %v3421_v30, inf  ;;  %v3760_v0 = vand.u32 2147483648, %v3421_v30  ;;  %vm3759_vm7 = vcmp.eq.f32.partialorder %v3421_v30, 0.0 }
 0x728   : > { %5290 = vrcp.f32 %v8415_v52 }
 0x72c   : > { %v3377_v56 = vpop.xlane.xlu1 %3376  ;;  %v3383_v6 = vpop.xlane.xlu0 %3382 }
 0x72d   : > { %v5289_v57 = vpop.eup %5288  ;;  %v3422_v8 = vmul.f32 %v7429_v54, %v3377_v56  ;;  %v8419_v33 = vmul.f32 %v7429_v54, %v3383_v6 }
 0x72e   : > { %v3751_v15 = vmul.f32 %v5289_v57, %v3421_v30  ;;  %v8423_v23 = vpop.eup %5290 }
 0x72f   : > { %5292 = vrsqrt.f32 %v3422_v8  ;;  %v4233_v58 = vmul.f32 %v8423_v23, %v8415_v52  ;;  %vm3769_vm8 = vcmp.eq.f32.partialorder %v3422_v8, inf  ;;  %v3772_v31 = vand.u32 2147483648, %v3422_v8 }
 0x730   : > { %v3752_v20 = vmul.f32 %v5289_v57, %v3751_v15  ;;  %5294 = vrsqrt.f32 %v8419_v33  ;;  %vm3771_vm9 = vcmp.eq.f32.partialorder %v3422_v8, 0.0  ;;  %vm4238_vm10 = vweird.f32 %v8423_v23 }
 0x731   : > { %v4234_v44 = vsub.f32 1.0, %v4233_v58  ;;  %5296 = vrcp.f32 %v8428_v29  ;;  %vm8443_vm13 = vmor %vm4237_vm11, %vm4238_vm10  ;;  %vm3793_vm14 = vcmp.eq.f32.partialorder %v8419_v33, inf  ;;  %v3796_v15 = vand.u32 2147483648, %v8419_v33 }
 0x732   : > { %v3753_v28 = vmul.f32 0.5, %v3752_v20  ;;  %vm3795_vm0 = vcmp.eq.f32.partialorder %v8419_v33, 0.0 }
 0x733   : > { %v4235_v46 = vmul.f32 %v8423_v23, %v4234_v44 }
 0x734   : > { %v3754_v42 = vsub.f32 1.5, %v3753_v28 }
 0x735   : > { %v5293_v19 = vpop.eup %5292  ;;  %v4236_v39 = vadd.f32 %v8423_v23, %v4235_v46  ;;  %v4286_v46 = vand.u32 2147483647, %v8428_v29 }
 0x736   : > { %v5295_v35 = vpop.eup %5294  ;;  %v3755_v50 = vmul.f32 %v5289_v57, %v3754_v42  ;;  %v3763_v5 = vmul.f32 %v5293_v19, %v3422_v8 }
 0x737   : > { %v3787_v26 = vmul.f32 %v5295_v35, %v8419_v33  ;;  %v8432_v7 = vpop.eup %5296  ;;  %v4240_v56 = vsel %vm8443_vm13, %v8423_v23, %v4236_v39  ;;  %vm4287_vm13 = vcmp.eq.f32.partialorder %v4286_v46, 8.507059e+37 }
 0x738   : > { %v3756_v14 = vmul.f32 %v3755_v50, %v3421_v30  ;;  %v3764_v55 = vmul.f32 %v5293_v19, %v3763_v5  ;;  %v4278_v2 = vmul.f32 %v8432_v7, %v8428_v29 }
 0x739   : > { %v3788_v61 = vmul.f32 %v5295_v35, %v3787_v26 }
 0x73a   : > { %v3758_v3 = vsel %vm3757_vm6, %v3421_v30, %v3756_v14  ;;  %v3765_v43 = vmul.f32 0.5, %v3764_v55  ;;  %v4241_v30 = vand.u32 2147483647, %v8415_v52  ;;  %vm4283_vm6 = vweird.f32 %v8432_v7 }
 0x73b   : > { %v3789_v4 = vmul.f32 0.5, %v3788_v61  ;;  %v3761_v24 = vsel %vm3759_vm7, %v3760_v0, %v3758_v3 }
 0x73c   : > { %v3766_v60 = vsub.f32 1.5, %v3765_v43  ;;  %v3837_v37 = vadd.f32 1e-05, %v3761_v24  ;;  %vm4242_vm1 = vcmp.eq.f32.partialorder %v4241_v30, 8.507059e+37 }
 0x73d   : > { %v3790_v34 = vsub.f32 1.5, %v3789_v4  ;;  %v4245_v28 = vsel %vm4242_vm1, %v4244_v62, %v4240_v56 }
 0x73e   : > { %v3767_v10 = vmul.f32 %v5293_v19, %v3766_v60  ;;  %5298 = vrcp.f32 %v3837_v37  ;;  %v4258_v6 = vand.u32 2147483648, %v3837_v37  ;;  %v4256_v52 = vand.u32 2147483647, %v3837_v37 }
 0x73f   : > { %v3791_v17 = vmul.f32 %v5295_v35, %v3790_v34  ;;  %vm4252_vm2 = vweird.f32 %v3837_v37  ;;  %v4279_v35 = vsub.f32 1.0, %v4278_v2  ;;  %v4288_v34 = vand.u32 2147483648, %v8428_v29 }
 0x740   : > { %v3768_v38 = vmul.f32 %v3767_v10, %v3422_v8  ;;  %v4259_v25 = vor.u32 1.1754944e-38, %v4258_v6  ;;  %vm4257_vm4 = vcmp.eq.f32.partialorder %v4256_v52, 8.507059e+37 }
 0x741   : > { %v3792_v51 = vmul.f32 %v3791_v17, %v8419_v33  ;;  %v4280_v3 = vmul.f32 %v8432_v7, %v4279_v35  ;;  %v4289_v39 = vor.u32 1.1754944e-38, %v4288_v34 }
 0x742   : > { %v3770_v1 = vsel %vm3769_vm8, %v3422_v8, %v3768_v38 }
 0x743   : > { %v3773_v11 = vsel %vm3771_vm9, %v3772_v31, %v3770_v1  ;;  %v3794_v57 = vsel %vm3793_vm14, %v8419_v33, %v3792_v51  ;;  %v4246_v33 = vmul.f32 %v4245_v28, %v8168_v36  ;;  %vm4282_vm9 = vweird.f32 %v8428_v29 }
 0x744   : > { %v5299_v41 = vpop.eup %5298  ;;  %v8436_v16 = vadd.f32 1e-05, %v3773_v11  ;;  %v3797_v23 = vsel %vm3795_vm0, %v3796_v15, %v3794_v57  ;;  %vm4284_vm10 = vmor %vm4282_vm9, %vm4283_vm6 }
 0x745   : > { %v4476_v27 = vpop.f32.mrf.mxu0  ;;  %v4248_v13 = vmul.f32 %v5299_v41, %v3837_v37  ;;  %vm4253_vm15 = vweird.f32 %v5299_v41  ;;  %v8466_v14 = vadd.f32 1e-05, %v3797_v23  ;;  %v4281_v37 = vadd.f32 %v8432_v7, %v4280_v3 }
 0x746   : > { %v4477_v63 = vadd.f32 %v8272_v53, %v4476_v27  ;;  %5300 = vrcp.f32 %v8436_v16  ;;  %v3386_v40 = vpop.xlane.xlu1 %3385  ;;  %vm4254_vm3 = vmor %vm4252_vm2, %vm4253_vm15  ;;  %v4273_v36 = vand.u32 2147483648, %v8436_v16  ;;  %vm4267_vm7 = vweird.f32 %v8436_v16 }
 0x747   : > { %v4249_v59 = vsub.f32 1.0, %v4248_v13  ;;  %v8453_v21 = vmul.f32 %v7429_v54, %v3386_v40  ;;  %v4271_v60 = vand.u32 2147483647, %v8436_v16  ;;  %v4285_v11 = vsel %vm4284_vm10, %v8432_v7, %v4281_v37 }
 0x748   : > { %4529 = vst [vmem:[%s7885_s18 + $0x90] sm:$0xff] %v4477_v63  ;;  %v4274_v31 = vor.u32 1.1754944e-38, %v4273_v36  ;;  %v4290_v51 = vsel %vm4287_vm13, %v4289_v39, %v4285_v11  ;;  %v4303_v52 = vand.u32 2147483648, %v8466_v14  ;;  %vm4297_vm1 = vweird.f32 %v8466_v14 }
 0x749   : > { %v4250_v8 = vmul.f32 %v5299_v41, %v4249_v59  ;;  %5302 = vrsqrt.f32 %v8453_v21  ;;  %vm4272_vm11 = vcmp.eq.f32.partialorder %v4271_v60, 8.507059e+37  ;;  %vm3805_vm14 = vcmp.eq.f32.partialorder %v8453_v21, inf }
 0x74a   : > { %5304 = vrcp.f32 %v8466_v14  ;;  %v3808_v29 = vand.u32 2147483648, %v8453_v21  ;;  %vm3807_vm15 = vcmp.eq.f32.partialorder %v8453_v21, 0.0  ;;  %v4291_v47 = vmul.f32 %v4290_v51, %v8182_v49 }
 0x74b   : > { %v4251_v54 = vadd.f32 %v5299_v41, %v4250_v8  ;;  %v4301_v49 = vand.u32 2147483647, %v8466_v14 }
 0x74c   : > { %v5301_v20 = vpop.eup %5300 }
 0x74d   : > { %v4478_v22 = vpop.f32.mrf.mxu0  ;;  %v4255_v42 = vsel %vm4254_vm3, %v5299_v41, %v4251_v54  ;;  %v4263_v19 = vmul.f32 %v5301_v20, %v8436_v16  ;;  %vm4268_vm5 = vweird.f32 %v5301_v20 }
 0x74e   : > { %v4479_v50 = vadd.f32 %v8272_v53, %v4478_v22  ;;  %v4260_v5 = vsel %vm4257_vm4, %v4259_v25, %v4255_v42  ;;  %vm4269_vm8 = vmor %vm4267_vm7, %vm4268_vm5  ;;  %v4304_v25 = vor.u32 1.1754944e-38, %v4303_v52  ;;  %vm4302_vm4 = vcmp.eq.f32.partialorder %v4301_v49, 8.507059e+37 }
 0x74f   : > { %v4261_v12 = vmul.f32 %v4260_v5, %v8225_v48  ;;  %v4264_v26 = vsub.f32 1.0, %v4263_v19  ;;  %v5303_v55 = vpop.eup %5302 }
 0x750   : > { %4530 = vst [vmem:[%s7885_s18 + $0x98] sm:$0xff] %v4479_v50  ;;  %v3799_v58 = vmul.f32 %v5303_v55, %v8453_v21  ;;  %v5305_v17 = vpop.eup %5304 }
 0x751   : > { %v4335_v0 = vpack.c.bf16 %v4261_v12, %v4246_v33  ;;  %v4265_v61 = vmul.f32 %v5301_v20, %v4264_v26  ;;  %v4293_v27 = vmul.f32 %v5305_v17, %v8466_v14  ;;  %vm4298_vm0 = vweird.f32 %v5305_v17 }
 0x752   : > { %v3800_v43 = vmul.f32 %v5303_v55, %v3799_v58  ;;  %vm4299_vm2 = vmor %vm4297_vm1, %vm4298_vm0 }
 0x753   : > { %4901 = vmatmul.msk.bf16.gmra.mxu0 %vm3091_vm12, %v4335_v0  ;;  %v4266_v4 = vadd.f32 %v5301_v20, %v4265_v61  ;;  %v4294_v59 = vsub.f32 1.0, %v4293_v27 }
 0x754   : > { %v3801_v48 = vmul.f32 0.5, %v3800_v43 }
 0x755   : > { %v4481_v24 = vpop.f32.mrf.mxu0  ;;  %v4270_v38 = vsel %vm4269_vm8, %v5301_v20, %v4266_v4  ;;  %v4295_v56 = vmul.f32 %v5305_v17, %v4294_v59 }
 0x756   : > { %v4482_v44 = vadd.f32 %v8272_v53, %v4481_v24  ;;  %v3802_v10 = vsub.f32 1.5, %v3801_v48  ;;  %v4275_v41 = vsel %vm4272_vm11, %v4274_v31, %v4270_v38 }
 0x757   : > { %v4276_v7 = vmul.f32 %v4275_v41, %v8244_v18 }
 0x758   : > { %4531 = vst [vmem:[%s7885_s18 + $0xa0] sm:$0xff] %v4482_v44  ;;  %v3803_v1 = vmul.f32 %v5303_v55, %v3802_v10 }
 0x759   : > { %v4336_v2 = vpack.c.bf16 %v4291_v47, %v4276_v7 }
 0x75a   : > { %v3804_v16 = vmul.f32 %v3803_v1, %v8453_v21 }
 0x75c   : > { %v3806_v13 = vsel %vm3805_vm14, %v8453_v21, %v3804_v16  ;;  %v4296_v21 = vadd.f32 %v5305_v17, %v4295_v56 }
 0x75d   : > { %v4483_v63 = vpop.f32.mrf.mxu0  ;;  %v3809_v40 = vsel %vm3807_vm15, %v3808_v29, %v3806_v13 }
 0x75e   : > { %v4484_v9 = vadd.f32 %v8272_v53, %v4483_v63  ;;  %v3841_v30 = vadd.f32 1e-05, %v3809_v40  ;;  %v4300_v54 = vsel %vm4299_vm2, %v5305_v17, %v4296_v21 }
 0x75f   : > { %v4305_v22 = vsel %vm4302_vm4, %v4304_v25, %v4300_v54 }
 0x760   : > { %4532 = vst [vmem:[%s7885_s18 + $0xa8] sm:$0xff] %v4484_v9  ;;  %5306 = vrcp.f32 %v3841_v30  ;;  %v4318_v62 = vand.u32 2147483648, %v3841_v30  ;;  %v4316_v28 = vand.u32 2147483647, %v3841_v30  ;;  %vm4312_vm5 = vweird.f32 %v3841_v30 }
 0x761   : > { %v4306_v33 = vmul.f32 %v4305_v22, %v8233_v45 }
 0x762   : > { %v4319_v42 = vor.u32 1.1754944e-38, %v4318_v62  ;;  %vm4317_vm7 = vcmp.eq.f32.partialorder %v4316_v28, 8.507059e+37 }
 0x763   : > { %4902 = vmatmul.msk.bf16.gmra.mxu0 %vm3091_vm12, %v4336_v2 }
 0x766   : > { %v5307_v6 = vpop.eup %5306 }
 0x767   : > { %v4486_v57 = vpop.f32.mrf.mxu0  ;;  %v4308_v8 = vmul.f32 %v5307_v6, %v3841_v30  ;;  %vm4313_vm3 = vweird.f32 %v5307_v6 }
 0x768   : > { %v4487_v18 = vadd.f32 %v8272_v53, %v4486_v57  ;;  %vm4314_vm6 = vmor %vm4312_vm5, %vm4313_vm3 }
 0x769   : > { %v4309_v15 = vsub.f32 1.0, %v4308_v8 }
 0x76a   : > { %4533 = vst [vmem:[%s7885_s18 + $0xb0] sm:$0xff] %v4487_v18 }
 0x76b   : > { %v4310_v20 = vmul.f32 %v5307_v6, %v4309_v15 }
 0x76d   : > { %v4311_v23 = vadd.f32 %v5307_v6, %v4310_v20 }
 0x76f   : > { %v4488_v19 = vpop.f32.mrf.mxu0  ;;  %v4315_v35 = vsel %vm4314_vm6, %v5307_v6, %v4311_v23 }
 0x770   : > { %v4489_v50 = vadd.f32 %v8272_v53, %v4488_v19  ;;  %v4320_v5 = vsel %vm4317_vm7, %v4319_v42, %v4315_v35 }
 0x771   : > { %v4321_v12 = vmul.f32 %v4320_v5, %v8343_v32 }
 0x772   : > { %4534 = vst [vmem:[%s7885_s18 + $0xb8] sm:$0xff] %v4489_v50 }
 0x773   : > { %v4337_v26 = vpack.c.bf16 %v4321_v12, %v4306_v33 }
 0x775   : > { %4903 = vmatmul.msk.bf16.gmra.mxu0 %vm3091_vm12, %v4337_v26 }
 0x777   : > { %v4491_v14 = vpop.f32.mrf.mxu0 }
 0x778   : > { %v4492_v55 = vadd.f32 %v8272_v53, %v4491_v14 }
 0x77a   : > { %4535 = vst [vmem:[%s7885_s18 + $0xc0] sm:$0xff] %v4492_v55 }
 0x77f   : > { %v4493_v58 = vpop.f32.mrf.mxu0 }
 0x780   : > { %v4494_v0 = vadd.f32 %v8272_v53, %v4493_v58 }
 0x782   : > { %4536 = vst [vmem:[%s7885_s18 + $0xc8] sm:$0xff] %v4494_v0 }
 0x7d0   : > { %v4496_v61 = vpop.f32.mrf.mxu0 }
 0x7d1   : > { %v4497_v45 = vadd.f32 %v8272_v53, %v4496_v61 }
 0x7d3   : > { %4537 = vst [vmem:[%s7885_s18 + $0xd0] sm:$0xff] %v4497_v45 }
 0x7d8   : > { %v4498_v32 = vpop.f32.mrf.mxu0 }
 0x7d9   : > { %v4499_v3 = vadd.f32 %v8272_v53, %v4498_v32 }
 0x7db   : > { %4538 = vst [vmem:[%s7885_s18 + $0xd8] sm:$0xff] %v4499_v3 }
 0x7e0   : > { %v4501_v43 = vpop.f32.mrf.mxu0 }
 0x7e1   : > { %v4502_v4 = vadd.f32 %v8272_v53, %v4501_v43 }
 0x7e3   : > { %4539 = vst [vmem:[%s7885_s18 + $0xe0] sm:$0xff] %v4502_v4 }
 0x7e8   : > { %v4503_v36 = vpop.f32.mrf.mxu0 }
 0x7e9   : > { %v4504_v48 = vadd.f32 %v8272_v53, %v4503_v36 }
 0x7eb   : > { %4540 = vst [vmem:[%s7885_s18 + $0xe8] sm:$0xff] %v4504_v48 }
 0x7f2   : > { %v4506_v24 = vpop.f32.mrf.mxu0 }
 0x7f3   : > { %v4507_v60 = vadd.f32 %v8272_v53, %v4506_v24 }
 0x7f5   : > { %4541 = vst [vmem:[%s7885_s18 + $0xf0] sm:$0xff] %v4507_v60 }
 0x7fa   : > { %v4508_v37 = vpop.f32.mrf.mxu0 }
 0x7fb   : > { %v4509_v44 = vadd.f32 %v8272_v53, %v4508_v37 }
 0x7fd   : > { %4542 = vst [vmem:[%s7885_s18 + $0xf8] sm:$0xff] %v4509_v44 }
 0x7fe   : > { %5338 = shalt.err (!%p5335_p3)
}
 0x7ff   : > { %s5379_s17 = smov 128   ;;  %s5380_s18 = smov 8  }
 0x800   : > { %4996 = dma.vmem_to_hbm [thread:$0]  (%p5459_p5), %s4557_s8, 4096, %s4559_s9, %s4544_s13, %s5379_s17, %s5379_s17, %s5380_s18  }
 0x801 PF: > { %p5002_p4 = scmp.ge.s32.totalorder %s5373_s27, 2  ;;  %s4573_s22 = sand.u32 1, %s5361_s24  }
 0x802   : > { %s4574_s23 = scalar_lea.sflag [#allocation3], %s4573_s22 }
 0x803   : > { %p4999_p7 = pnand %p5002_p4, %p5463_p6 }
 0x805   : > { %p5000_p8 = pneg %p4999_p7 }
 0x807   : > { %5356 = dma.done.wait (%p5000_p8), %s4574_s23, 4096  }
 0x808   : > { %5358 = vsyncadd (%p5000_p8), %s4574_s23, 4294963200  ;;  %p17_p9 = scmp.ge.s32.totalorder %s5446_s30, 4   ;;  %s8651_s24 = smov %s5365_s25 }
 0x809   : > { %s8652_s25 = smov %s5369_s26  ;;  %s8653_s26 = smov %s5457_s10 }
 0x80a   : > { %s8654_s27 = smov %s5446_s30  ;;  %19 = sbr.rel (!%p17_p9) target bundleno = 3 (0x3), region = 83 }
 0x80f   :  { %4580 = vsyncpa [#allocation3], 1 }
 0x810   :  { %4582 = vsyncpa [#allocation3 + $0x1], 1 }

</bundles_post_ra>
